<compile_context>
chip_gen: v7x
topology: tpu7x:2x2x1
jax: 0.10.0
libtpu: 0.0.40
codegen_flags: <defaults>
</compile_context>

<pallas_src>
import functools

import jax
import jax.numpy as jnp
from jax import lax
from jax.experimental import pallas as pl
from jax.experimental.pallas import tpu as pltpu


# ----------------------------------------------------------------------------
# Fixed decoder geometry (per-sample semantics, as in the PyTorch module)
# TODO(synk): Decoder.find_parameters solves an underdetermined sympy system;
# we pin the deterministic solution kernels=[3,3,1], paddings=[0,0,0],
# strides=[1,1,1] (spatial 6 -> 8 -> 10 -> 10) for patch_size=10 / 36 encoder
# outputs.
# ----------------------------------------------------------------------------
ENC_SIDE = 6                       # sqrt(36)
D1_SIDE = 8                        # after ConvTranspose2d(1, 64, 3)
D2_SIDE = 10                       # after ConvTranspose2d(64, 32, 3) == patch
D_WP = 12                          # shared row stride of both decoder canvases
D1_SLAB = D1_SIDE * D_WP           # 96  (ConvT1 output slab length)
D2_SLAB = D2_SIDE * D_WP           # 120 (ConvT2 output slab length)
D1_CLEN = 128                      # ConvT1 input canvas lanes (needs >= 122)
D2_CLEN = 152                      # ConvT2 input canvas lanes (needs >= 146)


# ----------------------------------------------------------------------------
# Fused forward kernel (one grid step == one sample)
# ----------------------------------------------------------------------------
def _fwd_kernel(x_ref, wbig_ref, lw_ref, wsm_ref, o_ref,
                cE, stk, stkA, d1c, d2c, *, H, W):
    f32 = jnp.float32
    Wp = W + 2
    SE = H * Wp                         # encoder output-slab length
    CE = (H + 2) * Wp + 2               # encoder canvas length
    enc_offs = [dh * Wp + dw for dh in range(3) for dw in range(3)]
    dec_offs = [a * D_WP + b for a in range(3) for b in range(3)]

    # ---- packed weights / biases (static slices of the 3 resident blobs) ---
    ew2 = wbig_ref[0:64, 0:288]         # Conv2d(32,64,3)   as (64, 9*32)
    dw2 = wbig_ref[64:96, :]            # ConvT2d(64,32,3)  as (32, 9*64)
    ew3 = wbig_ref[96:97, :]            # Conv2d(64,1,3)    as (1, 9*64)
    ew1 = wsm_ref[0:32, 0:16]           # Conv2d(1,32,3)    as (32, 16) K-padded
    dw1 = wsm_ref[0:64, 16:32]          # ConvT2d(1,64,3)   as (64, 16) K-padded
    eb1 = wsm_ref[0:32, 32:33]
    eb2 = wsm_ref[0:64, 33:34]
    eb3 = wsm_ref[0:1, 34:35]
    db1 = wsm_ref[0:64, 35:36]
    db2 = wsm_ref[0:32, 36:37]
    db3 = wsm_ref[0:1, 37:38]
    dw3 = wsm_ref[0:1, 64:96]           # ConvT2d(32,1,1)   as (1, 32)
    lb = wsm_ref[0:1, 128:200]          # Linear bias, pre-laid on 6x12 grid

    # ---- valid-column masks of the row-strided slabs (built once) ----------
    mask_e = (lax.broadcasted_iota(jnp.int32, (1, SE), 1) % Wp) < W
    mask_d = (lax.broadcasted_iota(jnp.int32, (1, D1_SLAB), 1) % D_WP) < D1_SIDE

    # ---- zero only the canvas borders (data regions are overwritten) -------
    cE[:, 0:Wp + 1] = jnp.zeros((64, Wp + 1), f32)
    cE[:, Wp + 1 + SE:CE] = jnp.zeros((64, CE - Wp - 1 - SE), f32)
    d1c[:, 0:2 * D_WP + 2] = jnp.zeros((1, 2 * D_WP + 2), f32)
    d1c[:, 2 * D_WP + 2 + ENC_SIDE * D_WP:D1_CLEN] = jnp.zeros(
        (1, D1_CLEN - 2 * D_WP - 2 - ENC_SIDE * D_WP), f32)
    d2c[:, 0:2 * D_WP + 2] = jnp.zeros((64, 2 * D_WP + 2), f32)
    d2c[:, 2 * D_WP + 2 + D1_SLAB:D2_CLEN] = jnp.zeros(
        (64, D2_CLEN - 2 * D_WP - 2 - D1_SLAB), f32)

    # ================= encoder conv1: Conv2d(1,32,3,p=1)+ReLU ===============
    xrow = x_ref[...].reshape(1, CE)    # host-padded input IS the conv1 canvas
    for k, off in enumerate(enc_offs):
        stkA[k:k + 1, 0:SE] = xrow[:, off:off + SE]
    stkA[9:16, 0:SE] = jnp.zeros((7, SE), f32)
    a = jnp.dot(ew1, stkA[0:16, 0:SE], preferred_element_type=f32)
    a = jnp.maximum(a + eb1, 0.0)                                # (32, SE)
    cE[0:32, Wp + 1:Wp + 1 + SE] = jnp.where(mask_e, a, 0.0)

    # ================= encoder conv2: Conv2d(32,64,3,p=1)+ReLU ==============
    for k, off in enumerate(enc_offs):
        stk[k * 32:(k + 1) * 32, 0:SE] = cE[0:32, off:off + SE]
    a = jnp.dot(ew2, stk[0:288, 0:SE], preferred_element_type=f32)
    a = jnp.maximum(a + eb2, 0.0)                                # (64, SE)
    cE[0:64, Wp + 1:Wp + 1 + SE] = jnp.where(mask_e, a, 0.0)

    # ================= encoder conv3: Conv2d(64,1,3,p=1)+ReLU ===============
    for k, off in enumerate(enc_offs):
        stk[k * 64:(k + 1) * 64, 0:SE] = cE[0:64, off:off + SE]
    a = jnp.dot(ew3, stk[0:576, 0:SE], preferred_element_type=f32)
    a = jnp.maximum(a + eb3, 0.0)                                # (1, SE)

    # ===== Flatten + Linear(H*W, 36): pad columns hit all-zero weight rows ==
    z = jnp.dot(a, lw_ref[...], preferred_element_type=f32) + lb    # (1, 72)

    # ============ decoder ConvT2d(1,64,3)+ReLU : 6x6 -> 8x8 =================
    d1c[0:1, 2 * D_WP + 2:2 * D_WP + 2 + ENC_SIDE * D_WP] = z
    for k, off in enumerate(dec_offs):
        stkA[k:k + 1, 0:D1_SLAB] = d1c[0:1, off:off + D1_SLAB]
    stkA[9:16, 0:D1_SLAB] = jnp.zeros((7, D1_SLAB), f32)
    a = jnp.dot(dw1, stkA[0:16, 0:D1_SLAB], preferred_element_type=f32)
    a = jnp.maximum(a + db1, 0.0)                                # (64, 96)
    d2c[0:64, 2 * D_WP + 2:2 * D_WP + 2 + D1_SLAB] = jnp.where(mask_d, a, 0.0)

    # ============ decoder ConvT2d(64,32,3)+ReLU : 8x8 -> 10x10 ==============
    for k, off in enumerate(dec_offs):
        stk[k * 64:(k + 1) * 64, 0:D2_SLAB] = d2c[0:64, off:off + D2_SLAB]
    a = jnp.dot(dw2, stk[0:576, 0:D2_SLAB], preferred_element_type=f32)
    a = jnp.maximum(a + db2, 0.0)                                # (32, 120)

    # ============ decoder ConvT2d(32,1,1)+ReLU, then sigmoid ================
    y = jnp.dot(dw3, a, preferred_element_type=f32) + db3        # (1, 120)
    y = jnp.maximum(y, 0.0)
    o_ref[...] = (1.0 / (1.0 + jnp.exp(-y))).reshape(1, 1, D2_SLAB)


# ----------------------------------------------------------------------------
# Host-side wrapper
# ----------------------------------------------------------------------------
def forward(params, x, patch_size=D2_SIDE):
    """x: (B, 1, H, W) float32. Returns (B, patch, patch) (B=1 matches torch)."""
    B, _, H, W = x.shape
    assert patch_size == D2_SIDE
    Wp = W + 2
    CE = (H + 2) * Wp + 2

    # zero-pad (pad=1) and flatten to the row-strided canvas layout (tiny op)
    xp = jnp.pad(x.reshape(B, H, W).astype(jnp.float32),
                 ((0, 0), (1, 1), (1, 1))).reshape(B, (H + 2) * Wp)
    xp = jnp.pad(xp, ((0, 0), (0, CE - (H + 2) * Wp))).reshape(B, 1, CE)

    wbig, lw, wsm = params["wbig"], params["lw"], params["wsm"]

    out = pl.pallas_call(
        functools.partial(_fwd_kernel, H=H, W=W),
        out_shape=jax.ShapeDtypeStruct((B, 1, D2_SLAB), jnp.float32),
        grid_spec=pltpu.PrefetchScalarGridSpec(
            num_scalar_prefetch=0,
            grid=(B,),
            in_specs=[
                pl.BlockSpec((1, 1, CE), lambda b: (b, 0, 0)),   # per-sample
                pl.BlockSpec(wbig.shape, lambda b: (0, 0)),      # resident
                pl.BlockSpec(lw.shape, lambda b: (0, 0)),        # resident
                pl.BlockSpec(wsm.shape, lambda b: (0, 0)),       # resident
            ],
            out_specs=pl.BlockSpec((1, 1, D2_SLAB), lambda b: (b, 0, 0)),
            scratch_shapes=[
                pltpu.VMEM((64, CE), jnp.float32),        # encoder canvas
                pltpu.VMEM((576, H * Wp), jnp.float32),   # big tap stack
                pltpu.VMEM((16, H * Wp), jnp.float32),    # Cin==1 tap stack
                pltpu.VMEM((1, D1_CLEN), jnp.float32),    # ConvT1 canvas
                pltpu.VMEM((64, D2_CLEN), jnp.float32),   # ConvT2 canvas
            ],
        ),
        compiler_params=pltpu.CompilerParams(
            dimension_semantics=("parallel",)),
    )(xp, wbig, lw, wsm)

    # strip the 2 garbage lanes per output row, shape back to (B, P, P)
    return out.reshape(B, D2_SIDE, D_WP)[:, :, :D2_SIDE]


# ----------------------------------------------------------------------------
# Parameters: PyTorch-shaped tensors packed ONCE into 3 kernel operand blobs
# ----------------------------------------------------------------------------
def init_params(key, input_shape):
    _, H, W = input_shape
    S = H * W
    Wp = W + 2
    ks = jax.random.split(key, 14)

    def nrm(k, shape, scale=0.05):
        return scale * jax.random.normal(k, shape, dtype=jnp.float32)

    # PyTorch-shaped parameters
    enc_w1 = nrm(ks[0], (32, 1, 3, 3));   enc_b1 = nrm(ks[1], (32,))
    enc_w2 = nrm(ks[2], (64, 32, 3, 3));  enc_b2 = nrm(ks[3], (64,))
    enc_w3 = nrm(ks[4], (1, 64, 3, 3));   enc_b3 = nrm(ks[5], (1,))
    lin_w = nrm(ks[6], (ENC_SIDE * ENC_SIDE, S)); lin_b = nrm(ks[7], (36,))
    dec_w1 = nrm(ks[8], (1, 64, 3, 3));   dec_b1 = nrm(ks[9], (64,))
    dec_w2 = nrm(ks[10], (64, 32, 3, 3)); dec_b2 = nrm(ks[11], (32,))
    dec_w3 = nrm(ks[12], (32, 1, 1, 1));  dec_b3 = nrm(ks[13], (1,))

    # stacked-tap conv weights: W_stk[co, (kh*3+kw)*Cin + ci]
    ew1 = enc_w1[:, 0].reshape(32, 9)
    ew2 = jnp.transpose(enc_w2, (0, 2, 3, 1)).reshape(64, 9 * 32)
    ew3 = jnp.transpose(enc_w3, (0, 2, 3, 1)).reshape(1, 9 * 64)
    # ConvTranspose (stride 1, pad 0) == correlation with the spatially
    # flipped kernel and swapped in/out channels.
    dw1 = jnp.flip(dec_w1, (2, 3))[0].reshape(64, 9)
    dw2 = jnp.transpose(jnp.flip(dec_w2, (2, 3)), (1, 2, 3, 0)).reshape(32, 9 * 64)
    dw3 = dec_w3[:, :, 0, 0].T                                   # (1, 32)

    # Linear weight re-laid so that
    #   input  rows follow the encoder slab index  h*(W+2)+w  (0 for w >= W)
    #   output cols follow the decoder canvas index ho*12+wo  (0 for wo >= 6)
    lw = lin_w.reshape(ENC_SIDE, ENC_SIDE, H, W)
    lw = jnp.pad(lw, ((0, 0), (0, D_WP - ENC_SIDE), (0, 0), (0, 2)))
    lw = jnp.transpose(lw, (2, 3, 0, 1)).reshape(H * Wp, ENC_SIDE * D_WP)
    lb = jnp.pad(lin_b.reshape(ENC_SIDE, ENC_SIDE),
                 ((0, 0), (0, D_WP - ENC_SIDE))).reshape(1, ENC_SIDE * D_WP)

    # ---- 3 packed operand blobs (one prologue DMA each) ----
    wbig = jnp.zeros((97, 576), jnp.float32)
    wbig = wbig.at[0:64, 0:288].set(ew2)
    wbig = wbig.at[64:96, :].set(dw2)
    wbig = wbig.at[96:97, :].set(ew3)

    wsm = jnp.zeros((64, 256), jnp.float32)
    wsm = wsm.at[0:32, 0:9].set(ew1)        # cols 9..15 stay 0 (K pad to 16)
    wsm = wsm.at[0:64, 16:25].set(dw1)      # cols 25..31 stay 0
    wsm = wsm.at[0:32, 32].set(enc_b1)
    wsm = wsm.at[0:64, 33].set(enc_b2)
    wsm = wsm.at[0, 34].set(enc_b3[0])
    wsm = wsm.at[0:64, 35].set(dec_b1)
    wsm = wsm.at[0:32, 36].set(dec_b2)
    wsm = wsm.at[0, 37].set(dec_b3[0])
    wsm = wsm.at[0:1, 64:96].set(dw3)
    wsm = wsm.at[0:1, 128:200].set(lb)

    return {"wbig": wbig, "lw": lw, "wsm": wsm}


# ----------------------------------------------------------------------------
if __name__ == "__main__":
    patch_size = D2_SIDE               # 10, as in the PyTorch module
    input_shape = (1, 16, 16)          # (C, H, W) -> Linear(in=256, out=36)
    batch = 2                          # grid of independent samples/patches

    key = jax.random.PRNGKey(0)
    k_param, k_x = jax.random.split(key)
    params = init_params(k_param, input_shape)
    x = jax.random.normal(k_x, (batch,) + input_shape, dtype=jnp.float32)

    fwd = jax.jit(functools.partial(forward, patch_size=patch_size))
    out = fwd(params, x)
    jax.block_until_ready(out)
    assert out.shape == (batch, patch_size, patch_size)
    assert bool(jnp.all(jnp.isfinite(out)))
    assert bool(jnp.all((out >= 0.0) & (out <= 1.0)))
    print("KERNEL_OK")
</pallas_src>

<mosaic_0001>
module attributes {stable_mosaic.version = 11 : i64} {
  func.func @_fwd_kernel(%arg0: i32, %arg1: memref<1x1x326xf32, #tpu.memory_space<vmem>>, %arg2: memref<97x576xf32, #tpu.memory_space<vmem>>, %arg3: memref<288x72xf32, #tpu.memory_space<vmem>>, %arg4: memref<64x256xf32, #tpu.memory_space<vmem>>, %arg5: memref<1x1x120xf32, #tpu.memory_space<vmem>>, %arg6: memref<64x326xf32, #tpu.memory_space<vmem>>, %arg7: memref<576x288xf32, #tpu.memory_space<vmem>>, %arg8: memref<16x288xf32, #tpu.memory_space<vmem>>, %arg9: memref<1x128xf32, #tpu.memory_space<vmem>>, %arg10: memref<64x152xf32, #tpu.memory_space<vmem>>) attributes {dimension_semantics = [#tpu.dimension_semantics<parallel>], iteration_bounds = array<i64: 2>, scalar_prefetch = 0 : i64, scratch_operands = 5 : i64, tpu.core_type = #tpu.core_type<tc>, window_params = [{transform_indices = @transform_0, window_bounds = array<i64: 1, 1, 326>}, {pipeline_mode = #tpu.pipeline_mode<synchronous>, transform_indices = @transform_1, window_bounds = array<i64: 97, 576>}, {pipeline_mode = #tpu.pipeline_mode<synchronous>, transform_indices = @transform_2, window_bounds = array<i64: 288, 72>}, {pipeline_mode = #tpu.pipeline_mode<synchronous>, transform_indices = @transform_3, window_bounds = array<i64: 64, 256>}, {transform_indices = @transform_4, window_bounds = array<i64: 1, 1, 120>}]} {
    %c0 = arith.constant 0 : index
    %c0_0 = arith.constant 0 : index
    %0 = vector.load %arg2[%c0, %c0_0] : memref<97x576xf32, #tpu.memory_space<vmem>>, vector<64x288xf32>
    %c64 = arith.constant 64 : index
    %c0_1 = arith.constant 0 : index
    %1 = vector.load %arg2[%c64, %c0_1] : memref<97x576xf32, #tpu.memory_space<vmem>>, vector<32x576xf32>
    %c96 = arith.constant 96 : index
    %c0_2 = arith.constant 0 : index
    %2 = vector.load %arg2[%c96, %c0_2] : memref<97x576xf32, #tpu.memory_space<vmem>>, vector<1x576xf32>
    %c0_3 = arith.constant 0 : index
    %c0_4 = arith.constant 0 : index
    %3 = vector.load %arg4[%c0_3, %c0_4] : memref<64x256xf32, #tpu.memory_space<vmem>>, vector<32x16xf32>
    %c0_5 = arith.constant 0 : index
    %c16 = arith.constant 16 : index
    %4 = vector.load %arg4[%c0_5, %c16] : memref<64x256xf32, #tpu.memory_space<vmem>>, vector<64x16xf32>
    %c0_6 = arith.constant 0 : index
    %c32 = arith.constant 32 : index
    %5 = vector.load %arg4[%c0_6, %c32] : memref<64x256xf32, #tpu.memory_space<vmem>>, vector<32x1xf32>
    %c0_7 = arith.constant 0 : index
    %c33 = arith.constant 33 : index
    %6 = vector.load %arg4[%c0_7, %c33] : memref<64x256xf32, #tpu.memory_space<vmem>>, vector<64x1xf32>
    %c0_8 = arith.constant 0 : index
    %c34 = arith.constant 34 : index
    %7 = vector.load %arg4[%c0_8, %c34] : memref<64x256xf32, #tpu.memory_space<vmem>>, vector<1x1xf32>
    %c0_9 = arith.constant 0 : index
    %c35 = arith.constant 35 : index
    %8 = vector.load %arg4[%c0_9, %c35] : memref<64x256xf32, #tpu.memory_space<vmem>>, vector<64x1xf32>
    %c0_10 = arith.constant 0 : index
    %c36 = arith.constant 36 : index
    %9 = vector.load %arg4[%c0_10, %c36] : memref<64x256xf32, #tpu.memory_space<vmem>>, vector<32x1xf32>
    %c0_11 = arith.constant 0 : index
    %c37 = arith.constant 37 : index
    %10 = vector.load %arg4[%c0_11, %c37] : memref<64x256xf32, #tpu.memory_space<vmem>>, vector<1x1xf32>
    %c0_12 = arith.constant 0 : index
    %c64_13 = arith.constant 64 : index
    %11 = vector.load %arg4[%c0_12, %c64_13] : memref<64x256xf32, #tpu.memory_space<vmem>>, vector<1x32xf32>
    %c0_14 = arith.constant 0 : index
    %c128 = arith.constant 128 : index
    %12 = vector.load %arg4[%c0_14, %c128] : memref<64x256xf32, #tpu.memory_space<vmem>>, vector<1x72xf32>
    %13 = tpu.iota {dimensions = array<i32: 1>} : vector<1x288xi32>
    %c18_i32 = arith.constant 18 : i32
    %c0_i32 = arith.constant 0 : i32
    %14 = arith.cmpi eq, %c18_i32, %c0_i32 : i32
    %c1_i32 = arith.constant 1 : i32
    %15 = arith.select %14, %c1_i32, %c18_i32 : i32
    %16 = vector.broadcast %15 : i32 to vector<1x288xi32>
    %17 = arith.remsi %13, %16 : vector<1x288xi32>
    %c0_i32_15 = arith.constant 0 : i32
    %18 = vector.broadcast %c0_i32_15 : i32 to vector<1x288xi32>
    %19 = arith.cmpi ne, %17, %18 : vector<1x288xi32>
    %c0_i32_16 = arith.constant 0 : i32
    %20 = vector.broadcast %c0_i32_16 : i32 to vector<1x288xi32>
    %21 = arith.cmpi slt, %17, %20 : vector<1x288xi32>
    %c0_i32_17 = arith.constant 0 : i32
    %22 = arith.cmpi slt, %15, %c0_i32_17 : i32
    %23 = vector.broadcast %22 : i1 to vector<1x288xi1>
    %24 = vector.broadcast %23 : vector<1x288xi1> to vector<1x288xi1>
    %25 = arith.xori %21, %24 : vector<1x288xi1>
    %26 = arith.andi %25, %19 : vector<1x288xi1>
    %27 = vector.broadcast %15 : i32 to vector<1x288xi32>
    %28 = arith.addi %17, %27 : vector<1x288xi32>
    %29 = arith.select %26, %28, %17 : vector<1x288xi1>, vector<1x288xi32>
    %c16_i32 = arith.constant 16 : i32
    %30 = vector.broadcast %c16_i32 : i32 to vector<1x288xi32>
    %31 = arith.cmpi slt, %29, %30 : vector<1x288xi32>
    %32 = tpu.iota {dimensions = array<i32: 1>} : vector<1x96xi32>
    %c12_i32 = arith.constant 12 : i32
    %c0_i32_18 = arith.constant 0 : i32
    %33 = arith.cmpi eq, %c12_i32, %c0_i32_18 : i32
    %c1_i32_19 = arith.constant 1 : i32
    %34 = arith.select %33, %c1_i32_19, %c12_i32 : i32
    %35 = vector.broadcast %34 : i32 to vector<1x96xi32>
    %36 = arith.remsi %32, %35 : vector<1x96xi32>
    %c0_i32_20 = arith.constant 0 : i32
    %37 = vector.broadcast %c0_i32_20 : i32 to vector<1x96xi32>
    %38 = arith.cmpi ne, %36, %37 : vector<1x96xi32>
    %c0_i32_21 = arith.constant 0 : i32
    %39 = vector.broadcast %c0_i32_21 : i32 to vector<1x96xi32>
    %40 = arith.cmpi slt, %36, %39 : vector<1x96xi32>
    %c0_i32_22 = arith.constant 0 : i32
    %41 = arith.cmpi slt, %34, %c0_i32_22 : i32
    %42 = vector.broadcast %41 : i1 to vector<1x96xi1>
    %43 = vector.broadcast %42 : vector<1x96xi1> to vector<1x96xi1>
    %44 = arith.xori %40, %43 : vector<1x96xi1>
    %45 = arith.andi %44, %38 : vector<1x96xi1>
    %46 = vector.broadcast %34 : i32 to vector<1x96xi32>
    %47 = arith.addi %36, %46 : vector<1x96xi32>
    %48 = arith.select %45, %47, %36 : vector<1x96xi1>, vector<1x96xi32>
    %c8_i32 = arith.constant 8 : i32
    %49 = vector.broadcast %c8_i32 : i32 to vector<1x96xi32>
    %50 = arith.cmpi slt, %48, %49 : vector<1x96xi32>
    %cst = arith.constant 0.000000e+00 : f32
    %51 = vector.broadcast %cst : f32 to vector<64x19xf32>
    %c0_23 = arith.constant 0 : index
    %c0_24 = arith.constant 0 : index
    %52 = vector.load %arg6[%c0_23, %c0_24] : memref<64x326xf32, #tpu.memory_space<vmem>>, vector<64x19xf32>
    tpu.vector_store %arg6[%c0_23, %c0_24], %51 {strides = array<i32>} : memref<64x326xf32, #tpu.memory_space<vmem>>, vector<64x19xf32>,
    %cst_25 = arith.constant 0.000000e+00 : f32
    %53 = vector.broadcast %cst_25 : f32 to vector<64x19xf32>
    %c0_26 = arith.constant 0 : index
    %c307 = arith.constant 307 : index
    %54 = vector.load %arg6[%c0_26, %c307] : memref<64x326xf32, #tpu.memory_space<vmem>>, vector<64x19xf32>
    tpu.vector_store %arg6[%c0_26, %c307], %53 {strides = array<i32>} : memref<64x326xf32, #tpu.memory_space<vmem>>, vector<64x19xf32>,
    %cst_27 = arith.constant 0.000000e+00 : f32
    %55 = vector.broadcast %cst_27 : f32 to vector<1x26xf32>
    %c0_28 = arith.constant 0 : index
    %c0_29 = arith.constant 0 : index
    %56 = vector.load %arg9[%c0_28, %c0_29] : memref<1x128xf32, #tpu.memory_space<vmem>>, vector<1x26xf32>
    tpu.vector_store %arg9[%c0_28, %c0_29], %55 {strides = array<i32>} : memref<1x128xf32, #tpu.memory_space<vmem>>, vector<1x26xf32>,
    %cst_30 = arith.constant 0.000000e+00 : f32
    %57 = vector.broadcast %cst_30 : f32 to vector<1x30xf32>
    %c0_31 = arith.constant 0 : index
    %c98 = arith.constant 98 : index
    %58 = vector.load %arg9[%c0_31, %c98] : memref<1x128xf32, #tpu.memory_space<vmem>>, vector<1x30xf32>
    tpu.vector_store %arg9[%c0_31, %c98], %57 {strides = array<i32>} : memref<1x128xf32, #tpu.memory_space<vmem>>, vector<1x30xf32>,
    %cst_32 = arith.constant 0.000000e+00 : f32
    %59 = vector.broadcast %cst_32 : f32 to vector<64x26xf32>
    %c0_33 = arith.constant 0 : index
    %c0_34 = arith.constant 0 : index
    %60 = vector.load %arg10[%c0_33, %c0_34] : memref<64x152xf32, #tpu.memory_space<vmem>>, vector<64x26xf32>
    tpu.vector_store %arg10[%c0_33, %c0_34], %59 {strides = array<i32>} : memref<64x152xf32, #tpu.memory_space<vmem>>, vector<64x26xf32>,
    %cst_35 = arith.constant 0.000000e+00 : f32
    %61 = vector.broadcast %cst_35 : f32 to vector<64x30xf32>
    %c0_36 = arith.constant 0 : index
    %c122 = arith.constant 122 : index
    %62 = vector.load %arg10[%c0_36, %c122] : memref<64x152xf32, #tpu.memory_space<vmem>>, vector<64x30xf32>
    tpu.vector_store %arg10[%c0_36, %c122], %61 {strides = array<i32>} : memref<64x152xf32, #tpu.memory_space<vmem>>, vector<64x30xf32>,
    %c0_37 = arith.constant 0 : index
    %c0_38 = arith.constant 0 : index
    %c0_39 = arith.constant 0 : index
    %63 = vector.load %arg1[%c0_37, %c0_38, %c0_39] : memref<1x1x326xf32, #tpu.memory_space<vmem>>, vector<1x1x326xf32>
    %64 = vector.shape_cast %63 : vector<1x1x326xf32> to vector<1x326xf32>
    %65 = vector.extract_strided_slice %64 {offsets = [0, 0], sizes = [1, 288], strides = [1, 1]} : vector<1x326xf32> to vector<1x288xf32>
    %c0_40 = arith.constant 0 : index
    %c0_41 = arith.constant 0 : index
    %66 = vector.load %arg8[%c0_40, %c0_41] : memref<16x288xf32, #tpu.memory_space<vmem>>, vector<1x288xf32>
    tpu.vector_store %arg8[%c0_40, %c0_41], %65 {strides = array<i32>} : memref<16x288xf32, #tpu.memory_space<vmem>>, vector<1x288xf32>,
    %67 = vector.extract_strided_slice %64 {offsets = [0, 1], sizes = [1, 288], strides = [1, 1]} : vector<1x326xf32> to vector<1x288xf32>
    %c1 = arith.constant 1 : index
    %c0_42 = arith.constant 0 : index
    %68 = vector.load %arg8[%c1, %c0_42] : memref<16x288xf32, #tpu.memory_space<vmem>>, vector<1x288xf32>
    tpu.vector_store %arg8[%c1, %c0_42], %67 {strides = array<i32>} : memref<16x288xf32, #tpu.memory_space<vmem>>, vector<1x288xf32>,
    %69 = vector.extract_strided_slice %64 {offsets = [0, 2], sizes = [1, 288], strides = [1, 1]} : vector<1x326xf32> to vector<1x288xf32>
    %c2 = arith.constant 2 : index
    %c0_43 = arith.constant 0 : index
    %70 = vector.load %arg8[%c2, %c0_43] : memref<16x288xf32, #tpu.memory_space<vmem>>, vector<1x288xf32>
    tpu.vector_store %arg8[%c2, %c0_43], %69 {strides = array<i32>} : memref<16x288xf32, #tpu.memory_space<vmem>>, vector<1x288xf32>,
    %71 = vector.extract_strided_slice %64 {offsets = [0, 18], sizes = [1, 288], strides = [1, 1]} : vector<1x326xf32> to vector<1x288xf32>
    %c3 = arith.constant 3 : index
    %c0_44 = arith.constant 0 : index
    %72 = vector.load %arg8[%c3, %c0_44] : memref<16x288xf32, #tpu.memory_space<vmem>>, vector<1x288xf32>
    tpu.vector_store %arg8[%c3, %c0_44], %71 {strides = array<i32>} : memref<16x288xf32, #tpu.memory_space<vmem>>, vector<1x288xf32>,
    %73 = vector.extract_strided_slice %64 {offsets = [0, 19], sizes = [1, 288], strides = [1, 1]} : vector<1x326xf32> to vector<1x288xf32>
    %c4 = arith.constant 4 : index
    %c0_45 = arith.constant 0 : index
    %74 = vector.load %arg8[%c4, %c0_45] : memref<16x288xf32, #tpu.memory_space<vmem>>, vector<1x288xf32>
    tpu.vector_store %arg8[%c4, %c0_45], %73 {strides = array<i32>} : memref<16x288xf32, #tpu.memory_space<vmem>>, vector<1x288xf32>,
    %75 = vector.extract_strided_slice %64 {offsets = [0, 20], sizes = [1, 288], strides = [1, 1]} : vector<1x326xf32> to vector<1x288xf32>
    %c5 = arith.constant 5 : index
    %c0_46 = arith.constant 0 : index
    %76 = vector.load %arg8[%c5, %c0_46] : memref<16x288xf32, #tpu.memory_space<vmem>>, vector<1x288xf32>
    tpu.vector_store %arg8[%c5, %c0_46], %75 {strides = array<i32>} : memref<16x288xf32, #tpu.memory_space<vmem>>, vector<1x288xf32>,
    %77 = vector.extract_strided_slice %64 {offsets = [0, 36], sizes = [1, 288], strides = [1, 1]} : vector<1x326xf32> to vector<1x288xf32>
    %c6 = arith.constant 6 : index
    %c0_47 = arith.constant 0 : index
    %78 = vector.load %arg8[%c6, %c0_47] : memref<16x288xf32, #tpu.memory_space<vmem>>, vector<1x288xf32>
    tpu.vector_store %arg8[%c6, %c0_47], %77 {strides = array<i32>} : memref<16x288xf32, #tpu.memory_space<vmem>>, vector<1x288xf32>,
    %79 = vector.extract_strided_slice %64 {offsets = [0, 37], sizes = [1, 288], strides = [1, 1]} : vector<1x326xf32> to vector<1x288xf32>
    %c7 = arith.constant 7 : index
    %c0_48 = arith.constant 0 : index
    %80 = vector.load %arg8[%c7, %c0_48] : memref<16x288xf32, #tpu.memory_space<vmem>>, vector<1x288xf32>
    tpu.vector_store %arg8[%c7, %c0_48], %79 {strides = array<i32>} : memref<16x288xf32, #tpu.memory_space<vmem>>, vector<1x288xf32>,
    %81 = vector.extract_strided_slice %64 {offsets = [0, 38], sizes = [1, 288], strides = [1, 1]} : vector<1x326xf32> to vector<1x288xf32>
    %c8 = arith.constant 8 : index
    %c0_49 = arith.constant 0 : index
    %82 = vector.load %arg8[%c8, %c0_49] : memref<16x288xf32, #tpu.memory_space<vmem>>, vector<1x288xf32>
    tpu.vector_store %arg8[%c8, %c0_49], %81 {strides = array<i32>} : memref<16x288xf32, #tpu.memory_space<vmem>>, vector<1x288xf32>,
    %cst_50 = arith.constant 0.000000e+00 : f32
    %83 = vector.broadcast %cst_50 : f32 to vector<7x288xf32>
    %c9 = arith.constant 9 : index
    %c0_51 = arith.constant 0 : index
    %84 = vector.load %arg8[%c9, %c0_51] : memref<16x288xf32, #tpu.memory_space<vmem>>, vector<7x288xf32>
    tpu.vector_store %arg8[%c9, %c0_51], %83 {strides = array<i32>} : memref<16x288xf32, #tpu.memory_space<vmem>>, vector<7x288xf32>,
    %c0_52 = arith.constant 0 : index
    %c0_53 = arith.constant 0 : index
    %85 = vector.load %arg8[%c0_52, %c0_53] : memref<16x288xf32, #tpu.memory_space<vmem>>, vector<16x288xf32>
    %cst_54 = arith.constant dense<0.000000e+00> : vector<32x288xf32>
    %86 = tpu.matmul %3, %85, %cst_54 {dimension_numbers = #tpu.dot_dimension_numbers<[1], [0], [0], [1], [0, 0, 1, 1], [], []>} : vector<32x16xf32>, vector<16x288xf32>, vector<32x288xf32> -> vector<32x288xf32>
    %87 = vector.broadcast %5 : vector<32x1xf32> to vector<32x288xf32>
    %88 = arith.addf %86, %87 : vector<32x288xf32>
    %cst_55 = arith.constant 0.000000e+00 : f32
    %89 = vector.broadcast %cst_55 : f32 to vector<32x288xf32>
    %90 = arith.maximumf %88, %89 : vector<32x288xf32>
    %cst_56 = arith.constant 0.000000e+00 : f32
    %91 = vector.shape_cast %31 : vector<1x288xi1> to vector<1x288xi1>
    %92 = vector.broadcast %91 : vector<1x288xi1> to vector<32x288xi1>
    %93 = vector.broadcast %cst_56 : f32 to vector<32x288xf32>
    %94 = arith.select %92, %90, %93 : vector<32x288xi1>, vector<32x288xf32>
    %c0_57 = arith.constant 0 : index
    %c19 = arith.constant 19 : index
    %95 = vector.load %arg6[%c0_57, %c19] : memref<64x326xf32, #tpu.memory_space<vmem>>, vector<32x288xf32>
    tpu.vector_store %arg6[%c0_57, %c19], %94 {strides = array<i32>} : memref<64x326xf32, #tpu.memory_space<vmem>>, vector<32x288xf32>,
    %c0_58 = arith.constant 0 : index
    %c0_59 = arith.constant 0 : index
    %96 = vector.load %arg6[%c0_58, %c0_59] : memref<64x326xf32, #tpu.memory_space<vmem>>, vector<32x288xf32>
    %c0_60 = arith.constant 0 : index
    %c0_61 = arith.constant 0 : index
    %97 = vector.load %arg7[%c0_60, %c0_61] : memref<576x288xf32, #tpu.memory_space<vmem>>, vector<32x288xf32>
    tpu.vector_store %arg7[%c0_60, %c0_61], %96 {strides = array<i32>} : memref<576x288xf32, #tpu.memory_space<vmem>>, vector<32x288xf32>,
    %c0_62 = arith.constant 0 : index
    %c1_63 = arith.constant 1 : index
    %98 = vector.load %arg6[%c0_62, %c1_63] : memref<64x326xf32, #tpu.memory_space<vmem>>, vector<32x288xf32>
    %c32_64 = arith.constant 32 : index
    %c0_65 = arith.constant 0 : index
    %99 = vector.load %arg7[%c32_64, %c0_65] : memref<576x288xf32, #tpu.memory_space<vmem>>, vector<32x288xf32>
    tpu.vector_store %arg7[%c32_64, %c0_65], %98 {strides = array<i32>} : memref<576x288xf32, #tpu.memory_space<vmem>>, vector<32x288xf32>,
    %c0_66 = arith.constant 0 : index
    %c2_67 = arith.constant 2 : index
    %100 = vector.load %arg6[%c0_66, %c2_67] : memref<64x326xf32, #tpu.memory_space<vmem>>, vector<32x288xf32>
    %c64_68 = arith.constant 64 : index
    %c0_69 = arith.constant 0 : index
    %101 = vector.load %arg7[%c64_68, %c0_69] : memref<576x288xf32, #tpu.memory_space<vmem>>, vector<32x288xf32>
    tpu.vector_store %arg7[%c64_68, %c0_69], %100 {strides = array<i32>} : memref<576x288xf32, #tpu.memory_space<vmem>>, vector<32x288xf32>,
    %c0_70 = arith.constant 0 : index
    %c18 = arith.constant 18 : index
    %102 = vector.load %arg6[%c0_70, %c18] : memref<64x326xf32, #tpu.memory_space<vmem>>, vector<32x288xf32>
    %c96_71 = arith.constant 96 : index
    %c0_72 = arith.constant 0 : index
    %103 = vector.load %arg7[%c96_71, %c0_72] : memref<576x288xf32, #tpu.memory_space<vmem>>, vector<32x288xf32>
    tpu.vector_store %arg7[%c96_71, %c0_72], %102 {strides = array<i32>} : memref<576x288xf32, #tpu.memory_space<vmem>>, vector<32x288xf32>,
    %c0_73 = arith.constant 0 : index
    %c19_74 = arith.constant 19 : index
    %104 = vector.load %arg6[%c0_73, %c19_74] : memref<64x326xf32, #tpu.memory_space<vmem>>, vector<32x288xf32>
    %c128_75 = arith.constant 128 : index
    %c0_76 = arith.constant 0 : index
    %105 = vector.load %arg7[%c128_75, %c0_76] : memref<576x288xf32, #tpu.memory_space<vmem>>, vector<32x288xf32>
    tpu.vector_store %arg7[%c128_75, %c0_76], %104 {strides = array<i32>} : memref<576x288xf32, #tpu.memory_space<vmem>>, vector<32x288xf32>,
    %c0_77 = arith.constant 0 : index
    %c20 = arith.constant 20 : index
    %106 = vector.load %arg6[%c0_77, %c20] : memref<64x326xf32, #tpu.memory_space<vmem>>, vector<32x288xf32>
    %c160 = arith.constant 160 : index
    %c0_78 = arith.constant 0 : index
    %107 = vector.load %arg7[%c160, %c0_78] : memref<576x288xf32, #tpu.memory_space<vmem>>, vector<32x288xf32>
    tpu.vector_store %arg7[%c160, %c0_78], %106 {strides = array<i32>} : memref<576x288xf32, #tpu.memory_space<vmem>>, vector<32x288xf32>,
    %c0_79 = arith.constant 0 : index
    %c36_80 = arith.constant 36 : index
    %108 = vector.load %arg6[%c0_79, %c36_80] : memref<64x326xf32, #tpu.memory_space<vmem>>, vector<32x288xf32>
    %c192 = arith.constant 192 : index
    %c0_81 = arith.constant 0 : index
    %109 = vector.load %arg7[%c192, %c0_81] : memref<576x288xf32, #tpu.memory_space<vmem>>, vector<32x288xf32>
    tpu.vector_store %arg7[%c192, %c0_81], %108 {strides = array<i32>} : memref<576x288xf32, #tpu.memory_space<vmem>>, vector<32x288xf32>,
    %c0_82 = arith.constant 0 : index
    %c37_83 = arith.constant 37 : index
    %110 = vector.load %arg6[%c0_82, %c37_83] : memref<64x326xf32, #tpu.memory_space<vmem>>, vector<32x288xf32>
    %c224 = arith.constant 224 : index
    %c0_84 = arith.constant 0 : index
    %111 = vector.load %arg7[%c224, %c0_84] : memref<576x288xf32, #tpu.memory_space<vmem>>, vector<32x288xf32>
    tpu.vector_store %arg7[%c224, %c0_84], %110 {strides = array<i32>} : memref<576x288xf32, #tpu.memory_space<vmem>>, vector<32x288xf32>,
    %c0_85 = arith.constant 0 : index
    %c38 = arith.constant 38 : index
    %112 = vector.load %arg6[%c0_85, %c38] : memref<64x326xf32, #tpu.memory_space<vmem>>, vector<32x288xf32>
    %c256 = arith.constant 256 : index
    %c0_86 = arith.constant 0 : index
    %113 = vector.load %arg7[%c256, %c0_86] : memref<576x288xf32, #tpu.memory_space<vmem>>, vector<32x288xf32>
    tpu.vector_store %arg7[%c256, %c0_86], %112 {strides = array<i32>} : memref<576x288xf32, #tpu.memory_space<vmem>>, vector<32x288xf32>,
    %c0_87 = arith.constant 0 : index
    %c0_88 = arith.constant 0 : index
    %114 = vector.load %arg7[%c0_87, %c0_88] : memref<576x288xf32, #tpu.memory_space<vmem>>, vector<288x288xf32>
    %cst_89 = arith.constant dense<0.000000e+00> : vector<64x288xf32>
    %115 = tpu.matmul %0, %114, %cst_89 {dimension_numbers = #tpu.dot_dimension_numbers<[1], [0], [0], [1], [0, 0, 1, 1], [], []>} : vector<64x288xf32>, vector<288x288xf32>, vector<64x288xf32> -> vector<64x288xf32>
    %116 = vector.broadcast %6 : vector<64x1xf32> to vector<64x288xf32>
    %117 = arith.addf %115, %116 : vector<64x288xf32>
    %cst_90 = arith.constant 0.000000e+00 : f32
    %118 = vector.broadcast %cst_90 : f32 to vector<64x288xf32>
    %119 = arith.maximumf %117, %118 : vector<64x288xf32>
    %cst_91 = arith.constant 0.000000e+00 : f32
    %120 = vector.shape_cast %31 : vector<1x288xi1> to vector<1x288xi1>
    %121 = vector.broadcast %120 : vector<1x288xi1> to vector<64x288xi1>
    %122 = vector.broadcast %cst_91 : f32 to vector<64x288xf32>
    %123 = arith.select %121, %119, %122 : vector<64x288xi1>, vector<64x288xf32>
    %c0_92 = arith.constant 0 : index
    %c19_93 = arith.constant 19 : index
    %124 = vector.load %arg6[%c0_92, %c19_93] : memref<64x326xf32, #tpu.memory_space<vmem>>, vector<64x288xf32>
    tpu.vector_store %arg6[%c0_92, %c19_93], %123 {strides = array<i32>} : memref<64x326xf32, #tpu.memory_space<vmem>>, vector<64x288xf32>,
    %c0_94 = arith.constant 0 : index
    %c0_95 = arith.constant 0 : index
    %125 = vector.load %arg6[%c0_94, %c0_95] : memref<64x326xf32, #tpu.memory_space<vmem>>, vector<64x288xf32>
    %c0_96 = arith.constant 0 : index
    %c0_97 = arith.constant 0 : index
    %126 = vector.load %arg7[%c0_96, %c0_97] : memref<576x288xf32, #tpu.memory_space<vmem>>, vector<64x288xf32>
    tpu.vector_store %arg7[%c0_96, %c0_97], %125 {strides = array<i32>} : memref<576x288xf32, #tpu.memory_space<vmem>>, vector<64x288xf32>,
    %c0_98 = arith.constant 0 : index
    %c1_99 = arith.constant 1 : index
    %127 = vector.load %arg6[%c0_98, %c1_99] : memref<64x326xf32, #tpu.memory_space<vmem>>, vector<64x288xf32>
    %c64_100 = arith.constant 64 : index
    %c0_101 = arith.constant 0 : index
    %128 = vector.load %arg7[%c64_100, %c0_101] : memref<576x288xf32, #tpu.memory_space<vmem>>, vector<64x288xf32>
    tpu.vector_store %arg7[%c64_100, %c0_101], %127 {strides = array<i32>} : memref<576x288xf32, #tpu.memory_space<vmem>>, vector<64x288xf32>,
    %c0_102 = arith.constant 0 : index
    %c2_103 = arith.constant 2 : index
    %129 = vector.load %arg6[%c0_102, %c2_103] : memref<64x326xf32, #tpu.memory_space<vmem>>, vector<64x288xf32>
    %c128_104 = arith.constant 128 : index
    %c0_105 = arith.constant 0 : index
    %130 = vector.load %arg7[%c128_104, %c0_105] : memref<576x288xf32, #tpu.memory_space<vmem>>, vector<64x288xf32>
    tpu.vector_store %arg7[%c128_104, %c0_105], %129 {strides = array<i32>} : memref<576x288xf32, #tpu.memory_space<vmem>>, vector<64x288xf32>,
    %c0_106 = arith.constant 0 : index
    %c18_107 = arith.constant 18 : index
    %131 = vector.load %arg6[%c0_106, %c18_107] : memref<64x326xf32, #tpu.memory_space<vmem>>, vector<64x288xf32>
    %c192_108 = arith.constant 192 : index
    %c0_109 = arith.constant 0 : index
    %132 = vector.load %arg7[%c192_108, %c0_109] : memref<576x288xf32, #tpu.memory_space<vmem>>, vector<64x288xf32>
    tpu.vector_store %arg7[%c192_108, %c0_109], %131 {strides = array<i32>} : memref<576x288xf32, #tpu.memory_space<vmem>>, vector<64x288xf32>,
    %c0_110 = arith.constant 0 : index
    %c19_111 = arith.constant 19 : index
    %133 = vector.load %arg6[%c0_110, %c19_111] : memref<64x326xf32, #tpu.memory_space<vmem>>, vector<64x288xf32>
    %c256_112 = arith.constant 256 : index
    %c0_113 = arith.constant 0 : index
    %134 = vector.load %arg7[%c256_112, %c0_113] : memref<576x288xf32, #tpu.memory_space<vmem>>, vector<64x288xf32>
    tpu.vector_store %arg7[%c256_112, %c0_113], %133 {strides = array<i32>} : memref<576x288xf32, #tpu.memory_space<vmem>>, vector<64x288xf32>,
    %c0_114 = arith.constant 0 : index
    %c20_115 = arith.constant 20 : index
    %135 = vector.load %arg6[%c0_114, %c20_115] : memref<64x326xf32, #tpu.memory_space<vmem>>, vector<64x288xf32>
    %c320 = arith.constant 320 : index
    %c0_116 = arith.constant 0 : index
    %136 = vector.load %arg7[%c320, %c0_116] : memref<576x288xf32, #tpu.memory_space<vmem>>, vector<64x288xf32>
    tpu.vector_store %arg7[%c320, %c0_116], %135 {strides = array<i32>} : memref<576x288xf32, #tpu.memory_space<vmem>>, vector<64x288xf32>,
    %c0_117 = arith.constant 0 : index
    %c36_118 = arith.constant 36 : index
    %137 = vector.load %arg6[%c0_117, %c36_118] : memref<64x326xf32, #tpu.memory_space<vmem>>, vector<64x288xf32>
    %c384 = arith.constant 384 : index
    %c0_119 = arith.constant 0 : index
    %138 = vector.load %arg7[%c384, %c0_119] : memref<576x288xf32, #tpu.memory_space<vmem>>, vector<64x288xf32>
    tpu.vector_store %arg7[%c384, %c0_119], %137 {strides = array<i32>} : memref<576x288xf32, #tpu.memory_space<vmem>>, vector<64x288xf32>,
    %c0_120 = arith.constant 0 : index
    %c37_121 = arith.constant 37 : index
    %139 = vector.load %arg6[%c0_120, %c37_121] : memref<64x326xf32, #tpu.memory_space<vmem>>, vector<64x288xf32>
    %c448 = arith.constant 448 : index
    %c0_122 = arith.constant 0 : index
    %140 = vector.load %arg7[%c448, %c0_122] : memref<576x288xf32, #tpu.memory_space<vmem>>, vector<64x288xf32>
    tpu.vector_store %arg7[%c448, %c0_122], %139 {strides = array<i32>} : memref<576x288xf32, #tpu.memory_space<vmem>>, vector<64x288xf32>,
    %c0_123 = arith.constant 0 : index
    %c38_124 = arith.constant 38 : index
    %141 = vector.load %arg6[%c0_123, %c38_124] : memref<64x326xf32, #tpu.memory_space<vmem>>, vector<64x288xf32>
    %c512 = arith.constant 512 : index
    %c0_125 = arith.constant 0 : index
    %142 = vector.load %arg7[%c512, %c0_125] : memref<576x288xf32, #tpu.memory_space<vmem>>, vector<64x288xf32>
    tpu.vector_store %arg7[%c512, %c0_125], %141 {strides = array<i32>} : memref<576x288xf32, #tpu.memory_space<vmem>>, vector<64x288xf32>,
    %c0_126 = arith.constant 0 : index
    %c0_127 = arith.constant 0 : index
    %143 = vector.load %arg7[%c0_126, %c0_127] : memref<576x288xf32, #tpu.memory_space<vmem>>, vector<576x288xf32>
    %cst_128 = arith.constant dense<0.000000e+00> : vector<1x288xf32>
    %144 = tpu.matmul %2, %143, %cst_128 {dimension_numbers = #tpu.dot_dimension_numbers<[1], [0], [0], [1], [0, 0, 1, 1], [], []>} : vector<1x576xf32>, vector<576x288xf32>, vector<1x288xf32> -> vector<1x288xf32>
    %145 = vector.broadcast %7 : vector<1x1xf32> to vector<1x288xf32>
    %146 = arith.addf %144, %145 : vector<1x288xf32>
    %cst_129 = arith.constant 0.000000e+00 : f32
    %147 = vector.broadcast %cst_129 : f32 to vector<1x288xf32>
    %148 = arith.maximumf %146, %147 : vector<1x288xf32>
    %c0_130 = arith.constant 0 : index
    %c0_131 = arith.constant 0 : index
    %149 = vector.load %arg3[%c0_130, %c0_131] : memref<288x72xf32, #tpu.memory_space<vmem>>, vector<288x72xf32>
    %cst_132 = arith.constant dense<0.000000e+00> : vector<1x72xf32>
    %150 = tpu.matmul %148, %149, %cst_132 {dimension_numbers = #tpu.dot_dimension_numbers<[1], [0], [0], [1], [0, 0, 1, 1], [], []>} : vector<1x288xf32>, vector<288x72xf32>, vector<1x72xf32> -> vector<1x72xf32>
    %151 = arith.addf %150, %12 : vector<1x72xf32>
    %c0_133 = arith.constant 0 : index
    %c26 = arith.constant 26 : index
    %152 = vector.load %arg9[%c0_133, %c26] : memref<1x128xf32, #tpu.memory_space<vmem>>, vector<1x72xf32>
    tpu.vector_store %arg9[%c0_133, %c26], %151 {strides = array<i32>} : memref<1x128xf32, #tpu.memory_space<vmem>>, vector<1x72xf32>,
    %c0_134 = arith.constant 0 : index
    %c0_135 = arith.constant 0 : index
    %153 = vector.load %arg9[%c0_134, %c0_135] : memref<1x128xf32, #tpu.memory_space<vmem>>, vector<1x96xf32>
    %c0_136 = arith.constant 0 : index
    %c0_137 = arith.constant 0 : index
    %154 = vector.load %arg8[%c0_136, %c0_137] : memref<16x288xf32, #tpu.memory_space<vmem>>, vector<1x96xf32>
    tpu.vector_store %arg8[%c0_136, %c0_137], %153 {strides = array<i32>} : memref<16x288xf32, #tpu.memory_space<vmem>>, vector<1x96xf32>,
    %c0_138 = arith.constant 0 : index
    %c1_139 = arith.constant 1 : index
    %155 = vector.load %arg9[%c0_138, %c1_139] : memref<1x128xf32, #tpu.memory_space<vmem>>, vector<1x96xf32>
    %c1_140 = arith.constant 1 : index
    %c0_141 = arith.constant 0 : index
    %156 = vector.load %arg8[%c1_140, %c0_141] : memref<16x288xf32, #tpu.memory_space<vmem>>, vector<1x96xf32>
    tpu.vector_store %arg8[%c1_140, %c0_141], %155 {strides = array<i32>} : memref<16x288xf32, #tpu.memory_space<vmem>>, vector<1x96xf32>,
    %c0_142 = arith.constant 0 : index
    %c2_143 = arith.constant 2 : index
    %157 = vector.load %arg9[%c0_142, %c2_143] : memref<1x128xf32, #tpu.memory_space<vmem>>, vector<1x96xf32>
    %c2_144 = arith.constant 2 : index
    %c0_145 = arith.constant 0 : index
    %158 = vector.load %arg8[%c2_144, %c0_145] : memref<16x288xf32, #tpu.memory_space<vmem>>, vector<1x96xf32>
    tpu.vector_store %arg8[%c2_144, %c0_145], %157 {strides = array<i32>} : memref<16x288xf32, #tpu.memory_space<vmem>>, vector<1x96xf32>,
    %c0_146 = arith.constant 0 : index
    %c12 = arith.constant 12 : index
    %159 = vector.load %arg9[%c0_146, %c12] : memref<1x128xf32, #tpu.memory_space<vmem>>, vector<1x96xf32>
    %c3_147 = arith.constant 3 : index
    %c0_148 = arith.constant 0 : index
    %160 = vector.load %arg8[%c3_147, %c0_148] : memref<16x288xf32, #tpu.memory_space<vmem>>, vector<1x96xf32>
    tpu.vector_store %arg8[%c3_147, %c0_148], %159 {strides = array<i32>} : memref<16x288xf32, #tpu.memory_space<vmem>>, vector<1x96xf32>,
    %c0_149 = arith.constant 0 : index
    %c13 = arith.constant 13 : index
    %161 = vector.load %arg9[%c0_149, %c13] : memref<1x128xf32, #tpu.memory_space<vmem>>, vector<1x96xf32>
    %c4_150 = arith.constant 4 : index
    %c0_151 = arith.constant 0 : index
    %162 = vector.load %arg8[%c4_150, %c0_151] : memref<16x288xf32, #tpu.memory_space<vmem>>, vector<1x96xf32>
    tpu.vector_store %arg8[%c4_150, %c0_151], %161 {strides = array<i32>} : memref<16x288xf32, #tpu.memory_space<vmem>>, vector<1x96xf32>,
    %c0_152 = arith.constant 0 : index
    %c14 = arith.constant 14 : index
    %163 = vector.load %arg9[%c0_152, %c14] : memref<1x128xf32, #tpu.memory_space<vmem>>, vector<1x96xf32>
    %c5_153 = arith.constant 5 : index
    %c0_154 = arith.constant 0 : index
    %164 = vector.load %arg8[%c5_153, %c0_154] : memref<16x288xf32, #tpu.memory_space<vmem>>, vector<1x96xf32>
    tpu.vector_store %arg8[%c5_153, %c0_154], %163 {strides = array<i32>} : memref<16x288xf32, #tpu.memory_space<vmem>>, vector<1x96xf32>,
    %c0_155 = arith.constant 0 : index
    %c24 = arith.constant 24 : index
    %165 = vector.load %arg9[%c0_155, %c24] : memref<1x128xf32, #tpu.memory_space<vmem>>, vector<1x96xf32>
    %c6_156 = arith.constant 6 : index
    %c0_157 = arith.constant 0 : index
    %166 = vector.load %arg8[%c6_156, %c0_157] : memref<16x288xf32, #tpu.memory_space<vmem>>, vector<1x96xf32>
    tpu.vector_store %arg8[%c6_156, %c0_157], %165 {strides = array<i32>} : memref<16x288xf32, #tpu.memory_space<vmem>>, vector<1x96xf32>,
    %c0_158 = arith.constant 0 : index
    %c25 = arith.constant 25 : index
    %167 = vector.load %arg9[%c0_158, %c25] : memref<1x128xf32, #tpu.memory_space<vmem>>, vector<1x96xf32>
    %c7_159 = arith.constant 7 : index
    %c0_160 = arith.constant 0 : index
    %168 = vector.load %arg8[%c7_159, %c0_160] : memref<16x288xf32, #tpu.memory_space<vmem>>, vector<1x96xf32>
    tpu.vector_store %arg8[%c7_159, %c0_160], %167 {strides = array<i32>} : memref<16x288xf32, #tpu.memory_space<vmem>>, vector<1x96xf32>,
    %c0_161 = arith.constant 0 : index
    %c26_162 = arith.constant 26 : index
    %169 = vector.load %arg9[%c0_161, %c26_162] : memref<1x128xf32, #tpu.memory_space<vmem>>, vector<1x96xf32>
    %c8_163 = arith.constant 8 : index
    %c0_164 = arith.constant 0 : index
    %170 = vector.load %arg8[%c8_163, %c0_164] : memref<16x288xf32, #tpu.memory_space<vmem>>, vector<1x96xf32>
    tpu.vector_store %arg8[%c8_163, %c0_164], %169 {strides = array<i32>} : memref<16x288xf32, #tpu.memory_space<vmem>>, vector<1x96xf32>,
    %cst_165 = arith.constant 0.000000e+00 : f32
    %171 = vector.broadcast %cst_165 : f32 to vector<7x96xf32>
    %c9_166 = arith.constant 9 : index
    %c0_167 = arith.constant 0 : index
    %172 = vector.load %arg8[%c9_166, %c0_167] : memref<16x288xf32, #tpu.memory_space<vmem>>, vector<7x96xf32>
    tpu.vector_store %arg8[%c9_166, %c0_167], %171 {strides = array<i32>} : memref<16x288xf32, #tpu.memory_space<vmem>>, vector<7x96xf32>,
    %c0_168 = arith.constant 0 : index
    %c0_169 = arith.constant 0 : index
    %173 = vector.load %arg8[%c0_168, %c0_169] : memref<16x288xf32, #tpu.memory_space<vmem>>, vector<16x96xf32>
    %cst_170 = arith.constant dense<0.000000e+00> : vector<64x96xf32>
    %174 = tpu.matmul %4, %173, %cst_170 {dimension_numbers = #tpu.dot_dimension_numbers<[1], [0], [0], [1], [0, 0, 1, 1], [], []>} : vector<64x16xf32>, vector<16x96xf32>, vector<64x96xf32> -> vector<64x96xf32>
    %175 = vector.broadcast %8 : vector<64x1xf32> to vector<64x96xf32>
    %176 = arith.addf %174, %175 : vector<64x96xf32>
    %cst_171 = arith.constant 0.000000e+00 : f32
    %177 = vector.broadcast %cst_171 : f32 to vector<64x96xf32>
    %178 = arith.maximumf %176, %177 : vector<64x96xf32>
    %cst_172 = arith.constant 0.000000e+00 : f32
    %179 = vector.shape_cast %50 : vector<1x96xi1> to vector<1x96xi1>
    %180 = vector.broadcast %179 : vector<1x96xi1> to vector<64x96xi1>
    %181 = vector.broadcast %cst_172 : f32 to vector<64x96xf32>
    %182 = arith.select %180, %178, %181 : vector<64x96xi1>, vector<64x96xf32>
    %c0_173 = arith.constant 0 : index
    %c26_174 = arith.constant 26 : index
    %183 = vector.load %arg10[%c0_173, %c26_174] : memref<64x152xf32, #tpu.memory_space<vmem>>, vector<64x96xf32>
    tpu.vector_store %arg10[%c0_173, %c26_174], %182 {strides = array<i32>} : memref<64x152xf32, #tpu.memory_space<vmem>>, vector<64x96xf32>,
    %c0_175 = arith.constant 0 : index
    %c0_176 = arith.constant 0 : index
    %184 = vector.load %arg10[%c0_175, %c0_176] : memref<64x152xf32, #tpu.memory_space<vmem>>, vector<64x120xf32>
    %c0_177 = arith.constant 0 : index
    %c0_178 = arith.constant 0 : index
    %185 = vector.load %arg7[%c0_177, %c0_178] : memref<576x288xf32, #tpu.memory_space<vmem>>, vector<64x120xf32>
    tpu.vector_store %arg7[%c0_177, %c0_178], %184 {strides = array<i32>} : memref<576x288xf32, #tpu.memory_space<vmem>>, vector<64x120xf32>,
    %c0_179 = arith.constant 0 : index
    %c1_180 = arith.constant 1 : index
    %186 = vector.load %arg10[%c0_179, %c1_180] : memref<64x152xf32, #tpu.memory_space<vmem>>, vector<64x120xf32>
    %c64_181 = arith.constant 64 : index
    %c0_182 = arith.constant 0 : index
    %187 = vector.load %arg7[%c64_181, %c0_182] : memref<576x288xf32, #tpu.memory_space<vmem>>, vector<64x120xf32>
    tpu.vector_store %arg7[%c64_181, %c0_182], %186 {strides = array<i32>} : memref<576x288xf32, #tpu.memory_space<vmem>>, vector<64x120xf32>,
    %c0_183 = arith.constant 0 : index
    %c2_184 = arith.constant 2 : index
    %188 = vector.load %arg10[%c0_183, %c2_184] : memref<64x152xf32, #tpu.memory_space<vmem>>, vector<64x120xf32>
    %c128_185 = arith.constant 128 : index
    %c0_186 = arith.constant 0 : index
    %189 = vector.load %arg7[%c128_185, %c0_186] : memref<576x288xf32, #tpu.memory_space<vmem>>, vector<64x120xf32>
    tpu.vector_store %arg7[%c128_185, %c0_186], %188 {strides = array<i32>} : memref<576x288xf32, #tpu.memory_space<vmem>>, vector<64x120xf32>,
    %c0_187 = arith.constant 0 : index
    %c12_188 = arith.constant 12 : index
    %190 = vector.load %arg10[%c0_187, %c12_188] : memref<64x152xf32, #tpu.memory_space<vmem>>, vector<64x120xf32>
    %c192_189 = arith.constant 192 : index
    %c0_190 = arith.constant 0 : index
    %191 = vector.load %arg7[%c192_189, %c0_190] : memref<576x288xf32, #tpu.memory_space<vmem>>, vector<64x120xf32>
    tpu.vector_store %arg7[%c192_189, %c0_190], %190 {strides = array<i32>} : memref<576x288xf32, #tpu.memory_space<vmem>>, vector<64x120xf32>,
    %c0_191 = arith.constant 0 : index
    %c13_192 = arith.constant 13 : index
    %192 = vector.load %arg10[%c0_191, %c13_192] : memref<64x152xf32, #tpu.memory_space<vmem>>, vector<64x120xf32>
    %c256_193 = arith.constant 256 : index
    %c0_194 = arith.constant 0 : index
    %193 = vector.load %arg7[%c256_193, %c0_194] : memref<576x288xf32, #tpu.memory_space<vmem>>, vector<64x120xf32>
    tpu.vector_store %arg7[%c256_193, %c0_194], %192 {strides = array<i32>} : memref<576x288xf32, #tpu.memory_space<vmem>>, vector<64x120xf32>,
    %c0_195 = arith.constant 0 : index
    %c14_196 = arith.constant 14 : index
    %194 = vector.load %arg10[%c0_195, %c14_196] : memref<64x152xf32, #tpu.memory_space<vmem>>, vector<64x120xf32>
    %c320_197 = arith.constant 320 : index
    %c0_198 = arith.constant 0 : index
    %195 = vector.load %arg7[%c320_197, %c0_198] : memref<576x288xf32, #tpu.memory_space<vmem>>, vector<64x120xf32>
    tpu.vector_store %arg7[%c320_197, %c0_198], %194 {strides = array<i32>} : memref<576x288xf32, #tpu.memory_space<vmem>>, vector<64x120xf32>,
    %c0_199 = arith.constant 0 : index
    %c24_200 = arith.constant 24 : index
    %196 = vector.load %arg10[%c0_199, %c24_200] : memref<64x152xf32, #tpu.memory_space<vmem>>, vector<64x120xf32>
    %c384_201 = arith.constant 384 : index
    %c0_202 = arith.constant 0 : index
    %197 = vector.load %arg7[%c384_201, %c0_202] : memref<576x288xf32, #tpu.memory_space<vmem>>, vector<64x120xf32>
    tpu.vector_store %arg7[%c384_201, %c0_202], %196 {strides = array<i32>} : memref<576x288xf32, #tpu.memory_space<vmem>>, vector<64x120xf32>,
    %c0_203 = arith.constant 0 : index
    %c25_204 = arith.constant 25 : index
    %198 = vector.load %arg10[%c0_203, %c25_204] : memref<64x152xf32, #tpu.memory_space<vmem>>, vector<64x120xf32>
    %c448_205 = arith.constant 448 : index
    %c0_206 = arith.constant 0 : index
    %199 = vector.load %arg7[%c448_205, %c0_206] : memref<576x288xf32, #tpu.memory_space<vmem>>, vector<64x120xf32>
    tpu.vector_store %arg7[%c448_205, %c0_206], %198 {strides = array<i32>} : memref<576x288xf32, #tpu.memory_space<vmem>>, vector<64x120xf32>,
    %c0_207 = arith.constant 0 : index
    %c26_208 = arith.constant 26 : index
    %200 = vector.load %arg10[%c0_207, %c26_208] : memref<64x152xf32, #tpu.memory_space<vmem>>, vector<64x120xf32>
    %c512_209 = arith.constant 512 : index
    %c0_210 = arith.constant 0 : index
    %201 = vector.load %arg7[%c512_209, %c0_210] : memref<576x288xf32, #tpu.memory_space<vmem>>, vector<64x120xf32>
    tpu.vector_store %arg7[%c512_209, %c0_210], %200 {strides = array<i32>} : memref<576x288xf32, #tpu.memory_space<vmem>>, vector<64x120xf32>,
    %c0_211 = arith.constant 0 : index
    %c0_212 = arith.constant 0 : index
    %202 = vector.load %arg7[%c0_211, %c0_212] : memref<576x288xf32, #tpu.memory_space<vmem>>, vector<576x120xf32>
    %cst_213 = arith.constant dense<0.000000e+00> : vector<32x120xf32>
    %203 = tpu.matmul %1, %202, %cst_213 {dimension_numbers = #tpu.dot_dimension_numbers<[1], [0], [0], [1], [0, 0, 1, 1], [], []>} : vector<32x576xf32>, vector<576x120xf32>, vector<32x120xf32> -> vector<32x120xf32>
    %204 = vector.broadcast %9 : vector<32x1xf32> to vector<32x120xf32>
    %205 = arith.addf %203, %204 : vector<32x120xf32>
    %cst_214 = arith.constant 0.000000e+00 : f32
    %206 = vector.broadcast %cst_214 : f32 to vector<32x120xf32>
    %207 = arith.maximumf %205, %206 : vector<32x120xf32>
    %cst_215 = arith.constant dense<0.000000e+00> : vector<1x120xf32>
    %208 = tpu.matmul %11, %207, %cst_215 {dimension_numbers = #tpu.dot_dimension_numbers<[1], [0], [0], [1], [0, 0, 1, 1], [], []>} : vector<1x32xf32>, vector<32x120xf32>, vector<1x120xf32> -> vector<1x120xf32>
    %209 = vector.broadcast %10 : vector<1x1xf32> to vector<1x120xf32>
    %210 = arith.addf %208, %209 : vector<1x120xf32>
    %cst_216 = arith.constant 0.000000e+00 : f32
    %211 = vector.broadcast %cst_216 : f32 to vector<1x120xf32>
    %212 = arith.maximumf %210, %211 : vector<1x120xf32>
    %cst_217 = arith.constant 0.000000e+00 : f32
    %213 = vector.broadcast %cst_217 : f32 to vector<1x120xf32>
    %214 = arith.subf %213, %212 : vector<1x120xf32>
    %215 = math.exp %214 : vector<1x120xf32>
    %cst_218 = arith.constant 1.000000e+00 : f32
    %216 = vector.broadcast %cst_218 : f32 to vector<1x120xf32>
    %217 = arith.addf %216, %215 : vector<1x120xf32>
    %cst_219 = arith.constant 1.000000e+00 : f32
    %218 = vector.broadcast %cst_219 : f32 to vector<1x120xf32>
    %219 = arith.divf %218, %217 : vector<1x120xf32>
    %220 = vector.shape_cast %219 : vector<1x120xf32> to vector<1x1x120xf32>
    %c0_220 = arith.constant 0 : index
    %c0_221 = arith.constant 0 : index
    %c0_222 = arith.constant 0 : index
    %221 = vector.load %arg5[%c0_220, %c0_221, %c0_222] : memref<1x1x120xf32, #tpu.memory_space<vmem>>, vector<1x1x120xf32>
    tpu.vector_store %arg5[%c0_220, %c0_221, %c0_222], %220 {strides = array<i32>} : memref<1x1x120xf32, #tpu.memory_space<vmem>>, vector<1x1x120xf32>,
    return
  }
  func.func @transform_0(%arg0: i32) -> (i32, i32, i32) {
    %c0_i32 = arith.constant 0 : i32
    %c0_i32_0 = arith.constant 0 : i32
    %c0_i32_1 = arith.constant 0 : i32
    return %arg0, %c0_i32, %c0_i32_0 : i32, i32, i32
  }
  func.func @transform_1(%arg0: i32) -> (i32, i32) {
    %c0_i32 = arith.constant 0 : i32
    %c0_i32_0 = arith.constant 0 : i32
    %c0_i32_1 = arith.constant 0 : i32
    return %c0_i32, %c0_i32_0 : i32, i32
  }
  func.func @transform_2(%arg0: i32) -> (i32, i32) {
    %c0_i32 = arith.constant 0 : i32
    %c0_i32_0 = arith.constant 0 : i32
    %c0_i32_1 = arith.constant 0 : i32
    return %c0_i32, %c0_i32_0 : i32, i32
  }
  func.func @transform_3(%arg0: i32) -> (i32, i32) {
    %c0_i32 = arith.constant 0 : i32
    %c0_i32_0 = arith.constant 0 : i32
    %c0_i32_1 = arith.constant 0 : i32
    return %c0_i32, %c0_i32_0 : i32, i32
  }
  func.func @transform_4(%arg0: i32) -> (i32, i32, i32) {
    %c0_i32 = arith.constant 0 : i32
    %c0_i32_0 = arith.constant 0 : i32
    %c0_i32_1 = arith.constant 0 : i32
    return %arg0, %c0_i32, %c0_i32_0 : i32, i32, i32
  }
}

</mosaic_0001>

<bundles_post_ra>
// kernel: forward.1
= control target key start
LH: loop header
LB: loop body
LE: loop exit
PB: predicated region body
PF: predicated region fallthrough
CT: control target
= control target key end

     0   :  { %s6966_s15 = smov 0   ;;  %s9827_s0 = inlined_call_operand.vmem [shape: f32[2,1,326], index: 0, kind: input, shape index: {}]   ;;  %s9828_s1 = inlined_call_operand.vmem [shape: f32[97,576], index: 1, kind: input, shape index: {}]   ;;  %s9829_s2 = inlined_call_operand.vmem [shape: f32[288,72], index: 2, kind: input, shape index: {}]   ;;  %s9830_s3 = inlined_call_operand.vmem [shape: f32[64,256], index: 3, kind: input, shape index: {}]   ;;  %s9831_s4 = inlined_call_operand.vmem [shape: f32[2,1,120], index: 4, kind: output, shape index: {}]  }
   0x1 LB: > { %s5859_s16 = sadd.s32 4294967295, %s6912_s15   ;;  %p5863_p0 = scmp.ge.s32.totalorder %s6912_s15, 1  ;;  %s6912_s15 = sphi %s6966_s15, %s14_s15  }
   0x2   : > { %p161_p1 = scmp.lt.s32.totalorder %s6912_s15, 3 }
   0x4   : > { %p162_p2 = pnand %p5863_p0, %p161_p1 }
   0x6   : > { %165 = sbr.rel (%p162_p2) target bundleno = 3556 (0xde4), region = 36 }
   0xd   : > { %p184_p3 = scmp.lt.s32.totalorder %s5859_s16, 1  ;;  %v9835_v0 = vlaneseq  ;;  %s6914_s21 = smov 110   ;;  %vm452_vm1 = vcmask 261121   ;;  %v9836_v3 = vmov 0.0   ;;  %v7002_v4 = vld [vmem:[%s9830_s3] sm:$0xff]  ;;  %vm9832_vm2 = vcmask 130048  }
   0xe   : > { %s6915_s22 = smov 127   ;;  %451 = vst [vmem:[#allocation4 + $0x20] sm:$0xfe] %v9836_v3  ;;  %450 = vst [vmem:[#allocation4 + $0x18] sm:$0xfe] %v9836_v3  ;;  %553 = vmatprep.mubr.f32.mxu0 %v9836_v3  ;;  %s6917_s23 = smov 109   ;;  %6228 = vmatprep.mubr.msk.f32.mxu1 %vm9832_vm2, %v7002_v4 }
   0xf   : > { %s9924_s16 = smov (!%p184_p3, %s5859_s16), 1  ;;  %vm6981_vm0 = vcmp.lt.s32.totalorder %v9835_v0, 288  ;;  %453 = vst.msk [vmem:[#allocation4 + $0x28] sm:$0xfe] %vm452_vm1, %v9836_v3  ;;  %s6918_s24 = smov 126   ;;  %v7009_v5 = vld [vmem:[%s9830_s3 + $0x10] sm:$0xff] }
  0x10   : > { %s6839_s17 = smul.u32 3, %s9924_s16  ;;  %s6919_s25 = smov 92   ;;  %v6923_v6 = vmov 32   ;;  %v7016_v7 = vld [vmem:[%s9830_s3 + $0x20] sm:$0xff]  ;;  %v7021_v8 = vld [vmem:[%s9830_s3 + $0x30] sm:$0xff]  ;;  %vm399_vm3 = vcmask 900096  }
  0x11   : > { %s6920_s26 = smov 108   ;;  %s6921_s27 = smov 90   ;;  %6884 = vset.pattern.permute.xlu1 %v6923_v6  ;;  %6883 = vset.pattern.permute.xlu0 %v6923_v6  ;;  %vm381_vm4 = vcmask 1039360   ;;  %vm408_vm5 = vcmask 891904   ;;  %vm390_vm6 = vcmask 1031168   ;;  %vm426_vm7 = vcmask 752640  }
  0x12   : > { %s187_s20 = scalar_lea.vmem %s9827_s0, %s6839_s17  ;;  %s6922_s28 = smov 91   ;;  %vm417_vm8 = vcmask 883712   ;;  %vm9833_vm9 = vcmask 736256   ;;  %vm9834_vm10 = vcmask 744448   ;;  %vm4487_vm11 = vcmask 785409  }
  0x13   : > { %v370_v1 = vld [vmem:[%s187_s20] sm:$0x7]  ;;  %v7068_v42 = vand.u32 127, %v9835_v0  ;;  %vm321_vm12 = vcmask 154624   ;;  %s6924_s11 = smov 19   ;;  %s6929_s17 = smov 26  }
  0x14   : > { %396 = vrot.lane.b32.xlu1 %v370_v1, %s6914_s21  ;;  %378 = vrot.lane.b32.xlu0 %v370_v1, %s6915_s22  ;;  %375 = vst.msk [vmem:[#allocation4] ss:$8 sm:$0x7] %vm6981_vm0, %v370_v1  ;;  %s6930_s18 = smov 115   ;;  %s6931_s19 = smov 116  }
  0x15   : > { %9846 = vst [vmem:[#allocation7_spill] sm:$0xff] %v7068_v42  ;;  %v252_v43 = vadd.s32 256, %v7068_v42  ;;  %v7072_v44 = vmul.u32.u64.low 3817748708, %v7068_v42  ;;  %v7073_v45 = vmul.u32.u64.high 3817748708, %v7068_v42, %v7072_v44  ;;  %v251_v48 = vadd.s32 128, %v7068_v42  ;;  %322 = vst.msk [vmem:[#allocation2] sm:$0xff] %vm321_vm12, %v9836_v3  ;;  %s190_s14 = scalar_lea.vmem %s9831_s4, %s9924_s16 }
  0x16   : > { %323 = vst.msk [vmem:[#allocation2 + $0x18] sm:$0xff] %vm321_vm12, %v9836_v3  ;;  %324 = vst.msk [vmem:[#allocation2 + $0x30] sm:$0xff] %vm321_vm12, %v9836_v3  ;;  %s6932_s20 = smov 104   ;;  %s6933_s29 = smov 114  }
  0x17   : > { %v7075_v46 = vmul.u32.u64.low 3817748708, %v252_v43  ;;  %v7076_v47 = vmul.u32.u64.high 3817748708, %v252_v43, %v7075_v46  ;;  %v7079_v49 = vmul.u32.u64.low 3817748708, %v251_v48  ;;  %v7080_v50 = vmul.u32.u64.high 3817748708, %v251_v48, %v7079_v49  ;;  %325 = vst.msk [vmem:[#allocation2 + $0x48] sm:$0xff] %vm321_vm12, %v9836_v3  ;;  %326 = vst.msk [vmem:[#allocation2 + $0x60] sm:$0xff] %vm321_vm12, %v9836_v3 }
  0x18   : > { %405 = vrot.lane.b32.xlu1 %v370_v1, %s6917_s23  ;;  %387 = vrot.lane.b32.xlu0 %v370_v1, %s6918_s24  ;;  %v259_v51 = vshrl.u32 %v7073_v45, 4  ;;  %327 = vst.msk [vmem:[#allocation2 + $0x78] sm:$0xff] %vm321_vm12, %v9836_v3  ;;  %328 = vst.msk [vmem:[#allocation2 + $0x90] sm:$0xff] %vm321_vm12, %v9836_v3  ;;  %s6934_s30 = smov 102   ;;  %s6935_s5 = smov 103  }
  0x19   : > { %v281_v52 = vshrl.u32 %v7076_v47, 4  ;;  %v270_v55 = vshrl.u32 %v7080_v50, 4  ;;  %329 = vst.msk [vmem:[#allocation2 + $0xa8] sm:$0xff] %vm321_vm12, %v9836_v3  ;;  %s6936_s7 = smov 112  }
  0x1a   : > { %v260_v53 = vmul.u32 18, %v259_v51 }
  0x1b   : > { %v282_v54 = vmul.u32 18, %v281_v52  ;;  %v271_v58 = vmul.u32 18, %v270_v55 }
  0x1c   : > { %423 = vrot.lane.b32.xlu1 %v370_v1, %s6919_s25  ;;  %414 = vrot.lane.b32.xlu0 %v370_v1, %s6920_s26  ;;  %v261_v56 = vsub.s32 %v7068_v42, %v260_v53 }
  0x1d   : > { %v283_v57 = vsub.s32 %v252_v43, %v282_v54  ;;  %v272_v59 = vsub.s32 %v251_v48, %v271_v58 }
  0x1e   : > { %vm286_vm13 = vcmp.ne.s32.totalorder %v261_v56, 0  ;;  %vm289_vm14 = vcmp.lt.s32.totalorder %v261_v56, 0  ;;  %v295_v60 = vadd.s32 18, %v261_v56 }
  0x1f   : > { %vm288_vm15 = vcmp.ne.s32.totalorder %v283_v57, 0  ;;  %v297_v61 = vadd.s32 18, %v283_v57  ;;  %vm7103_vm1 = vmand %vm289_vm14, %vm286_vm13 }
  0x20   : > { %441 = vrot.lane.b32.xlu1 %v370_v1, %s6921_s27  ;;  %432 = vrot.lane.b32.xlu0 %v370_v1, %s6922_s28  ;;  %v298_v2 = vsel %vm7103_vm1, %v295_v60, %v261_v56  ;;  %vm9861_vm1 = vcmask 744448  }
  0x24   : > { %467 = vperm.xlu1 %6884, %v7009_v5   ;;  %462 = vperm.xlu0 %6883, %v7002_v4  }
  0x28   : > { %472 = vperm.xlu1 %6884, %v7016_v7   ;;  %477 = vperm.xlu0 %6883, %v7021_v8  }
  0x86   : > { %v397_v9 = vpop.permute.xlu1 %396  ;;  %v379_v10 = vpop.permute.xlu0 %378 }
  0x87   : > { %v398_v11 = vrot.slane %v397_v9, 1  ;;  %v380_v12 = vrot.slane %v379_v10, 1 }
  0x89   : > { %v400_v13 = vsel %vm399_vm3, %v397_v9, %v398_v11  ;;  %v382_v14 = vsel %vm381_vm4, %v379_v10, %v380_v12  ;;  %v296_v11 = vadd.s32 18, %v272_v59 }
  0x8a   : > { %403 = vst.msk [vmem:[#allocation4 + $0x3] ss:$8 sm:$0x7] %vm6981_vm0, %v400_v13  ;;  %385 = vst.msk [vmem:[#allocation4 + $0x1] ss:$8 sm:$0x7] %vm6981_vm0, %v382_v14  ;;  %v406_v15 = vpop.permute.xlu1 %405  ;;  %v388_v16 = vpop.permute.xlu0 %387 }
  0x8b   : > { %v407_v17 = vrot.slane %v406_v15, 1  ;;  %v389_v18 = vrot.slane %v388_v16, 1 }
  0x8d   : > { %v409_v19 = vsel %vm408_vm5, %v406_v15, %v407_v17  ;;  %v391_v20 = vsel %vm390_vm6, %v388_v16, %v389_v18 }
  0x8e   : > { %412 = vst.msk [vmem:[#allocation4 + $0x4] ss:$8 sm:$0x7] %vm6981_vm0, %v409_v19  ;;  %394 = vst.msk [vmem:[#allocation4 + $0x2] ss:$8 sm:$0x7] %vm6981_vm0, %v391_v20  ;;  %v424_v21 = vpop.permute.xlu1 %423  ;;  %v415_v22 = vpop.permute.xlu0 %414 }
  0x8f   : > { %v425_v23 = vrot.slane %v424_v21, 1  ;;  %v416_v24 = vrot.slane %v415_v22, 1  ;;  %v9853_v19 = vmov 0 }
  0x91   : > { %v427_v25 = vsel %vm426_vm7, %v424_v21, %v425_v23  ;;  %v418_v26 = vsel %vm417_vm8, %v415_v22, %v416_v24 }
  0x92   : > { %430 = vst.msk [vmem:[#allocation4 + $0x6] ss:$8 sm:$0x7] %vm6981_vm0, %v427_v25  ;;  %421 = vst.msk [vmem:[#allocation4 + $0x5] ss:$8 sm:$0x7] %vm6981_vm0, %v418_v26  ;;  %v442_v27 = vpop.permute.xlu1 %441  ;;  %v433_v28 = vpop.permute.xlu0 %432 }
  0x93   : > { %v443_v29 = vrot.slane %v442_v27, 1  ;;  %v434_v30 = vrot.slane %v433_v28, 1 }
  0x95   : > { %v445_v31 = vsel %vm9833_vm9, %v442_v27, %v443_v29  ;;  %v436_v32 = vsel %vm9834_vm10, %v433_v28, %v434_v30  ;;  %vm287_vm9 = vcmp.ne.s32.totalorder %v272_v59, 0  ;;  %vm290_vm10 = vcmp.lt.s32.totalorder %v272_v59, 0 }
  0x96   : > { %448 = vst.msk [vmem:[#allocation4 + $0x18] ss:$8 sm:$0x7] %vm6981_vm0, %v445_v31  ;;  %439 = vst.msk [vmem:[#allocation4 + $0x7] ss:$8 sm:$0x7] %vm6981_vm0, %v436_v32 }
  0x97   : > { %vm291_vm0 = vcmp.lt.s32.totalorder %v283_v57, 0  ;;  %vm7125_vm13 = vmand %vm290_vm10, %vm287_vm9  ;;  %vm749_vm10 = vcmask 1047704  }
  0x98   : > { %v299_v25 = vsel %vm7125_vm13, %v296_v11, %v272_v59  ;;  %vm9863_vm13 = vmmov %vm9861_vm1 }
  0x99   : > { %vm7145_vm9 = vcmp.lt.s32.totalorder %v299_v25, 16 }
  0x9d   : > { %v455_v33 = vld [vmem:[#allocation4 + $0x8] sm:$0xff]  ;;  %v458_v34 = vld [vmem:[#allocation4 + $0x20] sm:$0xff]  ;;  %v456_v35 = vld [vmem:[#allocation4 + $0x10] sm:$0xff] }
  0x9e   : > { %v6333_v36 = vpack.c.bf16 %v458_v34, %v455_v33  ;;  %v459_v37 = vld [vmem:[#allocation4 + $0x28] sm:$0xff]  ;;  %v454_v38 = vld [vmem:[#allocation4] sm:$0xff]  ;;  %v457_v39 = vld [vmem:[#allocation4 + $0x18] sm:$0xff] }
  0x9f   : > { %v6337_v40 = vpack.c.bf16 %v459_v37, %v456_v35  ;;  %v6335_v41 = vpack.c.bf16 %v457_v39, %v454_v38  ;;  %4488 = vst.msk [vmem:[#allocation4 + $0x18] sm:$0xfe] %vm4487_vm11, %v9836_v3  ;;  %vm7107_vm11 = vmand %vm291_vm0, %vm288_vm15  ;;  %v9858_v35 = vmov 0  ;;  %vm752_vm15 = vcmask 416768  }
  0xa0   : > { %6334 = vmatprep.subr.bf16.mxu0 %v6333_v36  ;;  %v300_v10 = vsel %vm7107_vm11, %v297_v61, %v283_v57  ;;  %v9859_v35 = vsel %vm7145_vm9, 4294967295, %v9858_v35  ;;  %vm777_vm0 = vcmask 261120   ;;  %vm9862_vm11 = vmmov %vm9861_vm1 }
  0xa1   : > { %6338 = vmatprep.subr.bf16.mxu1 %v6337_v40  ;;  %6336 = vmatpush1.bf16.msra.mxu0 %v6335_v41  ;;  %vm7133_vm14 = vcmp.lt.s32.totalorder %v300_v10, 16  ;;  %9860 = vst [vmem:[#allocation9_spill] sm:$0xff] %v9859_v35 }
  0xa2   : > { %6340 = vmatpush3.bf16.msra.mxu1 %v6337_v40 }
  0xa3   : > { %v468_v1 = vpop.permute.xlu1 %467  ;;  %v463_v6 = vpop.permute.xlu0 %462 }
  0xa4   : > { %5866 = vmatmul.mubr.msk.f32.vlgmr.msra.gmra.mrb[0].mxu0 %vm9832_vm2, %v7002_v4 }
  0xa5   : > { %6229 = vmatmul.mubr.msk.f32.vlgmr.msra.gmra.mrb[0].mxu1 %vm9832_vm2, %v7009_v5  ;;  %559 = vmatprep.mubr.f32.mxu0 %v9836_v3 }
  0xa6   : > { %6231 = vmatprep.mubr.msk.f32.mxu1 %vm9832_vm2, %v7016_v7 }
  0xa7   : > { %v473_v36 = vpop.permute.xlu1 %472  ;;  %v478_v38 = vpop.permute.xlu0 %477 }
  0xa8   : > { %5867 = vmatmul.mubr.msk.f32.gmra.mrb[2].mxu0 %vm9832_vm2, %v7009_v5 }
  0xa9   : > { %6232 = vmatmul.mubr.msk.f32.gmra.mrb[2].mxu1 %vm9832_vm2, %v7021_v8  ;;  %565 = vmatprep.mubr.f32.mxu0 %v9836_v3 }
  0xac   : > { %5868 = vmatmul.mubr.msk.f32.gmra.mrb[4].mxu0 %vm9832_vm2, %v7016_v7 }
  0xad   : > { %571 = vmatprep.mubr.f32.mxu0 %v9836_v3 }
  0xb0   : > { %5869 = vmatmul.mubr.msk.f32.gmra.mrb[6].mxu0 %vm9832_vm2, %v7021_v8  ;;  %vm330_vm2 = vcmask 572824  }
  0xb1   : > { %331 = vst.msk [vmem:[#allocation2 + $0x10] sm:$0xff] %vm330_vm2, %v9836_v3  ;;  %332 = vst.msk [vmem:[#allocation2 + $0x28] sm:$0xff] %vm330_vm2, %v9836_v3 }
  0xb2   : > { %333 = vst.msk [vmem:[#allocation2 + $0x40] sm:$0xff] %vm330_vm2, %v9836_v3  ;;  %334 = vst.msk [vmem:[#allocation2 + $0x58] sm:$0xff] %vm330_vm2, %v9836_v3 }
  0xb3   : > { %335 = vst.msk [vmem:[#allocation2 + $0x70] sm:$0xff] %vm330_vm2, %v9836_v3  ;;  %336 = vst.msk [vmem:[#allocation2 + $0x88] sm:$0xff] %vm330_vm2, %v9836_v3 }
  0xb4   : > { %337 = vst.msk [vmem:[#allocation2 + $0xa0] sm:$0xff] %vm330_vm2, %v9836_v3  ;;  %338 = vst.msk [vmem:[#allocation2 + $0xb8] sm:$0xff] %vm330_vm2, %v9836_v3  ;;  %vm7129_vm2 = vcmp.lt.s32.totalorder %v298_v2, 16 }
  0xb5   : > { %v9854_v19 = vsel %vm7129_vm2, 4294967295, %v9853_v19 }
  0xb6   : > { %9855 = vst [vmem:[#allocation8_spill] sm:$0xff] %v9854_v19 }
 0x177   : > { %v555_v9 = vpop.f32.mrb[0].mxu0 }
 0x178   : > { %v556_v12 = vadd.f32 %v555_v9, %v463_v6  ;;  %v6230_v13 = vpop.f32.mrb[0].mxu1  ;;  %v557_v14 = vpop.f32.mrb[1].mxu0 }
 0x179   : > { %v650_v16 = vadd.f32 %v6230_v13, %v468_v1  ;;  %v558_v17 = vadd.f32 %v557_v14, %v463_v6  ;;  %v644_v18 = vpop.f32.mrb[1].mxu1 }
 0x17a   : > { %v663_v20 = vmax.f32 %v556_v12, 0.0  ;;  %v645_v21 = vadd.f32 %v644_v18, %v463_v6 }
 0x17b   : > { %v668_v23 = vmax.f32 %v650_v16, 0.0  ;;  %v561_v24 = vpop.f32.mrb[2].mxu0  ;;  %v664_v30 = vmax.f32 %v558_v17, 0.0 }
 0x17c   : > { %v665_v26 = vmax.f32 %v645_v21, 0.0  ;;  %v6233_v27 = vpop.f32.mrb[2].mxu1  ;;  %v563_v28 = vpop.f32.mrb[3].mxu0  ;;  %v681_v29 = vsel %vm7129_vm2, %v663_v20, 0.0  ;;  %v562_v31 = vadd.f32 %v561_v24, %v468_v1 }
 0x17d   : > { %v564_v32 = vadd.f32 %v563_v28, %v468_v1  ;;  %v654_v33 = vpop.f32.mrb[3].mxu1  ;;  %v686_v34 = vsel %vm7133_vm14, %v668_v23, 0.0  ;;  %705 = vrot.lane.b32.xlu1 %v681_v29, %s6924_s11  ;;  %v660_v45 = vadd.f32 %v6233_v27, %v478_v38  ;;  %v682_v46 = vsel %vm7145_vm9, %v664_v30, 0.0 }
 0x17e   : > { %715 = vrot.lane.b32.xlu0 %v686_v34, %s6924_s11  ;;  %v655_v40 = vadd.f32 %v654_v33, %v473_v36  ;;  %v683_v43 = vsel %vm7133_vm14, %v665_v26, 0.0  ;;  %v666_v44 = vmax.f32 %v562_v31, 0.0 }
 0x17f   : > { %v567_v37 = vpop.f32.mrb[4].mxu0  ;;  %v667_v39 = vmax.f32 %v564_v32, 0.0  ;;  %v674_v52 = vmax.f32 %v660_v45, 0.0 }
 0x180   : > { %v569_v41 = vpop.f32.mrb[5].mxu0  ;;  %v671_v48 = vmax.f32 %v655_v40, 0.0  ;;  %v568_v49 = vadd.f32 %v567_v37, %v473_v36  ;;  %v684_v54 = vsel %vm7129_vm2, %v666_v44, 0.0 }
 0x181   : > { %709 = vrot.lane.b32.xlu1 %v683_v43, %s6924_s11  ;;  %v685_v51 = vsel %vm7145_vm9, %v667_v39, 0.0  ;;  %v570_v53 = vadd.f32 %v569_v41, %v473_v36  ;;  %v692_v60 = vsel %vm7133_vm14, %v674_v52, 0.0 }
 0x182   : > { %707 = vrot.lane.b32.xlu0 %v682_v46, %s6924_s11  ;;  %v669_v55 = vmax.f32 %v568_v49, 0.0  ;;  %v689_v57 = vsel %vm7133_vm14, %v671_v48, 0.0 }
 0x183   : > { %v573_v47 = vpop.f32.mrb[6].mxu0  ;;  %v670_v58 = vmax.f32 %v570_v53, 0.0 }
 0x184   : > { %v575_v50 = vpop.f32.mrb[7].mxu0  ;;  %v574_v59 = vadd.f32 %v573_v47, %v478_v38  ;;  %v687_v62 = vsel %vm7129_vm2, %v669_v55, 0.0 }
 0x185   : > { %713 = vrot.lane.b32.xlu1 %v685_v51, %s6924_s11  ;;  %v576_v56 = vadd.f32 %v575_v50, %v478_v38  ;;  %v688_v1 = vsel %vm7145_vm9, %v670_v58, 0.0 }
 0x186   : > { %711 = vrot.lane.b32.xlu0 %v684_v54, %s6924_s11  ;;  %v672_v63 = vmax.f32 %v574_v59, 0.0 }
 0x187   : > { %v673_v61 = vmax.f32 %v576_v56, 0.0 }
 0x188   : > { %v690_v6 = vsel %vm7129_vm2, %v672_v63, 0.0 }
 0x189   : > { %721 = vrot.lane.b32.xlu1 %v689_v57, %s6924_s11  ;;  %v691_v2 = vsel %vm7145_vm9, %v673_v61, 0.0 }
 0x18a   : > { %727 = vrot.lane.b32.xlu0 %v692_v60, %s6924_s11 }
 0x18d   : > { %717 = vrot.lane.b32.xlu1 %v687_v62, %s6924_s11 }
 0x18e   : > { %719 = vrot.lane.b32.xlu0 %v688_v1, %s6924_s11 }
 0x191   : > { %725 = vrot.lane.b32.xlu1 %v691_v2, %s6924_s11 }
 0x192   : > { %723 = vrot.lane.b32.xlu0 %v690_v6, %s6924_s11 }
 0x1ef   : > { %v706_v9 = vpop.permute.xlu1 %705 }
 0x1f0   : > { %v716_v10 = vpop.permute.xlu0 %715  ;;  %750 = vst.msk [vmem:[#allocation2] sm:$0xff] %vm749_vm10, %v706_v9 }
 0x1f3   : > { %v710_v11 = vpop.permute.xlu1 %709 }
 0x1f4   : > { %v708_v12 = vpop.permute.xlu0 %707 }
 0x1f5   : > { %v730_v13 = vsel %vm321_vm12, %v708_v12, %v710_v11  ;;  %v7188_v18 = vsel %vm321_vm12, %v706_v9, %v708_v12 }
 0x1f6   : > { %753 = vst.msk [vmem:[#allocation2 + $0x10] sm:$0xff] %vm752_vm15, %v730_v13 }
 0x1f7   : > { %v7182_v14 = vld [vmem:[#allocation2] sm:$0xff]  ;;  %v714_v15 = vpop.permute.xlu1 %713 }
 0x1f8   : > { %v712_v16 = vpop.permute.xlu0 %711  ;;  %v732_v17 = vsel %vm321_vm12, %v714_v15, %v716_v10  ;;  %812 = vrot.lane.b32.xlu1 %v7182_v14, %s6915_s22  ;;  %v192_v10 = vld [vmem:[%s9828_s1 + $0x8] sm:$0xff] }
 0x1f9   : > { %754 = vst.msk [vmem:[#allocation2 + $0x18] sm:$0xff] %vm749_vm10, %v712_v16  ;;  %v7192_v20 = vsel %vm321_vm12, %v712_v16, %v714_v15  ;;  %1886 = vmatprep.mubr.f32.mxu1 %v192_v10  ;;  %1660 = vmatprep.mubr.f32.mxu0 %v192_v10 }
 0x1fa   : > { %756 = vst.msk [vmem:[#allocation2 + $0x28] sm:$0xff] %vm752_vm15, %v732_v17  ;;  %v6341_v21 = vpack.c.bf16 %v7192_v20, %v7188_v18 }
 0x1fb   : > { %v722_v23 = vpop.permute.xlu1 %721 }
 0x1fc   : > { %v728_v24 = vpop.permute.xlu0 %727  ;;  %892 = vrot.lane.b32.xlu1 %v7182_v14, %s6918_s24  ;;  %6342 = vmatprep.subr.bf16.mxu0 %v6341_v21 }
 0x1fd   : > { %v7199_v25 = vld [vmem:[#allocation2 + $0x10] sm:$0xff] }
 0x1fe   : > { %778 = vst.msk [vmem:[#allocation3 + $0x10] sm:$0xff] %vm777_vm0, %v7199_v25  ;;  %816 = vrot.lane.b32.xlu0 %v7199_v25, %s6915_s22 }
 0x1ff   : > { %v718_v26 = vpop.permute.xlu1 %717 }
 0x200   : > { %v7205_v27 = vld [vmem:[#allocation2 + $0x18] sm:$0xff]  ;;  %v720_v29 = vpop.permute.xlu0 %719  ;;  %757 = vst.msk [vmem:[#allocation2 + $0x30] sm:$0xff] %vm749_vm10, %v718_v26  ;;  %972 = vrot.lane.b32.xlu1 %v7182_v14, %s6914_s21 }
 0x201   : > { %v7207_v28 = vld [vmem:[#allocation2 + $0x28] sm:$0xff]  ;;  %v734_v30 = vsel %vm321_vm12, %v720_v29, %v722_v23  ;;  %v6343_v31 = vpack.c.bf16 %v7205_v27, %v7182_v14  ;;  %v7224_v36 = vsel %vm321_vm12, %v718_v26, %v720_v29 }
 0x202   : > { %781 = vst.msk [vmem:[#allocation3 + $0x28] sm:$0xff] %vm777_vm0, %v7207_v28  ;;  %896 = vrot.lane.b32.xlu0 %v7199_v25, %s6918_s24 }
 0x203   : > { %759 = vst.msk [vmem:[#allocation2 + $0x40] sm:$0xff] %vm752_vm15, %v734_v30  ;;  %v726_v32 = vpop.permute.xlu1 %725  ;;  %6344 = vmatpush1.bf16.msra.mxu0 %v6343_v31 }
 0x204   : > { %v724_v33 = vpop.permute.xlu0 %723  ;;  %v736_v34 = vsel %vm321_vm12, %v726_v32, %v728_v24  ;;  %1052 = vrot.lane.b32.xlu1 %v7182_v14, %s6917_s23 }
 0x205   : > { %760 = vst.msk [vmem:[#allocation2 + $0x48] sm:$0xff] %vm749_vm10, %v724_v33  ;;  %v7228_v37 = vsel %vm321_vm12, %v724_v33, %v726_v32 }
 0x206   : > { %762 = vst.msk [vmem:[#allocation2 + $0x58] sm:$0xff] %vm752_vm15, %v736_v34  ;;  %976 = vrot.lane.b32.xlu0 %v7199_v25, %s6914_s21  ;;  %v6345_v38 = vpack.c.bf16 %v7228_v37, %v7224_v36 }
 0x207   : > { %v7243_v40 = vld [vmem:[#allocation2 + $0x30] sm:$0xff] }
 0x208   : > { %1132 = vrot.lane.b32.xlu1 %v7182_v14, %s6920_s26  ;;  %6346 = vmatprep.subr.bf16.mxu0 %v6345_v38 }
 0x209   : > { %v1433_v33 = vld [vmem:[#allocation3 + $0x28] sm:$0xff] }
 0x20a   : > { %v7237_v39 = vld [vmem:[#allocation2 + $0x40] sm:$0xff]  ;;  %1056 = vrot.lane.b32.xlu0 %v7199_v25, %s6917_s23 }
 0x20b   : > { %784 = vst.msk [vmem:[#allocation3 + $0x40] sm:$0xff] %vm777_vm0, %v7237_v39 }
 0x20c   : > { %v7245_v41 = vld [vmem:[#allocation2 + $0x48] sm:$0xff]  ;;  %1212 = vrot.lane.b32.xlu1 %v7182_v14, %s6919_s25 }
 0x20d   : > { %v7247_v43 = vld [vmem:[#allocation2 + $0x58] sm:$0xff]  ;;  %v6347_v44 = vpack.c.bf16 %v7245_v41, %v7243_v40 }
 0x20e   : > { %787 = vst.msk [vmem:[#allocation3 + $0x58] sm:$0xff] %vm777_vm0, %v7247_v43  ;;  %1136 = vrot.lane.b32.xlu0 %v7199_v25, %s6920_s26 }
 0x20f   : > { %6348 = vmatpush1.bf16.msra.mxu0 %v6347_v44 }
 0x210   : > { %814 = vrot.lane.b32.xlu1 %v7188_v18, %s6915_s22 }
 0x212   : > { %1216 = vrot.lane.b32.xlu0 %v7199_v25, %s6919_s25 }
 0x214   : > { %894 = vrot.lane.b32.xlu1 %v7188_v18, %s6918_s24 }
 0x216   : > { %818 = vrot.lane.b32.xlu0 %v7205_v27, %s6915_s22 }
 0x218   : > { %974 = vrot.lane.b32.xlu1 %v7188_v18, %s6914_s21 }
 0x21a   : > { %898 = vrot.lane.b32.xlu0 %v7205_v27, %s6918_s24 }
 0x21c   : > { %1054 = vrot.lane.b32.xlu1 %v7188_v18, %s6917_s23 }
 0x21e   : > { %978 = vrot.lane.b32.xlu0 %v7205_v27, %s6914_s21 }
 0x220   : > { %1134 = vrot.lane.b32.xlu1 %v7188_v18, %s6920_s26 }
 0x222   : > { %1058 = vrot.lane.b32.xlu0 %v7205_v27, %s6917_s23 }
 0x224   : > { %1214 = vrot.lane.b32.xlu1 %v7188_v18, %s6919_s25 }
 0x226   : > { %1138 = vrot.lane.b32.xlu0 %v7205_v27, %s6920_s26 }
 0x228   : > { %820 = vrot.lane.b32.xlu1 %v7192_v20, %s6915_s22 }
 0x22a   : > { %1218 = vrot.lane.b32.xlu0 %v7205_v27, %s6919_s25 }
 0x22c   : > { %900 = vrot.lane.b32.xlu1 %v7192_v20, %s6918_s24 }
 0x22e   : > { %822 = vrot.lane.b32.xlu0 %v7207_v28, %s6915_s22 }
 0x230   : > { %980 = vrot.lane.b32.xlu1 %v7192_v20, %s6914_s21 }
 0x232   : > { %902 = vrot.lane.b32.xlu0 %v7207_v28, %s6918_s24 }
 0x234   : > { %1060 = vrot.lane.b32.xlu1 %v7192_v20, %s6917_s23 }
 0x236   : > { %982 = vrot.lane.b32.xlu0 %v7207_v28, %s6914_s21 }
 0x238   : > { %1140 = vrot.lane.b32.xlu1 %v7192_v20, %s6920_s26 }
 0x23a   : > { %1062 = vrot.lane.b32.xlu0 %v7207_v28, %s6917_s23 }
 0x23c   : > { %1220 = vrot.lane.b32.xlu1 %v7192_v20, %s6919_s25 }
 0x23e   : > { %1142 = vrot.lane.b32.xlu0 %v7207_v28, %s6920_s26 }
 0x240   : > { %824 = vrot.lane.b32.xlu1 %v7243_v40, %s6915_s22 }
 0x242   : > { %1222 = vrot.lane.b32.xlu0 %v7207_v28, %s6919_s25 }
 0x244   : > { %904 = vrot.lane.b32.xlu1 %v7243_v40, %s6918_s24 }
 0x246   : > { %828 = vrot.lane.b32.xlu0 %v7237_v39, %s6915_s22 }
 0x248   : > { %984 = vrot.lane.b32.xlu1 %v7243_v40, %s6914_s21 }
 0x24a   : > { %908 = vrot.lane.b32.xlu0 %v7237_v39, %s6918_s24 }
 0x24c   : > { %1064 = vrot.lane.b32.xlu1 %v7243_v40, %s6917_s23 }
 0x24e   : > { %988 = vrot.lane.b32.xlu0 %v7237_v39, %s6914_s21 }
 0x250   : > { %1144 = vrot.lane.b32.xlu1 %v7243_v40, %s6920_s26 }
 0x252   : > { %1068 = vrot.lane.b32.xlu0 %v7237_v39, %s6917_s23 }
 0x254   : > { %826 = vrot.lane.b32.xlu1 %v7224_v36, %s6915_s22 }
 0x256   : > { %1148 = vrot.lane.b32.xlu0 %v7237_v39, %s6920_s26 }
 0x258   : > { %906 = vrot.lane.b32.xlu1 %v7224_v36, %s6918_s24 }
 0x25a   : > { %830 = vrot.lane.b32.xlu0 %v7245_v41, %s6915_s22 }
 0x25c   : > { %986 = vrot.lane.b32.xlu1 %v7224_v36, %s6914_s21 }
 0x25e   : > { %910 = vrot.lane.b32.xlu0 %v7245_v41, %s6918_s24 }
 0x260   : > { %1066 = vrot.lane.b32.xlu1 %v7224_v36, %s6917_s23 }
 0x262   : > { %990 = vrot.lane.b32.xlu0 %v7245_v41, %s6914_s21 }
 0x264   : > { %1146 = vrot.lane.b32.xlu1 %v7224_v36, %s6920_s26 }
 0x266   : > { %1070 = vrot.lane.b32.xlu0 %v7245_v41, %s6917_s23 }
 0x268   : > { %832 = vrot.lane.b32.xlu1 %v7228_v37, %s6915_s22 }
 0x26a   : > { %1150 = vrot.lane.b32.xlu0 %v7245_v41, %s6920_s26  ;;  %v7349_v45 = vpop.permute.xlu1 %812 }
 0x26c   : > { %1226 = vrot.lane.b32.xlu1 %v7224_v36, %s6919_s25 }
 0x26e   : > { %834 = vrot.lane.b32.xlu0 %v7247_v43, %s6915_s22  ;;  %v7355_v46 = vpop.permute.xlu1 %892 }
 0x270   : > { %v817_v47 = vpop.permute.xlu0 %816  ;;  %912 = vrot.lane.b32.xlu1 %v7228_v37, %s6918_s24 }
 0x271   : > { %858 = vst.msk [vmem:[#allocation3 + $0x70] sm:$0xff] %vm777_vm0, %v817_v47 }
 0x272   : > { %1228 = vrot.lane.b32.xlu0 %v7237_v39, %s6919_s25  ;;  %v7362_v48 = vpop.permute.xlu1 %972 }
 0x274   : > { %v7364_v49 = vpop.permute.xlu0 %896  ;;  %1224 = vrot.lane.b32.xlu1 %v7243_v40, %s6919_s25 }
 0x275   : > { %938 = vst.msk [vmem:[#allocation3 + $0xd0] sm:$0xff] %vm777_vm0, %v7364_v49 }
 0x276   : > { %914 = vrot.lane.b32.xlu0 %v7247_v43, %s6918_s24  ;;  %v7372_v50 = vpop.permute.xlu1 %1052 }
 0x278   : > { %v7374_v51 = vpop.permute.xlu0 %976  ;;  %992 = vrot.lane.b32.xlu1 %v7228_v37, %s6914_s21 }
 0x279   : > { %1018 = vst.msk [vmem:[#allocation3 + $0x130] sm:$0xff] %vm777_vm0, %v7374_v51 }
 0x27a   : > { %1230 = vrot.lane.b32.xlu0 %v7245_v41, %s6919_s25  ;;  %v7382_v52 = vpop.permute.xlu1 %1132 }
 0x27c   : > { %v7384_v53 = vpop.permute.xlu0 %1056  ;;  %1294 = vrot.lane.b32.xlu1 %v7188_v18, %s6922_s28 }
 0x27d   : > { %1098 = vst.msk [vmem:[#allocation3 + $0x190] sm:$0xff] %vm777_vm0, %v7384_v53 }
 0x27e   : > { %994 = vrot.lane.b32.xlu0 %v7247_v43, %s6914_s21  ;;  %v7392_v54 = vpop.permute.xlu1 %1212 }
 0x280   : > { %v7394_v55 = vpop.permute.xlu0 %1136  ;;  %1072 = vrot.lane.b32.xlu1 %v7228_v37, %s6917_s23 }
 0x281   : > { %1178 = vst.msk [vmem:[#allocation3 + $0x1f0] sm:$0xff] %vm777_vm0, %v7394_v55 }
 0x282   : > { %1296 = vrot.lane.b32.xlu0 %v7199_v25, %s6922_s28  ;;  %v815_v56 = vpop.permute.xlu1 %814 }
 0x283   : > { %v837_v17 = vsel %vm381_vm4, %v815_v56, %v817_v47  ;;  %v836_v23 = vsel %vm381_vm4, %v7349_v45, %v815_v56 }
 0x284   : > { %v7402_v57 = vpop.permute.xlu0 %1216  ;;  %1300 = vrot.lane.b32.xlu1 %v7192_v20, %s6922_s28 }
 0x285   : > { %1258 = vst.msk [vmem:[#allocation3 + $0x250] sm:$0xff] %vm777_vm0, %v7402_v57 }
 0x286   : > { %1074 = vrot.lane.b32.xlu0 %v7247_v43, %s6917_s23  ;;  %v7410_v58 = vpop.permute.xlu1 %894 }
 0x288   : > { %v819_v59 = vpop.permute.xlu0 %818  ;;  %1152 = vrot.lane.b32.xlu1 %v7228_v37, %s6920_s26 }
 0x28a   : > { %1302 = vrot.lane.b32.xlu0 %v7207_v28, %s6922_s28  ;;  %v7416_v60 = vpop.permute.xlu1 %974 }
 0x28c   : > { %v7418_v61 = vpop.permute.xlu0 %898  ;;  %1292 = vrot.lane.b32.xlu1 %v7182_v14, %s6922_s28 }
 0x28e   : > { %1154 = vrot.lane.b32.xlu0 %v7247_v43, %s6920_s26  ;;  %v7424_v62 = vpop.permute.xlu1 %1054 }
 0x290   : > { %v7426_v63 = vpop.permute.xlu0 %978  ;;  %1232 = vrot.lane.b32.xlu1 %v7228_v37, %s6919_s25 }
 0x292   : > { %1298 = vrot.lane.b32.xlu0 %v7205_v27, %s6922_s28  ;;  %v7432_v1 = vpop.permute.xlu1 %1134 }
 0x294   : > { %v7434_v2 = vpop.permute.xlu0 %1058  ;;  %1306 = vrot.lane.b32.xlu1 %v7224_v36, %s6922_s28 }
 0x296   : > { %1234 = vrot.lane.b32.xlu0 %v7247_v43, %s6919_s25  ;;  %v7440_v6 = vpop.permute.xlu1 %1214 }
 0x298   : > { %v7442_v9 = vpop.permute.xlu0 %1138  ;;  %1312 = vrot.lane.b32.xlu1 %v7228_v37, %s6922_s28 }
 0x29a   : > { %1308 = vrot.lane.b32.xlu0 %v7237_v39, %s6922_s28  ;;  %v821_v11 = vpop.permute.xlu1 %820 }
 0x29b   : > { %v838_v15 = vsel %vm381_vm4, %v819_v59, %v821_v11 }
 0x29c   : > { %v7451_v12 = vpop.permute.xlu0 %1218  ;;  %1304 = vrot.lane.b32.xlu1 %v7243_v40, %s6922_s28  ;;  %v6351_v29 = vpack.c.bf16 %v838_v15, %v836_v23 }
 0x29e   : > { %1314 = vrot.lane.b32.xlu0 %v7247_v43, %s6922_s28  ;;  %v7457_v13 = vpop.permute.xlu1 %900 }
 0x2a0   : > { %v823_v16 = vpop.permute.xlu0 %822  ;;  %1374 = vrot.lane.b32.xlu1 %v7188_v18, %s6921_s27 }
 0x2a1   : > { %v839_v21 = vsel %vm381_vm4, %v821_v11, %v823_v16  ;;  %861 = vst.msk [vmem:[#allocation3 + $0x88] sm:$0xff] %vm777_vm0, %v823_v16 }
 0x2a2   : > { %1310 = vrot.lane.b32.xlu0 %v7245_v41, %s6922_s28  ;;  %v7469_v24 = vpop.permute.xlu1 %980  ;;  %v6349_v26 = vpack.c.bf16 %v839_v21, %v837_v17 }
 0x2a4   : > { %v7471_v30 = vpop.permute.xlu0 %902  ;;  %1380 = vrot.lane.b32.xlu1 %v7192_v20, %s6921_s27  ;;  %6350 = vmatprep.subr.bf16.mxu0 %v6349_v26 }
 0x2a5   : > { %941 = vst.msk [vmem:[#allocation3 + $0xe8] sm:$0xff] %vm777_vm0, %v7471_v30  ;;  %6352 = vmatpush1.bf16.msra.mxu0 %v6351_v29 }
 0x2a6   : > { %1376 = vrot.lane.b32.xlu0 %v7199_v25, %s6921_s27  ;;  %v7479_v18 = vpop.permute.xlu1 %1060 }
 0x2a8   : > { %v7481_v31 = vpop.permute.xlu0 %982  ;;  %1372 = vrot.lane.b32.xlu1 %v7182_v14, %s6921_s27 }
 0x2a9   : > { %1021 = vst.msk [vmem:[#allocation3 + $0x148] sm:$0xff] %vm777_vm0, %v7481_v31 }
 0x2aa   : > { %1382 = vrot.lane.b32.xlu0 %v7207_v28, %s6921_s27  ;;  %v7489_v20 = vpop.permute.xlu1 %1140 }
 0x2ac   : > { %v7491_v32 = vpop.permute.xlu0 %1062  ;;  %1386 = vrot.lane.b32.xlu1 %v7224_v36, %s6921_s27 }
 0x2ad   : > { %1101 = vst.msk [vmem:[#allocation3 + $0x1a8] sm:$0xff] %vm777_vm0, %v7491_v32 }
 0x2ae   : > { %1378 = vrot.lane.b32.xlu0 %v7205_v27, %s6921_s27  ;;  %v7499_v14 = vpop.permute.xlu1 %1220  ;;  %v1478_v27 = vld [vmem:[#allocation3 + $0x190] sm:$0xff] }
 0x2b0   : > { %v7501_v25 = vpop.permute.xlu0 %1142  ;;  %1392 = vrot.lane.b32.xlu1 %v7228_v37, %s6921_s27  ;;  %v1430_v37 = vld [vmem:[#allocation3 + $0x10] sm:$0xff] }
 0x2b1   : > { %1181 = vst.msk [vmem:[#allocation3 + $0x208] sm:$0xff] %vm777_vm0, %v7501_v25 }
 0x2b2   : > { %1388 = vrot.lane.b32.xlu0 %v7237_v39, %s6921_s27  ;;  %v825_v28 = vpop.permute.xlu1 %824  ;;  %v6415_v39 = vpack.c.bf16 %v1433_v33, %v1430_v37  ;;  %v243_v37 = vld [vmem:[%s9830_s3 + $0x40] sm:$0xff] }
 0x2b4   : > { %v7509_v34 = vpop.permute.xlu0 %1222  ;;  %1384 = vrot.lane.b32.xlu1 %v7243_v40, %s6921_s27  ;;  %v1481_v36 = vld [vmem:[#allocation3 + $0x1a8] sm:$0xff] }
 0x2b5   : > { %1261 = vst.msk [vmem:[#allocation3 + $0x268] sm:$0xff] %vm777_vm0, %v7509_v34  ;;  %v6413_v38 = vpack.c.bf16 %v1481_v36, %v1478_v27  ;;  %v6925_v36 = vmov 33  }
 0x2b6   : > { %1394 = vrot.lane.b32.xlu0 %v7247_v43, %s6921_s27  ;;  %v7517_v44 = vpop.permute.xlu1 %904  ;;  %6885 = vset.pattern.permute.xlu1 %v6925_v36 }
 0x2b7   : > { %6414 = vmatprep.subr.bf16.mxu1 %v6413_v38  ;;  %6886 = vset.pattern.permute.xlu0 %v6925_v36 }
 0x2b8   : > { %6416 = vmatpush3.bf16.msra.mxu1 %v6415_v39  ;;  %v829_v45 = vpop.permute.xlu0 %828  ;;  %1537 = vperm.xlu1 %6885, %v7002_v4   ;;  %v245_v4 = vld [vmem:[%s9830_s3 + $0x60] sm:$0xff] }
 0x2b9   : > { %864 = vst.msk [vmem:[#allocation3 + $0xa0] sm:$0xff] %vm777_vm0, %v829_v45 }
 0x2ba   : > { %1390 = vrot.lane.b32.xlu0 %v7245_v41, %s6921_s27  ;;  %v7522_v40 = vpop.permute.xlu1 %984 }
 0x2bc   : > { %v909_v47 = vpop.permute.xlu0 %908  ;;  %1545 = vperm.xlu1 %6885, %v7016_v7  }
 0x2bd   : > { %944 = vst.msk [vmem:[#allocation3 + $0x100] sm:$0xff] %vm777_vm0, %v909_v47 }
 0x2be   : > { %v7525_v56 = vpop.permute.xlu1 %1064  ;;  %1541 = vperm.xlu0 %6886, %v7009_v5   ;;  %v919_v5 = vsel %vm390_vm6, %v7457_v13, %v7471_v30  ;;  %v918_v30 = vsel %vm390_vm6, %v7418_v61, %v7457_v13  ;;  %v246_v13 = vld [vmem:[%s9830_s3 + $0x70] sm:$0xff] }
 0x2c0   : > { %v7527_v59 = vpop.permute.xlu0 %988  ;;  %1549 = vperm.xlu1 %6885, %v7021_v8  }
 0x2c1   : > { %1024 = vst.msk [vmem:[#allocation3 + $0x160] sm:$0xff] %vm777_vm0, %v7527_v59 }
 0x2c2   : > { %v7531_v43 = vpop.permute.xlu1 %1144  ;;  %1554 = vperm.xlu0 %6886, %v243_v37  }
 0x2c4   : > { %v7533_v10 = vpop.permute.xlu0 %1068 }
 0x2c5   : > { %1104 = vst.msk [vmem:[#allocation3 + $0x1c0] sm:$0xff] %vm777_vm0, %v7533_v10 }
 0x2c6   : > { %v827_v41 = vpop.permute.xlu1 %826  ;;  %1564 = vperm.xlu0 %6886, %v245_v4  }
 0x2c7   : > { %v841_v36 = vsel %vm381_vm4, %v827_v41, %v829_v45  ;;  %v840_v7 = vsel %vm381_vm4, %v825_v28, %v827_v41 }
 0x2c8   : > { %v7537_v11 = vpop.permute.xlu0 %1148 }
 0x2c9   : > { %1184 = vst.msk [vmem:[#allocation3 + $0x220] sm:$0xff] %vm777_vm0, %v7537_v11 }
 0x2ca   : > { %v907_v15 = vpop.permute.xlu1 %906 }
 0x2cb   : > { %v921_v28 = vsel %vm390_vm6, %v907_v15, %v909_v47 }
 0x2cc   : > { %v831_v16 = vpop.permute.xlu0 %830 }
 0x2ce   : > { %v7541_v17 = vpop.permute.xlu1 %986 }
 0x2d0   : > { %v911_v21 = vpop.permute.xlu0 %910 }
 0x2d2   : > { %v7543_v23 = vpop.permute.xlu1 %1066 }
 0x2d4   : > { %v7545_v26 = vpop.permute.xlu0 %990 }
 0x2d6   : > { %v7547_v29 = vpop.permute.xlu1 %1146 }
 0x2d8   : > { %v7549_v33 = vpop.permute.xlu0 %1070 }
 0x2da   : > { %v833_v27 = vpop.permute.xlu1 %832 }
 0x2db   : > { %v842_v0 = vsel %vm381_vm4, %v831_v16, %v833_v27  ;;  %v917_v16 = vsel %vm390_vm6, %v7410_v58, %v7364_v49 }
 0x2dc   : > { %v7553_v38 = vpop.permute.xlu0 %1150  ;;  %v6355_v35 = vpack.c.bf16 %v842_v0, %v840_v7  ;;  %v916_v0 = vsel %vm390_vm6, %v7355_v46, %v7410_v58  ;;  %v920_v58 = vsel %vm390_vm6, %v7517_v44, %v907_v15  ;;  %v996_v44 = vsel %vm399_vm3, %v7362_v48, %v7416_v60 }
 0x2dd   : > { %v6359_v49 = vpack.c.bf16 %v918_v30, %v916_v0  ;;  %v1000_v48 = vsel %vm399_vm3, %v7522_v40, %v7541_v17  ;;  %v1076_v40 = vsel %vm408_vm5, %v7372_v50, %v7424_v62  ;;  %v1081_v0 = vsel %vm408_vm5, %v7543_v23, %v7533_v10 }
 0x2de   : > { %v7558_v39 = vpop.permute.xlu1 %1226  ;;  %v1080_v50 = vsel %vm408_vm5, %v7525_v56, %v7543_v23  ;;  %v1158_v10 = vsel %vm417_vm8, %v7442_v9, %v7489_v20  ;;  %v1156_v56 = vsel %vm417_vm8, %v7382_v52, %v7432_v1  ;;  %v1484_v9 = vld [vmem:[#allocation3 + $0x1c0] sm:$0xff]  ;;  %v1161_v52 = vsel %vm417_vm8, %v7547_v29, %v7537_v11 }
 0x2e0   : > { %v835_v3 = vpop.permute.xlu0 %834 }
 0x2e1   : > { %v843_v42 = vsel %vm381_vm4, %v833_v27, %v835_v3  ;;  %867 = vst.msk [vmem:[#allocation3 + $0xb8] sm:$0xff] %vm777_vm0, %v835_v3  ;;  %v6357_v3 = vpack.c.bf16 %v919_v5, %v917_v16  ;;  %v997_v27 = vsel %vm399_vm3, %v7416_v60, %v7374_v51  ;;  %v1077_v16 = vsel %vm408_vm5, %v7424_v62, %v7384_v53 }
 0x2e2   : > { %v913_v37 = vpop.permute.xlu1 %912  ;;  %v6353_v19 = vpack.c.bf16 %v843_v42, %v841_v36  ;;  %v244_v42 = vld [vmem:[%s9830_s3 + $0x50] sm:$0xff] }
 0x2e3   : > { %1559 = vperm.xlu1 %6885, %v244_v42  }
 0x2e4   : > { %v7579_v45 = vpop.permute.xlu0 %1228  ;;  %6354 = vmatprep.subr.bf16.mxu0 %v6353_v19  ;;  %v922_v19 = vsel %vm390_vm6, %v911_v21, %v913_v37 }
 0x2e5   : > { %1264 = vst.msk [vmem:[#allocation3 + $0x280] sm:$0xff] %vm777_vm0, %v7579_v45  ;;  %6356 = vmatpush1.bf16.msra.mxu0 %v6355_v35  ;;  %v999_v35 = vsel %vm399_vm3, %v7469_v24, %v7481_v31  ;;  %v6363_v4 = vpack.c.bf16 %v922_v19, %v920_v58  ;;  %v998_v31 = vsel %vm399_vm3, %v7426_v63, %v7469_v24  ;;  %v1493_v58 = vld [vmem:[#allocation3 + $0x208] sm:$0xff] }
 0x2e6   : > { %v7589_v8 = vpop.permute.xlu1 %1224  ;;  %6358 = vmatprep.subr.bf16.mxu0 %v6357_v3  ;;  %v6365_v5 = vpack.c.bf16 %v999_v35, %v997_v27  ;;  %v6367_v36 = vpack.c.bf16 %v998_v31, %v996_v44  ;;  %v1079_v63 = vsel %vm408_vm5, %v7479_v18, %v7491_v32  ;;  %v1001_v24 = vsel %vm399_vm3, %v7541_v17, %v7527_v59  ;;  %v1439_v35 = vld [vmem:[#allocation3 + $0x58] sm:$0xff]  ;;  %v1436_v27 = vld [vmem:[#allocation3 + $0x40] sm:$0xff] }
 0x2e7   : > { %1569 = vperm.xlu1 %6885, %v246_v13   ;;  %v1078_v59 = vsel %vm408_vm5, %v7434_v2, %v7479_v18  ;;  %v6373_v3 = vpack.c.bf16 %v1079_v63, %v1077_v16  ;;  %v1159_v18 = vsel %vm417_vm8, %v7489_v20, %v7501_v25  ;;  %v1157_v19 = vsel %vm417_vm8, %v7432_v1, %v7394_v55 }
 0x2e8   : > { %v915_v61 = vpop.permute.xlu0 %914  ;;  %v6375_v53 = vpack.c.bf16 %v1078_v59, %v1076_v40  ;;  %v6381_v13 = vpack.c.bf16 %v1159_v18, %v1157_v19  ;;  %v6383_v55 = vpack.c.bf16 %v1158_v10, %v1156_v56  ;;  %v6419_v31 = vpack.c.bf16 %v1439_v35, %v1436_v27  ;;  %v1448_v40 = vld [vmem:[#allocation3 + $0xa0] sm:$0xff] }
 0x2e9   : > { %v923_v46 = vsel %vm390_vm6, %v913_v37, %v915_v61  ;;  %947 = vst.msk [vmem:[#allocation3 + $0x118] sm:$0xff] %vm777_vm0, %v915_v61  ;;  %6360 = vmatpush1.bf16.msra.mxu0 %v6359_v49  ;;  %v1241_v59 = vsel %vm426_vm7, %v7558_v39, %v7579_v45 }
 0x2ea   : > { %v993_v41 = vpop.permute.xlu1 %992  ;;  %v6361_v21 = vpack.c.bf16 %v923_v46, %v921_v28 }
 0x2eb   : > { %v1002_v51 = vsel %vm399_vm3, %v7545_v26, %v993_v41 }
 0x2ec   : > { %v7609_v47 = vpop.permute.xlu0 %1230  ;;  %6362 = vmatprep.subr.bf16.mxu0 %v6361_v21  ;;  %v6371_v32 = vpack.c.bf16 %v1002_v51, %v1000_v48  ;;  %v1451_v48 = vld [vmem:[#allocation3 + $0xb8] sm:$0xff] }
 0x2ed   : > { %6364 = vmatpush1.bf16.msra.mxu0 %v6363_v4 }
 0x2ee   : > { %v7614_v15 = vpop.permute.xlu1 %1294  ;;  %6366 = vmatprep.subr.bf16.mxu0 %v6365_v5  ;;  %v1490_v5 = vld [vmem:[#allocation3 + $0x1f0] sm:$0xff] }
 0x2ef   : > { %v6421_v11 = vpack.c.bf16 %v1493_v58, %v1490_v5 }
 0x2f0   : > { %v995_v7 = vpop.permute.xlu0 %994  ;;  %v1463_v10 = vld [vmem:[#allocation3 + $0x118] sm:$0xff] }
 0x2f1   : > { %v1003_v37 = vsel %vm399_vm3, %v993_v41, %v995_v7  ;;  %1027 = vst.msk [vmem:[#allocation3 + $0x178] sm:$0xff] %vm777_vm0, %v995_v7  ;;  %6368 = vmatpush1.bf16.msra.mxu0 %v6367_v36  ;;  %v1239_v41 = vsel %vm426_vm7, %v7499_v14, %v7509_v34  ;;  %v1237_v34 = vsel %vm426_vm7, %v7440_v6, %v7402_v57  ;;  %v1445_v36 = vld [vmem:[#allocation3 + $0x88] sm:$0xff] }
 0x2f2   : > { %v1073_v60 = vpop.permute.xlu1 %1072  ;;  %v6369_v26 = vpack.c.bf16 %v1003_v37, %v1001_v24  ;;  %v1238_v7 = vsel %vm426_vm7, %v7451_v12, %v7499_v14  ;;  %v1236_v24 = vsel %vm426_vm7, %v7392_v54, %v7440_v6 }
 0x2f3   : > { %v1082_v42 = vsel %vm408_vm5, %v7549_v33, %v1073_v60 }
 0x2f4   : > { %v7635_v30 = vpop.permute.xlu0 %1296  ;;  %6370 = vmatprep.subr.bf16.mxu0 %v6369_v26  ;;  %v6379_v25 = vpack.c.bf16 %v1082_v42, %v1080_v50  ;;  %v1496_v26 = vld [vmem:[#allocation3 + $0x220] sm:$0xff]  ;;  %v6427_v42 = vpack.c.bf16 %v1451_v48, %v1448_v40 }
 0x2f5   : > { %1338 = vst.msk [vmem:[#allocation3 + $0x2b0] sm:$0xff] %vm777_vm0, %v7635_v30  ;;  %6372 = vmatpush1.bf16.msra.mxu0 %v6371_v32  ;;  %v1505_v32 = vld [vmem:[#allocation3 + $0x268] sm:$0xff]  ;;  %v1317_v45 = vsel %vm9862_vm11, %v7614_v15, %v7635_v30  ;;  %vm9864_vm11 = vmmov %vm9861_vm1 }
 0x2f6   : > { %v7642_v17 = vpop.permute.xlu1 %1300  ;;  %6374 = vmatprep.subr.bf16.mxu0 %v6373_v3 }
 0x2f8   : > { %v1075_v2 = vpop.permute.xlu0 %1074 }
 0x2f9   : > { %v1083_v49 = vsel %vm408_vm5, %v1073_v60, %v1075_v2  ;;  %1107 = vst.msk [vmem:[#allocation3 + $0x1d8] sm:$0xff] %vm777_vm0, %v1075_v2  ;;  %6376 = vmatpush1.bf16.msra.mxu0 %v6375_v53  ;;  %v6391_v60 = vpack.c.bf16 %v1238_v7, %v1236_v24  ;;  %v1502_v2 = vld [vmem:[#allocation3 + $0x250] sm:$0xff] }
 0x2fa   : > { %v1153_v62 = vpop.permute.xlu1 %1152  ;;  %v6377_v33 = vpack.c.bf16 %v1083_v49, %v1081_v0  ;;  %v6429_v0 = vpack.c.bf16 %v1505_v32, %v1502_v2  ;;  %v1457_v49 = vld [vmem:[#allocation3 + $0xe8] sm:$0xff]  ;;  %v197_v32 = vld [vmem:[%s9828_s1 + $0x50] sm:$0xff] }
 0x2fb   : > { %v1162_v28 = vsel %vm417_vm8, %v7553_v38, %v1153_v62  ;;  %v1160_v38 = vsel %vm417_vm8, %v7531_v43, %v7547_v29  ;;  %v6389_v43 = vpack.c.bf16 %v1239_v41, %v1237_v34  ;;  %v1442_v29 = vld [vmem:[#allocation3 + $0x70] sm:$0xff] }
 0x2fc   : > { %v1303_v61 = vpop.permute.xlu0 %1302  ;;  %6378 = vmatprep.subr.bf16.mxu0 %v6377_v33  ;;  %v6387_v51 = vpack.c.bf16 %v1162_v28, %v1160_v38  ;;  %v6423_v37 = vpack.c.bf16 %v1445_v36, %v1442_v29  ;;  %v1466_v38 = vld [vmem:[#allocation3 + $0x130] sm:$0xff] }
 0x2fd   : > { %1341 = vst.msk [vmem:[#allocation3 + $0x2c8] sm:$0xff] %vm777_vm0, %v1303_v61  ;;  %6380 = vmatpush1.bf16.msra.mxu0 %v6379_v25  ;;  %v1319_v54 = vsel %vm9861_vm1, %v7642_v17, %v1303_v61 }
 0x2fe   : > { %v7667_v23 = vpop.permute.xlu1 %1292  ;;  %6382 = vmatprep.subr.bf16.mxu0 %v6381_v13  ;;  %v6397_v19 = vpack.c.bf16 %v1319_v54, %v1317_v45  ;;  %v204_v45 = vld [vmem:[%s9828_s1 + $0xa8] sm:$0xff] }
 0x300   : > { %v1155_v46 = vpop.permute.xlu0 %1154  ;;  %v1487_v20 = vld [vmem:[#allocation3 + $0x1d8] sm:$0xff] }
 0x301   : > { %v1163_v1 = vsel %vm417_vm8, %v1153_v62, %v1155_v46  ;;  %1187 = vst.msk [vmem:[#allocation3 + $0x238] sm:$0xff] %vm777_vm0, %v1155_v46  ;;  %v6417_v21 = vpack.c.bf16 %v1487_v20, %v1484_v9  ;;  %6384 = vmatpush1.bf16.msra.mxu0 %v6383_v55  ;;  %v1460_v9 = vld [vmem:[#allocation3 + $0x100] sm:$0xff]  ;;  %v1514_v20 = vld [vmem:[#allocation3 + $0x2b0] sm:$0xff] }
 0x302   : > { %v1233_v4 = vpop.permute.xlu1 %1232  ;;  %v6385_v44 = vpack.c.bf16 %v1163_v1, %v1161_v52  ;;  %v1469_v52 = vld [vmem:[#allocation3 + $0x148] sm:$0xff] }
 0x303   : > { %6418 = vmatprep.subr.bf16.mxu1 %v6417_v21  ;;  %v1242_v12 = vsel %vm426_vm7, %v7609_v47, %v1233_v4  ;;  %v1240_v47 = vsel %vm426_vm7, %v7589_v8, %v7558_v39  ;;  %v1454_v39 = vld [vmem:[#allocation3 + $0xd0] sm:$0xff]  ;;  %v1316_v8 = vsel %vm9861_vm1, %v7667_v23, %v7614_v15  ;;  %v6435_v23 = vpack.c.bf16 %v1463_v10, %v1460_v9  ;;  %v206_v10 = vld [vmem:[%s9828_s1 + $0xc8] sm:$0xff] }
 0x304   : > { %v1299_v63 = vpop.permute.xlu0 %1298  ;;  %6420 = vmatpush3.bf16.msra.mxu1 %v6419_v31  ;;  %6386 = vmatprep.subr.bf16.mxu0 %v6385_v44  ;;  %v6395_v50 = vpack.c.bf16 %v1242_v12, %v1240_v47  ;;  %v6431_v25 = vpack.c.bf16 %v1457_v49, %v1454_v39  ;;  %v1517_v35 = vld [vmem:[#allocation3 + $0x2c8] sm:$0xff]  ;;  %v6439_v31 = vpack.c.bf16 %v1469_v52, %v1466_v38  ;;  %v1475_v44 = vld [vmem:[#allocation3 + $0x178] sm:$0xff]  ;;  %v207_v39 = vld [vmem:[%s9828_s1 + $0xd0] sm:$0xff] }
 0x305   : > { %6422 = vmatprep.subr.bf16.mxu1 %v6421_v11  ;;  %6388 = vmatpush1.bf16.msra.mxu0 %v6387_v51  ;;  %v1318_v62 = vsel %vm9863_vm13, %v1299_v63, %v7642_v17  ;;  %v1508_v17 = vld [vmem:[#allocation3 + $0x280] sm:$0xff]  ;;  %vm9865_vm13 = vmmov %vm9861_vm1  ;;  %v6437_v41 = vpack.c.bf16 %v1517_v35, %v1514_v20  ;;  %v193_v9 = vld [vmem:[%s9828_s1 + $0x10] sm:$0xff] }
 0x306   : > { %v7691_v57 = vpop.permute.xlu1 %1306  ;;  %6390 = vmatprep.subr.bf16.mxu0 %v6389_v43  ;;  %v6399_v61 = vpack.c.bf16 %v1318_v62, %v1316_v8  ;;  %v191_v51 = vld [vmem:[%s9828_s1] sm:$0xff]  ;;  %v195_v43 = vld [vmem:[%s9828_s1 + $0x30] sm:$0xff]  ;;  %v208_v52 = vld [vmem:[%s9828_s1 + $0xd8] sm:$0xff] }
 0x307   : > { %v1472_v63 = vld [vmem:[#allocation3 + $0x160] sm:$0xff] }
 0x308   : > { %v1235_v14 = vpop.permute.xlu0 %1234  ;;  %6424 = vmatpush3.bf16.msra.mxu1 %v6423_v37  ;;  %v1499_v16 = vld [vmem:[#allocation3 + $0x238] sm:$0xff]  ;;  %v6443_v24 = vpack.c.bf16 %v1475_v44, %v1472_v63  ;;  %v194_v37 = vld [vmem:[%s9828_s1 + $0x28] sm:$0xff]  ;;  %v199_v20 = vld [vmem:[%s9828_s1 + $0x60] sm:$0xff] }
 0x309   : > { %v1243_v6 = vsel %vm426_vm7, %v1233_v4, %v1235_v14  ;;  %1267 = vst.msk [vmem:[#allocation3 + $0x298] sm:$0xff] %vm777_vm0, %v1235_v14  ;;  %v6425_v3 = vpack.c.bf16 %v1499_v16, %v1496_v26  ;;  %6392 = vmatpush1.bf16.msra.mxu0 %v6391_v60  ;;  %v198_v14 = vld [vmem:[%s9828_s1 + $0x58] sm:$0xff] }
 0x30a   : > { %v1313_v53 = vpop.permute.xlu1 %1312  ;;  %v6393_v18 = vpack.c.bf16 %v1243_v6, %v1241_v59  ;;  %v201_v6 = vld [vmem:[%s9828_s1 + $0x80] sm:$0xff] }
 0x30b   : > { %6426 = vmatprep.subr.bf16.mxu1 %v6425_v3 }
 0x30c   : > { %v1309_v33 = vpop.permute.xlu0 %1308  ;;  %6428 = vmatpush3.bf16.msra.mxu1 %v6427_v42  ;;  %6394 = vmatprep.subr.bf16.mxu0 %v6393_v18  ;;  %v200_v18 = vld [vmem:[%s9828_s1 + $0x78] sm:$0xff] }
 0x30d   : > { %1344 = vst.msk [vmem:[#allocation3 + $0x2e0] sm:$0xff] %vm777_vm0, %v1309_v33  ;;  %6430 = vmatprep.subr.bf16.mxu1 %v6429_v0  ;;  %6396 = vmatpush1.bf16.msra.mxu0 %v6395_v50  ;;  %v1321_v55 = vsel %vm9864_vm11, %v7691_v57, %v1309_v33  ;;  %vm9866_vm11 = vmmov %vm9861_vm1  ;;  %v203_v33 = vld [vmem:[%s9828_s1 + $0xa0] sm:$0xff] }
 0x30e   : > { %v1305_v30 = vpop.permute.xlu1 %1304  ;;  %6398 = vmatprep.subr.bf16.mxu0 %v6397_v19 }
 0x30f   : > { %v1320_v21 = vsel %vm9861_vm1, %v1305_v30, %v7691_v57 }
 0x310   : > { %v1315_v13 = vpop.permute.xlu0 %1314  ;;  %6432 = vmatpush3.bf16.msra.mxu1 %v6431_v25  ;;  %v1511_v56 = vld [vmem:[#allocation3 + $0x298] sm:$0xff] }
 0x311   : > { %v1323_v28 = vsel %vm9865_vm13, %v1313_v53, %v1315_v13  ;;  %1347 = vst.msk [vmem:[#allocation3 + $0x2f8] sm:$0xff] %vm777_vm0, %v1315_v13  ;;  %v6433_v46 = vpack.c.bf16 %v1511_v56, %v1508_v17  ;;  %6400 = vmatpush1.bf16.msra.mxu0 %v6399_v61  ;;  %vm9867_vm13 = vcmask 736256   ;;  %v210_v13 = vld [vmem:[%s9828_s1 + $0xf8] sm:$0xff] }
 0x312   : > { %v1375_v15 = vpop.permute.xlu1 %1374  ;;  %v6401_v58 = vpack.c.bf16 %v1323_v28, %v1321_v55  ;;  %vm9868_vm1 = vmmov %vm9867_vm13  ;;  %v209_v55 = vld [vmem:[%s9828_s1 + $0xf0] sm:$0xff]  ;;  %v213_v28 = vld [vmem:[%s9828_s1 + $0x120] sm:$0xff] }
 0x313   : > { %6434 = vmatprep.subr.bf16.mxu1 %v6433_v46  ;;  %v212_v46 = vld [vmem:[%s9828_s1 + $0x118] sm:$0xff] }
 0x314   : > { %v1311_v1 = vpop.permute.xlu0 %1310  ;;  %6436 = vmatpush3.bf16.msra.mxu1 %v6435_v23  ;;  %6402 = vmatprep.subr.bf16.mxu0 %v6401_v58  ;;  %v1520_v11 = vld [vmem:[#allocation3 + $0x2e0] sm:$0xff]  ;;  %v196_v23 = vld [vmem:[%s9828_s1 + $0x38] sm:$0xff]  ;;  %v202_v58 = vld [vmem:[%s9828_s1 + $0x88] sm:$0xff] }
 0x315   : > { %v1322_v27 = vsel %vm9866_vm11, %v1311_v1, %v1313_v53  ;;  %6438 = vmatprep.subr.bf16.mxu1 %v6437_v41  ;;  %vm9869_vm11 = vmmov %vm9868_vm1  ;;  %v205_v41 = vld [vmem:[%s9828_s1 + $0xb0] sm:$0xff]  ;;  %v211_v1 = vld [vmem:[%s9828_s1 + $0x100] sm:$0xff] }
 0x316   : > { %v1381_v4 = vpop.permute.xlu1 %1380  ;;  %v6403_v5 = vpack.c.bf16 %v1322_v27, %v1320_v21  ;;  %v214_v21 = vld [vmem:[%s9828_s1 + $0x128] sm:$0xff] }
 0x318   : > { %v1377_v34 = vpop.permute.xlu0 %1376  ;;  %6440 = vmatpush3.bf16.msra.mxu1 %v6439_v31  ;;  %v1523_v36 = vld [vmem:[#allocation3 + $0x2f8] sm:$0xff]  ;;  %6404 = vmatpush1.bf16.msra.mxu0 %v6403_v5 }
 0x319   : > { %1418 = vst.msk [vmem:[#allocation3 + $0x310] sm:$0xff] %vm777_vm0, %v1377_v34  ;;  %v6441_v7 = vpack.c.bf16 %v1523_v36, %v1520_v11  ;;  %v1397_v48 = vsel %vm9867_vm13, %v1375_v15, %v1377_v34  ;;  %vm9870_vm13 = vmmov %vm9868_vm1 }
 0x31a   : > { %v1373_v29 = vpop.permute.xlu1 %1372 }
 0x31b   : > { %6442 = vmatprep.subr.bf16.mxu1 %v6441_v7  ;;  %1661 = vmatmul.mubr.f32.vlgmr.msra.gmra.mrb[8].mxu0 %v191_v51  ;;  %v1396_v59 = vsel %vm9869_vm11, %v1373_v29, %v1375_v15  ;;  %vm9871_vm11 = vmmov %vm9868_vm1  ;;  %v9873_v15 = vmov 0.0  }
 0x31c   : > { %v1383_v57 = vpop.permute.xlu0 %1382  ;;  %6444 = vmatpush3.bf16.msra.mxu1 %v6443_v24  ;;  %1666 = vmatprep.mubr.f32.mxu0 %v195_v43 }
 0x31d   : > { %v1399_v60 = vsel %vm9868_vm1, %v1381_v4, %v1383_v57  ;;  %1421 = vst.msk [vmem:[#allocation3 + $0x328] sm:$0xff] %vm777_vm0, %v1383_v57 }
 0x31e   : > { %v1387_v12 = vpop.permute.xlu1 %1386  ;;  %v6405_v26 = vpack.c.bf16 %v1399_v60, %v1397_v48 }
 0x31f   : > { %1887 = vmatmul.mubr.f32.vlgmr.msra.gmra.mrb[4].mxu1 %v191_v51  ;;  %1667 = vmatmul.mubr.f32.gmra.mrb[10].mxu0 %v194_v37 }
 0x320   : > { %v1379_v16 = vpop.permute.xlu0 %1378  ;;  %1891 = vmatprep.mubr.f32.mxu1 %v195_v43  ;;  %6406 = vmatprep.subr.bf16.mxu0 %v6405_v26  ;;  %v1526_v53 = vld [vmem:[#allocation3 + $0x310] sm:$0xff] }
 0x321   : > { %v1398_v54 = vsel %vm9870_vm13, %v1379_v16, %v1381_v4  ;;  %1672 = vmatprep.mubr.f32.mxu0 %v198_v14  ;;  %vm9872_vm13 = vmmov %vm9868_vm1 }
 0x322   : > { %v6407_v3 = vpack.c.bf16 %v1398_v54, %v1396_v59  ;;  %v1393_v40 = vpop.permute.xlu1 %1392 }
 0x323   : > { %1892 = vmatmul.mubr.f32.gmra.mrb[6].mxu1 %v194_v37  ;;  %1673 = vmatmul.mubr.f32.gmra.mrb[12].mxu0 %v197_v32 }
 0x324   : > { %v1389_v47 = vpop.permute.xlu0 %1388  ;;  %1896 = vmatprep.mubr.f32.mxu1 %v198_v14  ;;  %v1529_v42 = vld [vmem:[#allocation3 + $0x328] sm:$0xff]  ;;  %6408 = vmatpush1.bf16.msra.mxu0 %v6407_v3 }
 0x325   : > { %1424 = vst.msk [vmem:[#allocation3 + $0x340] sm:$0xff] %vm777_vm0, %v1389_v47  ;;  %v6445_v2 = vpack.c.bf16 %v1529_v42, %v1526_v53  ;;  %1678 = vmatprep.mubr.f32.mxu0 %v201_v6  ;;  %v1401_v49 = vsel %vm9868_vm1, %v1387_v12, %v1389_v47 }
 0x326   : > { %v1385_v62 = vpop.permute.xlu1 %1384 }
 0x327   : > { %1897 = vmatmul.mubr.f32.gmra.mrb[8].mxu1 %v197_v32  ;;  %6446 = vmatprep.subr.bf16.mxu1 %v6445_v2  ;;  %v1400_v30 = vsel %vm9872_vm13, %v1385_v62, %v1387_v12 }
 0x328   : > { %v1395_v0 = vpop.permute.xlu0 %1394  ;;  %6448 = vmatpush3.bf16.msra.mxu1 %v6445_v2  ;;  %1901 = vmatprep.mubr.f32.mxu1 %v201_v6 }
 0x329   : > { %v1403_v50 = vsel %vm9871_vm11, %v1393_v40, %v1395_v0  ;;  %1427 = vst.msk [vmem:[#allocation3 + $0x358] sm:$0xff] %vm777_vm0, %v1395_v0  ;;  %1679 = vmatmul.mubr.f32.gmra.mrb[14].mxu0 %v200_v18 }
 0x32a   : > { %1684 = vmatprep.mubr.f32.mxu0 %v204_v45  ;;  %v6409_v19 = vpack.c.bf16 %v1403_v50, %v1401_v49 }
 0x32b   : > { %1902 = vmatmul.mubr.f32.gmra.mrb[10].mxu1 %v200_v18 }
 0x32c   : > { %v1391_v8 = vpop.permute.xlu0 %1390  ;;  %1906 = vmatprep.mubr.f32.mxu1 %v204_v45  ;;  %6410 = vmatprep.subr.bf16.mxu0 %v6409_v19  ;;  %v1532_v17 = vld [vmem:[#allocation3 + $0x340] sm:$0xff] }
 0x32d   : > { %v1402_v25 = vsel %vm9868_vm1, %v1391_v8, %v1393_v40  ;;  %1685 = vmatmul.mubr.f32.gmra.mrb[16].mxu0 %v203_v33 }
 0x32e   : > { %1690 = vmatprep.mubr.f32.mxu0 %v207_v39  ;;  %v6411_v61 = vpack.c.bf16 %v1402_v25, %v1400_v30 }
 0x32f   : > { %1907 = vmatmul.mubr.f32.gmra.mrb[12].mxu1 %v203_v33 }
 0x330   : > { %1911 = vmatprep.mubr.f32.mxu1 %v207_v39  ;;  %v1535_v56 = vld [vmem:[#allocation3 + $0x358] sm:$0xff]  ;;  %6412 = vmatpush1.bf16.msra.mxu0 %v6411_v61 }
 0x331   : > { %v6449_v35 = vpack.c.bf16 %v1535_v56, %v1532_v17  ;;  %1691 = vmatmul.mubr.f32.gmra.mrb[18].mxu0 %v206_v10 }
 0x332   : > { %1696 = vmatprep.mubr.f32.mxu0 %v210_v13 }
 0x333   : > { %1912 = vmatmul.mubr.f32.gmra.mrb[14].mxu1 %v206_v10  ;;  %6450 = vmatprep.subr.bf16.mxu1 %v6449_v35 }
 0x334   : > { %6452 = vmatpush3.bf16.msra.mxu1 %v6449_v35  ;;  %1916 = vmatprep.mubr.f32.mxu1 %v210_v13 }
 0x335   : > { %1697 = vmatmul.mubr.f32.gmra.mrb[20].mxu0 %v209_v55 }
 0x336   : > { %1702 = vmatprep.mubr.f32.mxu0 %v213_v28 }
 0x337   : > { %1917 = vmatmul.mubr.f32.gmra.mrb[16].mxu1 %v209_v55  ;;  %v1538_v48 = vpop.permute.xlu1 %1537 }
 0x338   : > { %1921 = vmatprep.mubr.f32.mxu1 %v213_v28 }
 0x339   : > { %1703 = vmatmul.mubr.f32.gmra.mrb[22].mxu0 %v212_v46 }
 0x33a   : > { %1773 = vmatprep.mubr.f32.mxu0 %v9873_v15 }
 0x33b   : > { %1922 = vmatmul.mubr.f32.gmra.mrb[18].mxu1 %v212_v46  ;;  %v7826_v26 = vpop.permute.xlu1 %1545 }
 0x33c   : > { %6242 = vmatprep.mubr.msk.f32.mxu1 %vm777_vm0, %v193_v9 }
 0x33d   : > { %5874 = vmatmul.mubr.msk.f32.vlgmr.msra.gmra.mrb[8].mxu0 %vm777_vm0, %v193_v9  ;;  %v7828_v32 = vpop.permute.xlu0 %1541 }
 0x33e   : > { %1779 = vmatprep.mubr.f32.mxu0 %v9873_v15 }
 0x33f   : > { %6243 = vmatmul.mubr.msk.f32.vlgmr.msra.gmra.mrb[20].mxu1 %vm777_vm0, %v196_v23  ;;  %v7831_v53 = vpop.permute.xlu1 %1549 }
 0x340   : > { %6245 = vmatprep.mubr.msk.f32.mxu1 %vm777_vm0, %v199_v20 }
 0x341   : > { %5875 = vmatmul.mubr.msk.f32.gmra.mrb[10].mxu0 %vm777_vm0, %v196_v23  ;;  %v7837_v25 = vpop.permute.xlu0 %1554 }
 0x342   : > { %1785 = vmatprep.mubr.f32.mxu0 %v9873_v15 }
 0x343   : > { %6246 = vmatmul.mubr.msk.f32.gmra.mrb[22].mxu1 %vm777_vm0, %v202_v58 }
 0x344   : > { %6248 = vmatprep.mubr.msk.f32.mxu1 %vm777_vm0, %v205_v41 }
 0x345   : > { %5876 = vmatmul.mubr.msk.f32.gmra.mrb[12].mxu0 %vm777_vm0, %v199_v20 }
 0x346   : > { %1791 = vmatprep.mubr.f32.mxu0 %v9873_v15 }
 0x347   : > { %6249 = vmatmul.mubr.msk.f32.gmra.mrb[24].mxu1 %vm777_vm0, %v208_v52 }
 0x348   : > { %6251 = vmatprep.mubr.msk.f32.mxu1 %vm777_vm0, %v211_v1 }
 0x349   : > { %5877 = vmatmul.mubr.msk.f32.gmra.mrb[14].mxu0 %vm777_vm0, %v202_v58  ;;  %v7847_v58 = vpop.permute.xlu0 %1564 }
 0x34a   : > { %1797 = vmatprep.mubr.f32.mxu0 %v9873_v15 }
 0x34b   : > { %6252 = vmatmul.mubr.msk.f32.gmra.mrb[26].mxu1 %vm777_vm0, %v214_v21 }
 0x34d   : > { %5878 = vmatmul.mubr.msk.f32.gmra.mrb[16].mxu0 %vm777_vm0, %v205_v41 }
 0x34e   : > { %1803 = vmatprep.mubr.f32.mxu0 %v9873_v15 }
 0x351   : > { %5879 = vmatmul.mubr.msk.f32.gmra.mrb[18].mxu0 %vm777_vm0, %v208_v52 }
 0x352   : > { %1809 = vmatprep.mubr.f32.mxu0 %v9873_v15 }
 0x355   : > { %5880 = vmatmul.mubr.msk.f32.gmra.mrb[20].mxu0 %vm777_vm0, %v211_v1 }
 0x356   : > { %1815 = vmatprep.mubr.f32.mxu0 %v9873_v15 }
 0x359   : > { %5881 = vmatmul.mubr.msk.f32.gmra.mrb[22].mxu0 %vm777_vm0, %v214_v21 }
 0x362   : > { %v7834_v19 = vpop.permute.xlu1 %1559 }
 0x366   : > { %v7851_v21 = vpop.permute.xlu1 %1569 }
 0x3f2   : > { %v5954_v27 = vpop.f32.mrb[4].mxu1 }
 0x3f3   : > { %v5955_v38 = vpop.f32.mrb[5].mxu1 }
 0x3f4   : > { %v5956_v4 = vadd.f32 %v5955_v38, %v5954_v27 }
 0x3f6   : > { %v5957_v31 = vpop.f32.mrb[6].mxu1  ;;  %v1889_v2 = vadd.f32 %v5956_v4, %v1538_v48 }
 0x3f7   : > { %v5958_v5 = vpop.f32.mrb[7].mxu1 }
 0x3f8   : > { %v5959_v44 = vadd.f32 %v5958_v5, %v5957_v31 }
 0x3fa   : > { %v5960_v34 = vpop.f32.mrb[8].mxu1  ;;  %v1894_v40 = vadd.f32 %v5959_v44, %v7828_v32 }
 0x3fb   : > { %v5961_v11 = vpop.f32.mrb[9].mxu1 }
 0x3fc   : > { %v5962_v36 = vadd.f32 %v5961_v11, %v5960_v34 }
 0x3fe   : > { %v5963_v51 = vpop.f32.mrb[10].mxu1  ;;  %v1899_v30 = vadd.f32 %v5962_v36, %v7826_v26 }
 0x3ff   : > { %v5964_v7 = vpop.f32.mrb[11].mxu1 }
 0x400   : > { %v5965_v63 = vadd.f32 %v5964_v7, %v5963_v51 }
 0x402   : > { %v5966_v43 = vpop.f32.mrb[12].mxu1  ;;  %v1904_v62 = vadd.f32 %v5965_v63, %v7831_v53 }
 0x403   : > { %v5967_v29 = vpop.f32.mrb[13].mxu1 }
 0x404   : > { %v5968_v24 = vadd.f32 %v5967_v29, %v5966_v43 }
 0x406   : > { %v5969_v57 = vpop.f32.mrb[14].mxu1  ;;  %v1909_v20 = vadd.f32 %v5968_v24, %v7837_v25 }
 0x407   : > { %v5970_v37 = vpop.f32.mrb[15].mxu1 }
 0x408   : > { %v5971_v60 = vadd.f32 %v5970_v37, %v5969_v57 }
 0x40a   : > { %v5972_v12 = vpop.f32.mrb[16].mxu1  ;;  %v1914_v28 = vadd.f32 %v5971_v60, %v7834_v19 }
 0x40b   : > { %v5973_v14 = vpop.f32.mrb[17].mxu1 }
 0x40c   : > { %v5974_v16 = vadd.f32 %v5973_v14, %v5972_v12 }
 0x40e   : > { %v5975_v59 = vpop.f32.mrb[18].mxu1  ;;  %v1919_v36 = vadd.f32 %v5974_v16, %v7847_v58 }
 0x40f   : > { %v5976_v54 = vpop.f32.mrb[19].mxu1 }
 0x410   : > { %v5977_v6 = vadd.f32 %v5976_v54, %v5975_v59  ;;  %v1775_v3 = vpop.f32.mrb[8].mxu0 }
 0x411   : > { %v1777_v47 = vpop.f32.mrb[9].mxu0  ;;  %v6801_v29 = vadd.f32 %v1775_v3, %v1538_v48 }
 0x412   : > { %v6244_v42 = vpop.f32.mrb[20].mxu1  ;;  %v1924_v5 = vadd.f32 %v5977_v6, %v7851_v21  ;;  %v6802_v51 = vadd.f32 %v1777_v47, %v1538_v48 }
 0x413   : > { %v1999_v18 = vadd.f32 %v6244_v42, %v1894_v40  ;;  %v1993_v45 = vpop.f32.mrb[21].mxu1  ;;  %v2032_v6 = vmax.f32 %v6801_v29, 0.0 }
 0x414   : > { %v1994_v0 = vadd.f32 %v1993_v45, %v1889_v2  ;;  %v1781_v49 = vpop.f32.mrb[10].mxu0  ;;  %v2033_v16 = vmax.f32 %v6802_v51, 0.0 }
 0x415   : > { %v2037_v50 = vmax.f32 %v1999_v18, 0.0  ;;  %v1783_v33 = vpop.f32.mrb[11].mxu0  ;;  %v6803_v59 = vadd.f32 %v1781_v49, %v7828_v32  ;;  %v2056_v49 = vsel %vm7129_vm2, %v2032_v6, 0.0 }
 0x416   : > { %v2034_v39 = vmax.f32 %v1994_v0, 0.0  ;;  %v6247_v8 = vpop.f32.mrb[22].mxu1  ;;  %v6804_v48 = vadd.f32 %v1783_v33, %v7828_v32  ;;  %v2057_v2 = vsel %vm7145_vm9, %v2033_v16, 0.0 }
 0x417   : > { %v2061_v10 = vsel %vm7133_vm14, %v2037_v50, 0.0  ;;  %v2009_v61 = vadd.f32 %v6247_v8, %v1904_v62  ;;  %v2003_v13 = vpop.f32.mrb[23].mxu1  ;;  %v2035_v18 = vmax.f32 %v6803_v59, 0.0 }
 0x418   : > { %v2058_v17 = vsel %vm7133_vm14, %v2034_v39, 0.0  ;;  %v2004_v56 = vadd.f32 %v2003_v13, %v1899_v30  ;;  %2114 = vrot.lane.b32.xlu1 %v2061_v10, %s6924_s11  ;;  %v1787_v35 = vpop.f32.mrb[12].mxu0  ;;  %v2036_v50 = vmax.f32 %v6804_v48, 0.0 }
 0x419   : > { %v2043_v55 = vmax.f32 %v2009_v61, 0.0  ;;  %2108 = vrot.lane.b32.xlu0 %v2058_v17, %s6924_s11  ;;  %v1789_v46 = vpop.f32.mrb[13].mxu0  ;;  %v6805_v32 = vadd.f32 %v1787_v35, %v7826_v26  ;;  %v2059_v33 = vsel %vm7129_vm2, %v2035_v18, 0.0 }
 0x41a   : > { %v2040_v9 = vmax.f32 %v2004_v56, 0.0  ;;  %v6250_v23 = vpop.f32.mrb[24].mxu1  ;;  %v6806_v45 = vadd.f32 %v1789_v46, %v7826_v26  ;;  %v2060_v30 = vsel %vm7145_vm9, %v2036_v50, 0.0 }
 0x41b   : > { %v2067_v41 = vsel %vm7133_vm14, %v2043_v55, 0.0  ;;  %v2019_v52 = vadd.f32 %v6250_v23, %v1914_v28  ;;  %v2013_v1 = vpop.f32.mrb[25].mxu1  ;;  %v2038_v10 = vmax.f32 %v6805_v32, 0.0 }
 0x41c   : > { %v2064_v27 = vsel %vm7133_vm14, %v2040_v9, 0.0  ;;  %v2014_v38 = vadd.f32 %v2013_v1, %v1909_v20  ;;  %2126 = vrot.lane.b32.xlu1 %v2067_v41, %s6924_s11  ;;  %v1793_v4 = vpop.f32.mrb[14].mxu0  ;;  %v2039_v39 = vmax.f32 %v6806_v45, 0.0 }
 0x41d   : > { %v2049_v31 = vmax.f32 %v2019_v52, 0.0  ;;  %2120 = vrot.lane.b32.xlu0 %v2064_v27, %s6924_s11  ;;  %v1795_v44 = vpop.f32.mrb[15].mxu0  ;;  %v6807_v8 = vadd.f32 %v1793_v4, %v7831_v53  ;;  %v2062_v55 = vsel %vm7129_vm2, %v2038_v10, 0.0 }
 0x41e   : > { %v2046_v34 = vmax.f32 %v2014_v38, 0.0  ;;  %v6253_v11 = vpop.f32.mrb[26].mxu1  ;;  %v6808_v61 = vadd.f32 %v1795_v44, %v7831_v53  ;;  %v2063_v17 = vsel %vm7145_vm9, %v2039_v39, 0.0 }
 0x41f   : > { %v2073_v7 = vsel %vm7133_vm14, %v2049_v31, 0.0  ;;  %v2029_v63 = vadd.f32 %v6253_v11, %v1924_v5  ;;  %v2023_v43 = vpop.f32.mrb[27].mxu1  ;;  %v2041_v56 = vmax.f32 %v6807_v8, 0.0 }
 0x420   : > { %v2070_v24 = vsel %vm7133_vm14, %v2046_v34, 0.0  ;;  %v2024_v57 = vadd.f32 %v2023_v43, %v1919_v36  ;;  %2138 = vrot.lane.b32.xlu1 %v2073_v7, %s6924_s11  ;;  %v1799_v37 = vpop.f32.mrb[16].mxu0  ;;  %v2042_v28 = vmax.f32 %v6808_v61, 0.0 }
 0x421   : > { %v2055_v60 = vmax.f32 %v2029_v63, 0.0  ;;  %2132 = vrot.lane.b32.xlu0 %v2070_v24, %s6924_s11  ;;  %v1801_v12 = vpop.f32.mrb[17].mxu0  ;;  %v6809_v46 = vadd.f32 %v1799_v37, %v7837_v25  ;;  %v2065_v53 = vsel %vm7129_vm2, %v2041_v56, 0.0 }
 0x422   : > { %v2052_v14 = vmax.f32 %v2024_v57, 0.0  ;;  %v6810_v35 = vadd.f32 %v1801_v12, %v7837_v25  ;;  %v2066_v20 = vsel %vm7145_vm9, %v2042_v28, 0.0 }
 0x423   : > { %v2079_v54 = vsel %vm7133_vm14, %v2055_v60, 0.0  ;;  %v2044_v41 = vmax.f32 %v6809_v46, 0.0 }
 0x424   : > { %v2076_v3 = vsel %vm7133_vm14, %v2052_v14, 0.0  ;;  %2150 = vrot.lane.b32.xlu1 %v2079_v54, %s6924_s11  ;;  %v1805_v40 = vpop.f32.mrb[18].mxu0  ;;  %v2045_v9 = vmax.f32 %v6810_v35, 0.0 }
 0x425   : > { %2144 = vrot.lane.b32.xlu0 %v2076_v3, %s6924_s11  ;;  %v1807_v47 = vpop.f32.mrb[19].mxu0  ;;  %v6811_v23 = vadd.f32 %v1805_v40, %v7834_v19  ;;  %v2068_v38 = vsel %vm7129_vm2, %v2044_v41, 0.0 }
 0x426   : > { %v6812_v52 = vadd.f32 %v1807_v47, %v7834_v19  ;;  %v2069_v25 = vsel %vm7145_vm9, %v2045_v9, 0.0 }
 0x427   : > { %v2047_v1 = vmax.f32 %v6811_v23, 0.0 }
 0x428   : > { %2106 = vrot.lane.b32.xlu1 %v2057_v2, %s6924_s11  ;;  %v1811_v22 = vpop.f32.mrb[20].mxu0  ;;  %v2048_v4 = vmax.f32 %v6812_v52, 0.0 }
 0x429   : > { %2104 = vrot.lane.b32.xlu0 %v2056_v49, %s6924_s11  ;;  %v1813_v62 = vpop.f32.mrb[21].mxu0  ;;  %v6813_v31 = vadd.f32 %v1811_v22, %v7847_v58  ;;  %v2071_v19 = vsel %vm7129_vm2, %v2047_v1, 0.0 }
 0x42a   : > { %v6814_v27 = vadd.f32 %v1813_v62, %v7847_v58  ;;  %v2072_v34 = vsel %vm7145_vm9, %v2048_v4, 0.0 }
 0x42b   : > { %v2050_v11 = vmax.f32 %v6813_v31, 0.0 }
 0x42c   : > { %2110 = vrot.lane.b32.xlu1 %v2059_v33, %s6924_s11  ;;  %v1817_v26 = vpop.f32.mrb[22].mxu0  ;;  %v2051_v5 = vmax.f32 %v6814_v27, 0.0 }
 0x42d   : > { %2112 = vrot.lane.b32.xlu0 %v2060_v30, %s6924_s11  ;;  %v1819_v13 = vpop.f32.mrb[23].mxu0  ;;  %v6815_v44 = vadd.f32 %v1817_v26, %v7851_v21  ;;  %v2074_v7 = vsel %vm7129_vm2, %v2050_v11, 0.0 }
 0x42e   : > { %v6816_v36 = vadd.f32 %v1819_v13, %v7851_v21  ;;  %v2075_v58 = vsel %vm7145_vm9, %v2051_v5, 0.0 }
 0x42f   : > { %v2053_v51 = vmax.f32 %v6815_v44, 0.0 }
 0x430   : > { %2118 = vrot.lane.b32.xlu1 %v2063_v17, %s6924_s11  ;;  %v2054_v63 = vmax.f32 %v6816_v36, 0.0 }
 0x431   : > { %2116 = vrot.lane.b32.xlu0 %v2062_v55, %s6924_s11  ;;  %v2077_v43 = vsel %vm7129_vm2, %v2053_v51, 0.0 }
 0x432   : > { %v2078_v21 = vsel %vm7145_vm9, %v2054_v63, 0.0 }
 0x434   : > { %2122 = vrot.lane.b32.xlu1 %v2065_v53, %s6924_s11 }
 0x435   : > { %2124 = vrot.lane.b32.xlu0 %v2066_v20, %s6924_s11 }
 0x438   : > { %2130 = vrot.lane.b32.xlu1 %v2069_v25, %s6924_s11 }
 0x439   : > { %2128 = vrot.lane.b32.xlu0 %v2068_v38, %s6924_s11 }
 0x43c   : > { %2134 = vrot.lane.b32.xlu1 %v2071_v19, %s6924_s11 }
 0x43d   : > { %2136 = vrot.lane.b32.xlu0 %v2072_v34, %s6924_s11 }
 0x440   : > { %2142 = vrot.lane.b32.xlu1 %v2075_v58, %s6924_s11 }
 0x441   : > { %2140 = vrot.lane.b32.xlu0 %v2074_v7, %s6924_s11 }
 0x444   : > { %2146 = vrot.lane.b32.xlu1 %v2077_v43, %s6924_s11 }
 0x445   : > { %2148 = vrot.lane.b32.xlu0 %v2078_v21, %s6924_s11 }
 0x48a   : > { %v2115_v29 = vpop.permute.xlu1 %2114 }
 0x48b   : > { %v2109_v24 = vpop.permute.xlu0 %2108 }
 0x48e   : > { %v2127_v57 = vpop.permute.xlu1 %2126 }
 0x48f   : > { %v2121_v37 = vpop.permute.xlu0 %2120 }
 0x492   : > { %v7933_v60 = vpop.permute.xlu1 %2138 }
 0x493   : > { %v2133_v12 = vpop.permute.xlu0 %2132 }
 0x496   : > { %v7935_v14 = vpop.permute.xlu1 %2150 }
 0x497   : > { %v7937_v16 = vpop.permute.xlu0 %2144 }
 0x49a   : > { %v2107_v59 = vpop.permute.xlu1 %2106 }
 0x49b   : > { %v2153_v54 = vsel %vm321_vm12, %v2107_v59, %v2109_v24  ;;  %v2105_v6 = vpop.permute.xlu0 %2104 }
 0x49c   : > { %2194 = vst.msk [vmem:[#allocation2 + $0x10] sm:$0xff] %vm752_vm15, %v2153_v54  ;;  %v7942_v48 = vsel %vm321_vm12, %v2105_v6, %v2107_v59 }
 0x49d   : > { %2192 = vst.msk [vmem:[#allocation2] sm:$0xff] %vm749_vm10, %v2105_v6  ;;  %2193 = vst [vmem:[#allocation2 + $0x8] sm:$0xff] %v7942_v48 }
 0x49e   : > { %v2111_v3 = vpop.permute.xlu1 %2110 }
 0x49f   : > { %2195 = vst.msk [vmem:[#allocation2 + $0x18] sm:$0xff] %vm749_vm10, %v2111_v3  ;;  %v2113_v40 = vpop.permute.xlu0 %2112 }
 0x4a0   : > { %v7948_v47 = vsel %vm321_vm12, %v2111_v3, %v2113_v40  ;;  %v2155_v42 = vsel %vm321_vm12, %v2113_v40, %v2115_v29 }
 0x4a1   : > { %2196 = vst [vmem:[#allocation2 + $0x20] sm:$0xff] %v7948_v47  ;;  %2197 = vst.msk [vmem:[#allocation2 + $0x28] sm:$0xff] %vm752_vm15, %v2155_v42  ;;  %v6453_v2 = vpack.c.bf16 %v7948_v47, %v7942_v48 }
 0x4a2   : > { %v2119_v18 = vpop.permute.xlu1 %2118 }
 0x4a3   : > { %v2157_v45 = vsel %vm321_vm12, %v2119_v18, %v2121_v37  ;;  %v2117_v0 = vpop.permute.xlu0 %2116  ;;  %v7958_v50 = vld [vmem:[#allocation2 + $0x10] sm:$0xff]  ;;  %6454 = vmatprep.subr.bf16.mxu1 %v6453_v2 }
 0x4a4   : > { %v7956_v49 = vld [vmem:[#allocation2] sm:$0xff]  ;;  %2200 = vst.msk [vmem:[#allocation2 + $0x40] sm:$0xff] %vm752_vm15, %v2157_v45  ;;  %v7962_v32 = vsel %vm321_vm12, %v2117_v0, %v2119_v18  ;;  %2316 = vrot.lane.b32.xlu1 %v7958_v50, %s6915_s22 }
 0x4a5   : > { %2198 = vst.msk [vmem:[#allocation2 + $0x30] sm:$0xff] %vm749_vm10, %v2117_v0  ;;  %2312 = vrot.lane.b32.xlu0 %v7956_v49, %s6915_s22  ;;  %2240 = vst [vmem:[#allocation3] sm:$0xff] %v7956_v49 }
 0x4a6   : > { %2242 = vst.msk [vmem:[#allocation3 + $0x10] sm:$0xff] %vm777_vm0, %v7958_v50  ;;  %2199 = vst [vmem:[#allocation2 + $0x38] sm:$0xff] %v7962_v32  ;;  %v2123_v22 = vpop.permute.xlu1 %2122  ;;  %v7973_v62 = vld [vmem:[#allocation2 + $0x18] sm:$0xff] }
 0x4a7   : > { %2201 = vst.msk [vmem:[#allocation2 + $0x48] sm:$0xff] %vm749_vm10, %v2123_v22  ;;  %v2125_v33 = vpop.permute.xlu0 %2124  ;;  %2243 = vst [vmem:[#allocation3 + $0x18] sm:$0xff] %v7973_v62  ;;  %v6455_v39 = vpack.c.bf16 %v7973_v62, %v7956_v49 }
 0x4a8   : > { %v7980_v8 = vsel %vm321_vm12, %v2123_v22, %v2125_v33  ;;  %v2159_v30 = vsel %vm321_vm12, %v2125_v33, %v2127_v57  ;;  %2476 = vrot.lane.b32.xlu1 %v7958_v50, %s6918_s24  ;;  %v7987_v10 = vld [vmem:[#allocation2 + $0x28] sm:$0xff] }
 0x4a9   : > { %2472 = vrot.lane.b32.xlu0 %v7956_v49, %s6918_s24  ;;  %2202 = vst [vmem:[#allocation2 + $0x50] sm:$0xff] %v7980_v8  ;;  %2203 = vst.msk [vmem:[#allocation2 + $0x58] sm:$0xff] %vm752_vm15, %v2159_v30  ;;  %6456 = vmatpush1.bf16.msra.mxu1 %v6455_v39  ;;  %v6457_v61 = vpack.c.bf16 %v7980_v8, %v7962_v32 }
 0x4aa   : > { %2245 = vst.msk [vmem:[#allocation3 + $0x28] sm:$0xff] %vm777_vm0, %v7987_v10  ;;  %v2131_v26 = vpop.permute.xlu1 %2130 }
 0x4ab   : > { %v2161_v13 = vsel %vm321_vm12, %v2131_v26, %v2133_v12  ;;  %v2129_v17 = vpop.permute.xlu0 %2128  ;;  %6458 = vmatprep.subr.bf16.mxu1 %v6457_v61  ;;  %v7998_v35 = vld [vmem:[#allocation2 + $0x40] sm:$0xff] }
 0x4ac   : > { %v7996_v56 = vld [vmem:[#allocation2 + $0x30] sm:$0xff]  ;;  %2206 = vst.msk [vmem:[#allocation2 + $0x70] sm:$0xff] %vm752_vm15, %v2161_v13  ;;  %v8002_v55 = vsel %vm321_vm12, %v2129_v17, %v2131_v26  ;;  %2636 = vrot.lane.b32.xlu1 %v7958_v50, %s6914_s21 }
 0x4ad   : > { %2204 = vst.msk [vmem:[#allocation2 + $0x60] sm:$0xff] %vm749_vm10, %v2129_v17  ;;  %2632 = vrot.lane.b32.xlu0 %v7956_v49, %s6914_s21  ;;  %2246 = vst [vmem:[#allocation3 + $0x30] sm:$0xff] %v7996_v56 }
 0x4ae   : > { %2248 = vst.msk [vmem:[#allocation3 + $0x40] sm:$0xff] %vm777_vm0, %v7998_v35  ;;  %2205 = vst [vmem:[#allocation2 + $0x68] sm:$0xff] %v8002_v55  ;;  %v2135_v28 = vpop.permute.xlu1 %2134  ;;  %v8013_v46 = vld [vmem:[#allocation2 + $0x48] sm:$0xff] }
 0x4af   : > { %2207 = vst.msk [vmem:[#allocation2 + $0x78] sm:$0xff] %vm749_vm10, %v2135_v28  ;;  %v2137_v53 = vpop.permute.xlu0 %2136  ;;  %2249 = vst [vmem:[#allocation3 + $0x48] sm:$0xff] %v8013_v46  ;;  %v6459_v9 = vpack.c.bf16 %v8013_v46, %v7996_v56 }
 0x4b0   : > { %v8020_v23 = vsel %vm321_vm12, %v2135_v28, %v2137_v53  ;;  %v2163_v20 = vsel %vm321_vm12, %v2137_v53, %v7933_v60  ;;  %2796 = vrot.lane.b32.xlu1 %v7958_v50, %s6917_s23  ;;  %v8028_v41 = vld [vmem:[#allocation2 + $0x58] sm:$0xff] }
 0x4b1   : > { %2792 = vrot.lane.b32.xlu0 %v7956_v49, %s6917_s23  ;;  %2208 = vst [vmem:[#allocation2 + $0x80] sm:$0xff] %v8020_v23  ;;  %2209 = vst.msk [vmem:[#allocation2 + $0x88] sm:$0xff] %vm752_vm15, %v2163_v20  ;;  %6460 = vmatpush1.bf16.msra.mxu1 %v6459_v9  ;;  %v6461_v52 = vpack.c.bf16 %v8020_v23, %v8002_v55 }
 0x4b2   : > { %2251 = vst.msk [vmem:[#allocation3 + $0x58] sm:$0xff] %vm777_vm0, %v8028_v41  ;;  %v2143_v25 = vpop.permute.xlu1 %2142 }
 0x4b3   : > { %v8036_v1 = vld [vmem:[#allocation2 + $0x70] sm:$0xff]  ;;  %v2165_v38 = vsel %vm321_vm12, %v2143_v25, %v7937_v16  ;;  %v2141_v4 = vpop.permute.xlu0 %2140  ;;  %6462 = vmatprep.subr.bf16.mxu1 %v6461_v52 }
 0x4b4   : > { %v8038_v27 = vld [vmem:[#allocation2 + $0x60] sm:$0xff]  ;;  %2254 = vst.msk [vmem:[#allocation3 + $0x70] sm:$0xff] %vm777_vm0, %v8036_v1  ;;  %v8047_v31 = vsel %vm321_vm12, %v2141_v4, %v2143_v25  ;;  %2956 = vrot.lane.b32.xlu1 %v7958_v50, %s6920_s26 }
 0x4b5   : > { %2252 = vst [vmem:[#allocation3 + $0x60] sm:$0xff] %v8038_v27  ;;  %2212 = vst.msk [vmem:[#allocation2 + $0xa0] sm:$0xff] %vm752_vm15, %v2165_v38  ;;  %2952 = vrot.lane.b32.xlu0 %v7956_v49, %s6920_s26 }
 0x4b6   : > { %2210 = vst.msk [vmem:[#allocation2 + $0x90] sm:$0xff] %vm749_vm10, %v2141_v4  ;;  %2211 = vst [vmem:[#allocation2 + $0x98] sm:$0xff] %v8047_v31  ;;  %v8055_v19 = vld [vmem:[#allocation2 + $0x78] sm:$0xff]  ;;  %v2147_v5 = vpop.permute.xlu1 %2146 }
 0x4b7   : > { %2255 = vst [vmem:[#allocation3 + $0x78] sm:$0xff] %v8055_v19  ;;  %2213 = vst.msk [vmem:[#allocation2 + $0xa8] sm:$0xff] %vm749_vm10, %v2147_v5  ;;  %v2149_v44 = vpop.permute.xlu0 %2148  ;;  %v6463_v34 = vpack.c.bf16 %v8055_v19, %v8038_v27 }
 0x4b8   : > { %v8061_v11 = vld [vmem:[#allocation2 + $0x88] sm:$0xff]  ;;  %v2166_v36 = vsel %vm321_vm12, %v2147_v5, %v2149_v44  ;;  %v2167_v58 = vsel %vm321_vm12, %v2149_v44, %v7935_v14  ;;  %3116 = vrot.lane.b32.xlu1 %v7958_v50, %s6919_s25 }
 0x4b9   : > { %3112 = vrot.lane.b32.xlu0 %v7956_v49, %s6919_s25  ;;  %2257 = vst.msk [vmem:[#allocation3 + $0x88] sm:$0xff] %vm777_vm0, %v8061_v11  ;;  %2214 = vst [vmem:[#allocation2 + $0xb0] sm:$0xff] %v2166_v36  ;;  %6464 = vmatpush1.bf16.msra.mxu1 %v6463_v34  ;;  %v6465_v51 = vpack.c.bf16 %v2166_v36, %v8047_v31 }
 0x4ba   : > { %2215 = vst.msk [vmem:[#allocation2 + $0xb8] sm:$0xff] %vm752_vm15, %v2167_v58 }
 0x4bb   : > { %6466 = vmatprep.subr.bf16.mxu1 %v6465_v51 }
 0x4bc   : > { %v8074_v7 = vld [vmem:[#allocation2 + $0xa0] sm:$0xff]  ;;  %2318 = vrot.lane.b32.xlu1 %v7973_v62, %s6915_s22 }
 0x4bd   : > { %v8076_v63 = vld [vmem:[#allocation2 + $0x90] sm:$0xff]  ;;  %2260 = vst.msk [vmem:[#allocation3 + $0xa0] sm:$0xff] %vm777_vm0, %v8074_v7  ;;  %2314 = vrot.lane.b32.xlu0 %v7942_v48, %s6915_s22 }
 0x4be   : > { %2258 = vst [vmem:[#allocation3 + $0x90] sm:$0xff] %v8076_v63  ;;  %v8085_v43 = vld [vmem:[#allocation2 + $0xa8] sm:$0xff] }
 0x4bf   : > { %2261 = vst [vmem:[#allocation3 + $0xa8] sm:$0xff] %v8085_v43  ;;  %v6467_v21 = vpack.c.bf16 %v8085_v43, %v8076_v63 }
 0x4c0   : > { %2478 = vrot.lane.b32.xlu1 %v7973_v62, %s6918_s24 }
 0x4c1   : > { %v2239_v29 = vld [vmem:[#allocation2 + $0xb8] sm:$0xff]  ;;  %2474 = vrot.lane.b32.xlu0 %v7942_v48, %s6918_s24  ;;  %6468 = vmatpush1.bf16.msra.mxu1 %v6467_v21  ;;  %v3549_v21 = vld [vmem:[#allocation3 + $0x28] sm:$0xff] }
 0x4c2   : > { %2263 = vst.msk [vmem:[#allocation3 + $0xb8] sm:$0xff] %vm777_vm0, %v2239_v29 }
 0x4c4   : > { %2638 = vrot.lane.b32.xlu1 %v7973_v62, %s6914_s21 }
 0x4c5   : > { %2634 = vrot.lane.b32.xlu0 %v7942_v48, %s6914_s21 }
 0x4c8   : > { %2798 = vrot.lane.b32.xlu1 %v7973_v62, %s6917_s23 }
 0x4c9   : > { %2794 = vrot.lane.b32.xlu0 %v7942_v48, %s6917_s23 }
 0x4cc   : > { %2958 = vrot.lane.b32.xlu1 %v7973_v62, %s6920_s26 }
 0x4cd   : > { %2954 = vrot.lane.b32.xlu0 %v7942_v48, %s6920_s26 }
 0x4d0   : > { %3118 = vrot.lane.b32.xlu1 %v7973_v62, %s6919_s25 }
 0x4d1   : > { %3114 = vrot.lane.b32.xlu0 %v7942_v48, %s6919_s25 }
 0x4d4   : > { %2322 = vrot.lane.b32.xlu1 %v7987_v10, %s6915_s22 }
 0x4d5   : > { %2320 = vrot.lane.b32.xlu0 %v7948_v47, %s6915_s22 }
 0x4d8   : > { %2482 = vrot.lane.b32.xlu1 %v7987_v10, %s6918_s24 }
 0x4d9   : > { %2480 = vrot.lane.b32.xlu0 %v7948_v47, %s6918_s24 }
 0x4dc   : > { %2642 = vrot.lane.b32.xlu1 %v7987_v10, %s6914_s21 }
 0x4dd   : > { %2640 = vrot.lane.b32.xlu0 %v7948_v47, %s6914_s21 }
 0x4e0   : > { %2802 = vrot.lane.b32.xlu1 %v7987_v10, %s6917_s23 }
 0x4e1   : > { %2800 = vrot.lane.b32.xlu0 %v7948_v47, %s6917_s23 }
 0x4e4   : > { %2962 = vrot.lane.b32.xlu1 %v7987_v10, %s6920_s26 }
 0x4e5   : > { %2960 = vrot.lane.b32.xlu0 %v7948_v47, %s6920_s26 }
 0x4e8   : > { %3122 = vrot.lane.b32.xlu1 %v7987_v10, %s6919_s25 }
 0x4e9   : > { %3120 = vrot.lane.b32.xlu0 %v7948_v47, %s6919_s25 }
 0x4ec   : > { %2328 = vrot.lane.b32.xlu1 %v7998_v35, %s6915_s22 }
 0x4ed   : > { %2324 = vrot.lane.b32.xlu0 %v7996_v56, %s6915_s22 }
 0x4f0   : > { %2488 = vrot.lane.b32.xlu1 %v7998_v35, %s6918_s24 }
 0x4f1   : > { %2484 = vrot.lane.b32.xlu0 %v7996_v56, %s6918_s24 }
 0x4f4   : > { %2648 = vrot.lane.b32.xlu1 %v7998_v35, %s6914_s21 }
 0x4f5   : > { %2644 = vrot.lane.b32.xlu0 %v7996_v56, %s6914_s21 }
 0x4f8   : > { %2808 = vrot.lane.b32.xlu1 %v7998_v35, %s6917_s23 }
 0x4f9   : > { %2804 = vrot.lane.b32.xlu0 %v7996_v56, %s6917_s23 }
 0x4fc   : > { %2968 = vrot.lane.b32.xlu1 %v7998_v35, %s6920_s26 }
 0x4fd   : > { %2964 = vrot.lane.b32.xlu0 %v7996_v56, %s6920_s26 }
 0x500   : > { %3128 = vrot.lane.b32.xlu1 %v7998_v35, %s6919_s25 }
 0x501   : > { %3124 = vrot.lane.b32.xlu0 %v7996_v56, %s6919_s25 }
 0x504   : > { %2330 = vrot.lane.b32.xlu1 %v8013_v46, %s6915_s22 }
 0x505   : > { %2326 = vrot.lane.b32.xlu0 %v7962_v32, %s6915_s22 }
 0x508   : > { %2490 = vrot.lane.b32.xlu1 %v8013_v46, %s6918_s24 }
 0x509   : > { %2486 = vrot.lane.b32.xlu0 %v7962_v32, %s6918_s24 }
 0x50c   : > { %2650 = vrot.lane.b32.xlu1 %v8013_v46, %s6914_s21 }
 0x50d   : > { %2646 = vrot.lane.b32.xlu0 %v7962_v32, %s6914_s21 }
 0x510   : > { %2810 = vrot.lane.b32.xlu1 %v8013_v46, %s6917_s23 }
 0x511   : > { %2806 = vrot.lane.b32.xlu0 %v7962_v32, %s6917_s23 }
 0x514   : > { %2970 = vrot.lane.b32.xlu1 %v8013_v46, %s6920_s26 }
 0x515   : > { %2966 = vrot.lane.b32.xlu0 %v7962_v32, %s6920_s26 }
 0x516   : > { %v2317_v57 = vpop.permute.xlu1 %2316 }
 0x517   : > { %v2313_v24 = vpop.permute.xlu0 %2312  ;;  %2402 = vst.msk [vmem:[#allocation3 + $0xd0] sm:$0xff] %vm777_vm0, %v2317_v57 }
 0x518   : > { %3130 = vrot.lane.b32.xlu1 %v8013_v46, %s6919_s25 }
 0x519   : > { %3126 = vrot.lane.b32.xlu0 %v7962_v32, %s6919_s25 }
 0x51a   : > { %v2477_v60 = vpop.permute.xlu1 %2476 }
 0x51b   : > { %v2473_v37 = vpop.permute.xlu0 %2472  ;;  %2562 = vst.msk [vmem:[#allocation3 + $0x190] sm:$0xff] %vm777_vm0, %v2477_v60 }
 0x51c   : > { %2334 = vrot.lane.b32.xlu1 %v8028_v41, %s6915_s22 }
 0x51d   : > { %2332 = vrot.lane.b32.xlu0 %v7980_v8, %s6915_s22 }
 0x51e   : > { %v2637_v14 = vpop.permute.xlu1 %2636 }
 0x51f   : > { %v2633_v12 = vpop.permute.xlu0 %2632  ;;  %2722 = vst.msk [vmem:[#allocation3 + $0x250] sm:$0xff] %vm777_vm0, %v2637_v14 }
 0x520   : > { %2494 = vrot.lane.b32.xlu1 %v8028_v41, %s6918_s24 }
 0x521   : > { %2492 = vrot.lane.b32.xlu0 %v7980_v8, %s6918_s24 }
 0x522   : > { %v2797_v59 = vpop.permute.xlu1 %2796 }
 0x523   : > { %v2793_v16 = vpop.permute.xlu0 %2792  ;;  %2882 = vst.msk [vmem:[#allocation3 + $0x310] sm:$0xff] %vm777_vm0, %v2797_v59 }
 0x524   : > { %2654 = vrot.lane.b32.xlu1 %v8028_v41, %s6914_s21 }
 0x525   : > { %2652 = vrot.lane.b32.xlu0 %v7980_v8, %s6914_s21 }
 0x526   : > { %v2957_v6 = vpop.permute.xlu1 %2956 }
 0x527   : > { %v2953_v54 = vpop.permute.xlu0 %2952  ;;  %3042 = vst.msk [vmem:[#allocation3 + $0x3d0] sm:$0xff] %vm777_vm0, %v2957_v6 }
 0x528   : > { %2814 = vrot.lane.b32.xlu1 %v8028_v41, %s6917_s23 }
 0x529   : > { %2812 = vrot.lane.b32.xlu0 %v7980_v8, %s6917_s23 }
 0x52a   : > { %v3117_v3 = vpop.permute.xlu1 %3116 }
 0x52b   : > { %v3113_v48 = vpop.permute.xlu0 %3112  ;;  %3202 = vst.msk [vmem:[#allocation3 + $0x490] sm:$0xff] %vm777_vm0, %v3117_v3 }
 0x52c   : > { %2974 = vrot.lane.b32.xlu1 %v8028_v41, %s6920_s26 }
 0x52d   : > { %2972 = vrot.lane.b32.xlu0 %v7980_v8, %s6920_s26 }
 0x52e   : > { %v2319_v47 = vpop.permute.xlu1 %2318 }
 0x52f   : > { %v2315_v40 = vpop.permute.xlu0 %2314 }
 0x530   : > { %v2360_v42 = vsel %vm381_vm4, %v2313_v24, %v2315_v40  ;;  %v2361_v2 = vsel %vm381_vm4, %v2315_v40, %v2317_v57  ;;  %3134 = vrot.lane.b32.xlu1 %v8028_v41, %s6919_s25  ;;  %v3594_v57 = vld [vmem:[#allocation3 + $0x190] sm:$0xff] }
 0x531   : > { %2400 = vst [vmem:[#allocation3 + $0xc0] sm:$0xff] %v2360_v42  ;;  %3132 = vrot.lane.b32.xlu0 %v7980_v8, %s6919_s25 }
 0x532   : > { %v2479_v45 = vpop.permute.xlu1 %2478 }
 0x533   : > { %v2475_v18 = vpop.permute.xlu0 %2474 }
 0x534   : > { %v2520_v0 = vsel %vm390_vm6, %v2473_v37, %v2475_v18  ;;  %v2521_v49 = vsel %vm390_vm6, %v2475_v18, %v2477_v60  ;;  %2340 = vrot.lane.b32.xlu1 %v8036_v1, %s6915_s22 }
 0x535   : > { %2560 = vst [vmem:[#allocation3 + $0x180] sm:$0xff] %v2520_v0  ;;  %2561 = vst [vmem:[#allocation3 + $0x188] sm:$0xff] %v2521_v49  ;;  %2336 = vrot.lane.b32.xlu0 %v8038_v27, %s6915_s22 }
 0x536   : > { %v2639_v32 = vpop.permute.xlu1 %2638 }
 0x537   : > { %v2635_v50 = vpop.permute.xlu0 %2634 }
 0x538   : > { %v2680_v22 = vsel %vm399_vm3, %v2633_v12, %v2635_v50  ;;  %v2681_v62 = vsel %vm399_vm3, %v2635_v50, %v2637_v14  ;;  %2500 = vrot.lane.b32.xlu1 %v8036_v1, %s6918_s24 }
 0x539   : > { %2720 = vst [vmem:[#allocation3 + $0x240] sm:$0xff] %v2680_v22  ;;  %2721 = vst [vmem:[#allocation3 + $0x248] sm:$0xff] %v2681_v62  ;;  %2496 = vrot.lane.b32.xlu0 %v8038_v27, %s6918_s24 }
 0x53a   : > { %v2799_v39 = vpop.permute.xlu1 %2798 }
 0x53b   : > { %v2795_v33 = vpop.permute.xlu0 %2794 }
 0x53c   : > { %v2840_v8 = vsel %vm408_vm5, %v2793_v16, %v2795_v33  ;;  %v2841_v30 = vsel %vm408_vm5, %v2795_v33, %v2797_v59  ;;  %2660 = vrot.lane.b32.xlu1 %v8036_v1, %s6914_s21  ;;  %v3546_v16 = vld [vmem:[#allocation3 + $0x10] sm:$0xff] }
 0x53d   : > { %2880 = vst [vmem:[#allocation3 + $0x300] sm:$0xff] %v2840_v8  ;;  %2881 = vst [vmem:[#allocation3 + $0x308] sm:$0xff] %v2841_v30  ;;  %2656 = vrot.lane.b32.xlu0 %v8038_v27, %s6914_s21  ;;  %v6599_v59 = vpack.c.bf16 %v3549_v21, %v3546_v16 }
 0x53e   : > { %v8233_v26 = vpop.permute.xlu1 %2958 }
 0x53f   : > { %v2955_v61 = vpop.permute.xlu0 %2954 }
 0x540   : > { %v3000_v13 = vsel %vm417_vm8, %v2953_v54, %v2955_v61  ;;  %v3001_v17 = vsel %vm417_vm8, %v2955_v61, %v2957_v6  ;;  %2820 = vrot.lane.b32.xlu1 %v8036_v1, %s6917_s23 }
 0x541   : > { %3040 = vst [vmem:[#allocation3 + $0x3c0] sm:$0xff] %v3000_v13  ;;  %3041 = vst [vmem:[#allocation3 + $0x3c8] sm:$0xff] %v3001_v17  ;;  %2816 = vrot.lane.b32.xlu0 %v8038_v27, %s6917_s23 }
 0x542   : > { %v8241_v28 = vpop.permute.xlu1 %3118 }
 0x543   : > { %v3115_v56 = vpop.permute.xlu0 %3114 }
 0x544   : > { %v3160_v46 = vsel %vm426_vm7, %v3113_v48, %v3115_v56  ;;  %v3161_v53 = vsel %vm426_vm7, %v3115_v56, %v3117_v3  ;;  %2980 = vrot.lane.b32.xlu1 %v8036_v1, %s6920_s26 }
 0x545   : > { %3200 = vst [vmem:[#allocation3 + $0x480] sm:$0xff] %v3160_v46  ;;  %3201 = vst [vmem:[#allocation3 + $0x488] sm:$0xff] %v3161_v53  ;;  %2976 = vrot.lane.b32.xlu0 %v8038_v27, %s6920_s26 }
 0x546   : > { %v2323_v20 = vpop.permute.xlu1 %2322 }
 0x547   : > { %v2321_v9 = vpop.permute.xlu0 %2320  ;;  %2405 = vst.msk [vmem:[#allocation3 + $0xe8] sm:$0xff] %vm777_vm0, %v2323_v20 }
 0x548   : > { %v2362_v52 = vsel %vm381_vm4, %v2319_v47, %v2321_v9  ;;  %v2363_v25 = vsel %vm381_vm4, %v2321_v9, %v2323_v20  ;;  %3140 = vrot.lane.b32.xlu1 %v8036_v1, %s6919_s25 }
 0x549   : > { %2403 = vst [vmem:[#allocation3 + $0xd8] sm:$0xff] %v2362_v52  ;;  %3136 = vrot.lane.b32.xlu0 %v8038_v27, %s6919_s25  ;;  %v6469_v38 = vpack.c.bf16 %v2363_v25, %v2361_v2  ;;  %v6471_v4 = vpack.c.bf16 %v2362_v52, %v2360_v42 }
 0x54a   : > { %v2483_v44 = vpop.permute.xlu1 %2482 }
 0x54b   : > { %v2481_v5 = vpop.permute.xlu0 %2480  ;;  %6470 = vmatprep.subr.bf16.mxu1 %v6469_v38  ;;  %2565 = vst.msk [vmem:[#allocation3 + $0x1a8] sm:$0xff] %vm777_vm0, %v2483_v44 }
 0x54c   : > { %v2522_v34 = vsel %vm390_vm6, %v2479_v45, %v2481_v5  ;;  %v2523_v36 = vsel %vm390_vm6, %v2481_v5, %v2483_v44  ;;  %6472 = vmatpush1.bf16.msra.mxu1 %v6471_v4  ;;  %2342 = vrot.lane.b32.xlu1 %v8055_v19, %s6915_s22 }
 0x54d   : > { %2563 = vst [vmem:[#allocation3 + $0x198] sm:$0xff] %v2522_v34  ;;  %2564 = vst [vmem:[#allocation3 + $0x1a0] sm:$0xff] %v2523_v36  ;;  %2338 = vrot.lane.b32.xlu0 %v8002_v55, %s6915_s22 }
 0x54e   : > { %v2643_v27 = vpop.permute.xlu1 %2642 }
 0x54f   : > { %v2641_v1 = vpop.permute.xlu0 %2640  ;;  %2725 = vst.msk [vmem:[#allocation3 + $0x268] sm:$0xff] %vm777_vm0, %v2643_v27 }
 0x550   : > { %v2682_v58 = vsel %vm399_vm3, %v2639_v32, %v2641_v1  ;;  %v2683_v51 = vsel %vm399_vm3, %v2641_v1, %v2643_v27  ;;  %2502 = vrot.lane.b32.xlu1 %v8055_v19, %s6918_s24 }
 0x551   : > { %2723 = vst [vmem:[#allocation3 + $0x258] sm:$0xff] %v2682_v58  ;;  %2724 = vst [vmem:[#allocation3 + $0x260] sm:$0xff] %v2683_v51  ;;  %2498 = vrot.lane.b32.xlu0 %v8002_v55, %s6918_s24 }
 0x552   : > { %v2803_v24 = vpop.permute.xlu1 %2802  ;;  %v3597_v37 = vld [vmem:[#allocation3 + $0x1a8] sm:$0xff] }
 0x553   : > { %v2801_v29 = vpop.permute.xlu0 %2800  ;;  %2885 = vst.msk [vmem:[#allocation3 + $0x328] sm:$0xff] %vm777_vm0, %v2803_v24  ;;  %v6597_v14 = vpack.c.bf16 %v3597_v37, %v3594_v57 }
 0x554   : > { %v2842_v60 = vsel %vm408_vm5, %v2799_v39, %v2801_v29  ;;  %v2843_v12 = vsel %vm408_vm5, %v2801_v29, %v2803_v24  ;;  %2662 = vrot.lane.b32.xlu1 %v8055_v19, %s6914_s21 }
 0x555   : > { %2883 = vst [vmem:[#allocation3 + $0x318] sm:$0xff] %v2842_v60  ;;  %2884 = vst [vmem:[#allocation3 + $0x320] sm:$0xff] %v2843_v12  ;;  %2658 = vrot.lane.b32.xlu0 %v8002_v55, %s6914_s21  ;;  %6598 = vmatprep.subr.bf16.mxu0 %v6597_v14 }
 0x556   : > { %6600 = vmatpush3.bf16.msra.mxu0 %v6599_v59  ;;  %v2963_v6 = vpop.permute.xlu1 %2962 }
 0x557   : > { %v2961_v54 = vpop.permute.xlu0 %2960  ;;  %3045 = vst.msk [vmem:[#allocation3 + $0x3e8] sm:$0xff] %vm777_vm0, %v2963_v6 }
 0x558   : > { %v3002_v48 = vsel %vm417_vm8, %v8233_v26, %v2961_v54  ;;  %v3003_v3 = vsel %vm417_vm8, %v2961_v54, %v2963_v6  ;;  %2822 = vrot.lane.b32.xlu1 %v8055_v19, %s6917_s23 }
 0x559   : > { %3043 = vst [vmem:[#allocation3 + $0x3d8] sm:$0xff] %v3002_v48  ;;  %3044 = vst [vmem:[#allocation3 + $0x3e0] sm:$0xff] %v3003_v3  ;;  %2818 = vrot.lane.b32.xlu0 %v8002_v55, %s6917_s23  ;;  %v3555_v48 = vld [vmem:[#allocation3 + $0x58] sm:$0xff] }
 0x55a   : > { %v3123_v47 = vpop.permute.xlu1 %3122 }
 0x55b   : > { %v3121_v40 = vpop.permute.xlu0 %3120  ;;  %3205 = vst.msk [vmem:[#allocation3 + $0x4a8] sm:$0xff] %vm777_vm0, %v3123_v47 }
 0x55c   : > { %v3162_v42 = vsel %vm426_vm7, %v8241_v28, %v3121_v40  ;;  %v3163_v2 = vsel %vm426_vm7, %v3121_v40, %v3123_v47  ;;  %2982 = vrot.lane.b32.xlu1 %v8055_v19, %s6920_s26 }
 0x55d   : > { %3203 = vst [vmem:[#allocation3 + $0x498] sm:$0xff] %v3162_v42  ;;  %3204 = vst [vmem:[#allocation3 + $0x4a0] sm:$0xff] %v3163_v2  ;;  %2978 = vrot.lane.b32.xlu0 %v8002_v55, %s6920_s26 }
 0x55e   : > { %v2329_v45 = vpop.permute.xlu1 %2328 }
 0x55f   : > { %v2325_v18 = vpop.permute.xlu0 %2324  ;;  %2408 = vst.msk [vmem:[#allocation3 + $0x100] sm:$0xff] %vm777_vm0, %v2329_v45 }
 0x560   : > { %3142 = vrot.lane.b32.xlu1 %v8055_v19, %s6919_s25 }
 0x561   : > { %3138 = vrot.lane.b32.xlu0 %v8002_v55, %s6919_s25 }
 0x562   : > { %v2489_v49 = vpop.permute.xlu1 %2488 }
 0x563   : > { %v2485_v0 = vpop.permute.xlu0 %2484  ;;  %2568 = vst.msk [vmem:[#allocation3 + $0x1c0] sm:$0xff] %vm777_vm0, %v2489_v49 }
 0x564   : > { %2346 = vrot.lane.b32.xlu1 %v8061_v11, %s6915_s22 }
 0x565   : > { %2344 = vrot.lane.b32.xlu0 %v8020_v23, %s6915_s22 }
 0x566   : > { %v2649_v32 = vpop.permute.xlu1 %2648 }
 0x567   : > { %v2645_v50 = vpop.permute.xlu0 %2644  ;;  %2728 = vst.msk [vmem:[#allocation3 + $0x280] sm:$0xff] %vm777_vm0, %v2649_v32 }
 0x568   : > { %2506 = vrot.lane.b32.xlu1 %v8061_v11, %s6918_s24 }
 0x569   : > { %2504 = vrot.lane.b32.xlu0 %v8020_v23, %s6918_s24 }
 0x56a   : > { %v2809_v19 = vpop.permute.xlu1 %2808  ;;  %v3600_v47 = vld [vmem:[#allocation3 + $0x1c0] sm:$0xff] }
 0x56b   : > { %v2805_v55 = vpop.permute.xlu0 %2804  ;;  %2888 = vst.msk [vmem:[#allocation3 + $0x340] sm:$0xff] %vm777_vm0, %v2809_v19 }
 0x56c   : > { %2666 = vrot.lane.b32.xlu1 %v8061_v11, %s6914_s21 }
 0x56d   : > { %2664 = vrot.lane.b32.xlu0 %v8020_v23, %s6914_s21 }
 0x56e   : > { %v2969_v62 = vpop.permute.xlu1 %2968 }
 0x56f   : > { %v2965_v22 = vpop.permute.xlu0 %2964  ;;  %3048 = vst.msk [vmem:[#allocation3 + $0x400] sm:$0xff] %vm777_vm0, %v2969_v62 }
 0x570   : > { %2826 = vrot.lane.b32.xlu1 %v8061_v11, %s6917_s23 }
 0x571   : > { %2824 = vrot.lane.b32.xlu0 %v8020_v23, %s6917_s23 }
 0x572   : > { %v3129_v39 = vpop.permute.xlu1 %3128 }
 0x573   : > { %v3125_v33 = vpop.permute.xlu0 %3124  ;;  %3208 = vst.msk [vmem:[#allocation3 + $0x4c0] sm:$0xff] %vm777_vm0, %v3129_v39 }
 0x574   : > { %2986 = vrot.lane.b32.xlu1 %v8061_v11, %s6920_s26 }
 0x575   : > { %2984 = vrot.lane.b32.xlu0 %v8020_v23, %s6920_s26 }
 0x576   : > { %v2331_v30 = vpop.permute.xlu1 %2330 }
 0x577   : > { %v2327_v8 = vpop.permute.xlu0 %2326 }
 0x578   : > { %v2364_v61 = vsel %vm381_vm4, %v2325_v18, %v2327_v8  ;;  %v2365_v26 = vsel %vm381_vm4, %v2327_v8, %v2329_v45  ;;  %3146 = vrot.lane.b32.xlu1 %v8061_v11, %s6919_s25  ;;  %v8424_v8 = vld [vmem:[#allocation2 + $0xa8] sm:$0xff] }
 0x579   : > { %2406 = vst [vmem:[#allocation3 + $0xf0] sm:$0xff] %v2364_v61  ;;  %3144 = vrot.lane.b32.xlu0 %v8020_v23, %s6919_s25 }
 0x57a   : > { %v2491_v17 = vpop.permute.xlu1 %2490 }
 0x57b   : > { %v2487_v13 = vpop.permute.xlu0 %2486 }
 0x57c   : > { %v8330_v56 = vsel %vm390_vm6, %v2485_v0, %v2487_v13  ;;  %v8333_v28 = vsel %vm390_vm6, %v2487_v13, %v2489_v49  ;;  %2352 = vrot.lane.b32.xlu1 %v8074_v7, %s6915_s22  ;;  %v3552_v0 = vld [vmem:[#allocation3 + $0x40] sm:$0xff]  ;;  %v8436_v13 = vld [vmem:[#allocation2 + $0xb0] sm:$0xff] }
 0x57d   : > { %2566 = vst [vmem:[#allocation3 + $0x1b0] sm:$0xff] %v8330_v56  ;;  %2348 = vrot.lane.b32.xlu0 %v8076_v63, %s6915_s22  ;;  %v6603_v49 = vpack.c.bf16 %v3555_v48, %v3552_v0 }
 0x57e   : > { %v2651_v46 = vpop.permute.xlu1 %2650 }
 0x57f   : > { %v2647_v23 = vpop.permute.xlu0 %2646 }
 0x580   : > { %v2684_v11 = vsel %vm399_vm3, %v2645_v50, %v2647_v23  ;;  %v2685_v53 = vsel %vm399_vm3, %v2647_v23, %v2649_v32  ;;  %2512 = vrot.lane.b32.xlu1 %v8074_v7, %s6918_s24 }
 0x581   : > { %2726 = vst [vmem:[#allocation3 + $0x270] sm:$0xff] %v2684_v11  ;;  %2727 = vst [vmem:[#allocation3 + $0x278] sm:$0xff] %v2685_v53  ;;  %2508 = vrot.lane.b32.xlu0 %v8076_v63, %s6918_s24  ;;  %v8445_v11 = vld [vmem:[#allocation2 + $0x8] sm:$0xff]  ;;  %v8447_v53 = vld [vmem:[#allocation2 + $0x10] sm:$0xff] }
 0x582   : > { %v2811_v20 = vpop.permute.xlu1 %2810 }
 0x583   : > { %v2807_v9 = vpop.permute.xlu0 %2806 }
 0x584   : > { %v2844_v52 = vsel %vm408_vm5, %v2805_v55, %v2807_v9  ;;  %v2845_v25 = vsel %vm408_vm5, %v2807_v9, %v2809_v19  ;;  %2672 = vrot.lane.b32.xlu1 %v8074_v7, %s6914_s21 }
 0x585   : > { %2886 = vst [vmem:[#allocation3 + $0x330] sm:$0xff] %v2844_v52  ;;  %2887 = vst [vmem:[#allocation3 + $0x338] sm:$0xff] %v2845_v25  ;;  %2668 = vrot.lane.b32.xlu0 %v8076_v63, %s6914_s21  ;;  %v8454_v52 = vld [vmem:[#allocation2 + $0x20] sm:$0xff] }
 0x586   : > { %v8352_v4 = vpop.permute.xlu1 %2970 }
 0x587   : > { %v2967_v38 = vpop.permute.xlu0 %2966 }
 0x588   : > { %v3004_v5 = vsel %vm417_vm8, %v2965_v22, %v2967_v38  ;;  %v3005_v44 = vsel %vm417_vm8, %v2967_v38, %v2969_v62  ;;  %2832 = vrot.lane.b32.xlu1 %v8074_v7, %s6917_s23  ;;  %v8414_v22 = vld [vmem:[#allocation2 + $0x98] sm:$0xff] }
 0x589   : > { %3046 = vst [vmem:[#allocation3 + $0x3f0] sm:$0xff] %v3004_v5  ;;  %3047 = vst [vmem:[#allocation3 + $0x3f8] sm:$0xff] %v3005_v44  ;;  %2828 = vrot.lane.b32.xlu0 %v8076_v63, %s6917_s23  ;;  %v8463_v5 = vld [vmem:[#allocation2 + $0x18] sm:$0xff] }
 0x58a   : > { %v8360_v36 = vpop.permute.xlu1 %3130 }
 0x58b   : > { %v3127_v34 = vpop.permute.xlu0 %3126 }
 0x58c   : > { %v3164_v1 = vsel %vm426_vm7, %v3125_v33, %v3127_v34  ;;  %v3165_v27 = vsel %vm426_vm7, %v3127_v34, %v3129_v39  ;;  %2992 = vrot.lane.b32.xlu1 %v8074_v7, %s6920_s26 }
 0x58d   : > { %3206 = vst [vmem:[#allocation3 + $0x4b0] sm:$0xff] %v3164_v1  ;;  %3207 = vst [vmem:[#allocation3 + $0x4b8] sm:$0xff] %v3165_v27  ;;  %2988 = vrot.lane.b32.xlu0 %v8076_v63, %s6920_s26 }
 0x58e   : > { %v2335_v51 = vpop.permute.xlu1 %2334 }
 0x58f   : > { %v2333_v58 = vpop.permute.xlu0 %2332  ;;  %2411 = vst.msk [vmem:[#allocation3 + $0x118] sm:$0xff] %vm777_vm0, %v2335_v51 }
 0x590   : > { %v2366_v21 = vsel %vm381_vm4, %v2331_v30, %v2333_v58  ;;  %v2367_v29 = vsel %vm381_vm4, %v2333_v58, %v2335_v51  ;;  %3152 = vrot.lane.b32.xlu1 %v8074_v7, %s6919_s25  ;;  %v8480_v58 = vld [vmem:[#allocation2 + $0x38] sm:$0xff] }
 0x591   : > { %2409 = vst [vmem:[#allocation3 + $0x108] sm:$0xff] %v2366_v21  ;;  %3148 = vrot.lane.b32.xlu0 %v8076_v63, %s6919_s25  ;;  %v6473_v24 = vpack.c.bf16 %v2367_v29, %v2365_v26  ;;  %v6475_v57 = vpack.c.bf16 %v2366_v21, %v2364_v61  ;;  %v8489_v29 = vld [vmem:[#allocation2 + $0x50] sm:$0xff] }
 0x592   : > { %v2495_v60 = vpop.permute.xlu1 %2494 }
 0x593   : > { %v2493_v37 = vpop.permute.xlu0 %2492  ;;  %6474 = vmatprep.subr.bf16.mxu1 %v6473_v24  ;;  %2571 = vst.msk [vmem:[#allocation3 + $0x1d8] sm:$0xff] %vm777_vm0, %v2495_v60  ;;  %v9876_v24 = vlaneseq }
 0x594   : > { %v8376_v12 = vsel %vm390_vm6, %v2491_v17, %v2493_v37  ;;  %v8379_v14 = vsel %vm390_vm6, %v2493_v37, %v2495_v60  ;;  %6476 = vmatpush1.bf16.msra.mxu1 %v6475_v57  ;;  %2354 = vrot.lane.b32.xlu1 %v8085_v43, %s6915_s22  ;;  %v8438_v17 = vld [vmem:[#allocation2 + $0xb8] sm:$0xff] }
 0x595   : > { %2569 = vst [vmem:[#allocation3 + $0x1c8] sm:$0xff] %v8376_v12  ;;  %2350 = vrot.lane.b32.xlu0 %v8047_v31, %s6915_s22  ;;  %v6489_v7 = vpack.c.bf16 %v8379_v14, %v8333_v28  ;;  %v6491_v63 = vpack.c.bf16 %v8376_v12, %v8330_v56  ;;  %v8492_v57 = vshrl.u32 %v9876_v24, 7  ;;  %v3620_v56 = vld [vmem:[#allocation3 + $0x260] sm:$0xff] }
 0x596   : > { %v2655_v59 = vpop.permute.xlu1 %2654 }
 0x597   : > { %v2653_v16 = vpop.permute.xlu0 %2652  ;;  %2731 = vst.msk [vmem:[#allocation3 + $0x298] sm:$0xff] %vm777_vm0, %v2655_v59  ;;  %v3772_v48 = vsub.s32 1, %v8492_v57 }
 0x598   : > { %v8392_v54 = vsel %vm399_vm3, %v2651_v46, %v2653_v16  ;;  %v8395_v6 = vsel %vm399_vm3, %v2653_v16, %v2655_v59  ;;  %2514 = vrot.lane.b32.xlu1 %v8085_v43, %s6918_s24  ;;  %v5864_v16 = vld [vmem:[%s9828_s1 + $0x1e0] ss:$8 sm:$0xf] }
 0x599   : > { %2729 = vst [vmem:[#allocation3 + $0x288] sm:$0xff] %v8392_v54  ;;  %2510 = vrot.lane.b32.xlu0 %v8047_v31, %s6918_s24 }
 0x59a   : > { %v2815_v40 = vpop.permute.xlu1 %2814  ;;  %v3603_v42 = vld [vmem:[#allocation3 + $0x1d8] sm:$0xff] }
 0x59b   : > { %v2813_v3 = vpop.permute.xlu0 %2812  ;;  %2891 = vst.msk [vmem:[#allocation3 + $0x358] sm:$0xff] %vm777_vm0, %v2815_v40  ;;  %v6601_v45 = vpack.c.bf16 %v3603_v42, %v3600_v47 }
 0x59c   : > { %v2846_v2 = vsel %vm408_vm5, %v2811_v20, %v2813_v3  ;;  %v2847_v18 = vsel %vm408_vm5, %v2813_v3, %v2815_v40  ;;  %2674 = vrot.lane.b32.xlu1 %v8085_v43, %s6914_s21 }
 0x59d   : > { %2889 = vst [vmem:[#allocation3 + $0x348] sm:$0xff] %v2846_v2  ;;  %2890 = vst [vmem:[#allocation3 + $0x350] sm:$0xff] %v2847_v18  ;;  %2670 = vrot.lane.b32.xlu0 %v8047_v31, %s6914_s21  ;;  %6602 = vmatprep.subr.bf16.mxu0 %v6601_v45  ;;  %v8523_v18 = vld [vmem:[#allocation2 + $0x30] sm:$0xff]  ;;  %v8525_v45 = vld [vmem:[#allocation2 + $0x48] sm:$0xff] }
 0x59e   : > { %6604 = vmatpush3.bf16.msra.mxu0 %v6603_v49  ;;  %v2975_v32 = vpop.permute.xlu1 %2974 }
 0x59f   : > { %v2973_v50 = vpop.permute.xlu0 %2972  ;;  %3051 = vst.msk [vmem:[#allocation3 + $0x418] sm:$0xff] %vm777_vm0, %v2975_v32 }
 0x5a0   : > { %v3006_v55 = vsel %vm417_vm8, %v8352_v4, %v2973_v50  ;;  %v3007_v19 = vsel %vm417_vm8, %v2973_v50, %v2975_v32  ;;  %2834 = vrot.lane.b32.xlu1 %v8085_v43, %s6917_s23  ;;  %v8461_v4 = vld [vmem:[#allocation2] sm:$0xff] }
 0x5a1   : > { %3049 = vst [vmem:[#allocation3 + $0x408] sm:$0xff] %v3006_v55  ;;  %3050 = vst [vmem:[#allocation3 + $0x410] sm:$0xff] %v3007_v19  ;;  %2830 = vrot.lane.b32.xlu0 %v8414_v22, %s6917_s23 }
 0x5a2   : > { %v3135_v62 = vpop.permute.xlu1 %3134 }
 0x5a3   : > { %v3133_v31 = vpop.permute.xlu0 %3132  ;;  %3211 = vst.msk [vmem:[#allocation3 + $0x4d8] sm:$0xff] %vm777_vm0, %v3135_v62 }
 0x5a4   : > { %v3166_v33 = vsel %vm426_vm7, %v8360_v36, %v3133_v31  ;;  %v3167_v39 = vsel %vm426_vm7, %v3133_v31, %v3135_v62  ;;  %2994 = vrot.lane.b32.xlu1 %v8424_v8, %s6920_s26  ;;  %v8551_v62 = vld [vmem:[#allocation2 + $0x68] sm:$0xff] }
 0x5a5   : > { %3209 = vst [vmem:[#allocation3 + $0x4c8] sm:$0xff] %v3166_v33  ;;  %3210 = vst [vmem:[#allocation3 + $0x4d0] sm:$0xff] %v3167_v39  ;;  %2990 = vrot.lane.b32.xlu0 %v8414_v22, %s6920_s26  ;;  %v8553_v33 = vld [vmem:[#allocation2 + $0x70] sm:$0xff] }
 0x5a6   : > { %v2341_v30 = vpop.permute.xlu1 %2340 }
 0x5a7   : > { %v2337_v43 = vpop.permute.xlu0 %2336  ;;  %2414 = vst.msk [vmem:[#allocation3 + $0x130] sm:$0xff] %vm777_vm0, %v2341_v30 }
 0x5a8   : > { %3154 = vrot.lane.b32.xlu1 %v8424_v8, %s6919_s25 }
 0x5a9   : > { %3150 = vrot.lane.b32.xlu0 %v8414_v22, %s6919_s25 }
 0x5aa   : > { %v2501_v26 = vpop.permute.xlu1 %2500 }
 0x5ab   : > { %v2497_v61 = vpop.permute.xlu0 %2496  ;;  %2574 = vst.msk [vmem:[#allocation3 + $0x1f0] sm:$0xff] %vm777_vm0, %v2501_v26 }
 0x5ac   : > { %2358 = vrot.lane.b32.xlu1 %v8438_v17, %s6915_s22 }
 0x5ad   : > { %2356 = vrot.lane.b32.xlu0 %v8436_v13, %s6915_s22 }
 0x5ae   : > { %v2661_v46 = vpop.permute.xlu1 %2660 }
 0x5af   : > { %v2657_v23 = vpop.permute.xlu0 %2656  ;;  %2734 = vst.msk [vmem:[#allocation3 + $0x2b0] sm:$0xff] %vm777_vm0, %v2661_v46 }
 0x5b0   : > { %3276 = vrot.lane.b32.xlu1 %v8447_v53, %s6922_s28 }
 0x5b1   : > { %3274 = vrot.lane.b32.xlu0 %v8445_v11, %s6922_s28 }
 0x5b2   : > { %v2821_v20 = vpop.permute.xlu1 %2820 }
 0x5b3   : > { %v2817_v9 = vpop.permute.xlu0 %2816  ;;  %2894 = vst.msk [vmem:[#allocation3 + $0x370] sm:$0xff] %vm777_vm0, %v2821_v20 }
 0x5b4   : > { %3282 = vrot.lane.b32.xlu1 %v7987_v10, %s6922_s28 }
 0x5b5   : > { %3280 = vrot.lane.b32.xlu0 %v8454_v52, %s6922_s28 }
 0x5b6   : > { %v2981_v38 = vpop.permute.xlu1 %2980 }
 0x5b7   : > { %v2977_v25 = vpop.permute.xlu0 %2976  ;;  %3054 = vst.msk [vmem:[#allocation3 + $0x430] sm:$0xff] %vm777_vm0, %v2981_v38 }
 0x5b8   : > { %3278 = vrot.lane.b32.xlu1 %v8463_v5, %s6922_s28 }
 0x5b9   : > { %3272 = vrot.lane.b32.xlu0 %v8461_v4, %s6922_s28 }
 0x5ba   : > { %v3141_v34 = vpop.permute.xlu1 %3140 }
 0x5bb   : > { %v3137_v44 = vpop.permute.xlu0 %3136  ;;  %3214 = vst.msk [vmem:[#allocation3 + $0x4f0] sm:$0xff] %vm777_vm0, %v3141_v34 }
 0x5bc   : > { %2518 = vrot.lane.b32.xlu1 %v8438_v17, %s6918_s24 }
 0x5bd   : > { %2516 = vrot.lane.b32.xlu0 %v8436_v13, %s6918_s24 }
 0x5be   : > { %v2343_v36 = vpop.permute.xlu1 %2342 }
 0x5bf   : > { %v2339_v10 = vpop.permute.xlu0 %2338 }
 0x5c0   : > { %v8475_v1 = vsel %vm381_vm4, %v2337_v43, %v2339_v10  ;;  %v8478_v27 = vsel %vm381_vm4, %v2339_v10, %v2341_v30  ;;  %3288 = vrot.lane.b32.xlu1 %v7998_v35, %s6922_s28  ;;  %v5865_v35 = vld [vmem:[%s9828_s1 + $0x1e0] ss:$8 sm:$0x10] }
 0x5c1   : > { %2412 = vst [vmem:[#allocation3 + $0x120] sm:$0xff] %v8475_v1  ;;  %3286 = vrot.lane.b32.xlu0 %v8480_v58, %s6922_s28  ;;  %v8511_v59 = vor.u32 %v5865_v35, %v5864_v16 }
 0x5c2   : > { %v8487_v21 = vpop.permute.xlu1 %2502 }
 0x5c3   : > { %v2499_v51 = vpop.permute.xlu0 %2498  ;;  %v3773_v47 = vrot.slane %v8511_v59, %v3772_v48 }
 0x5c4   : > { %v8495_v37 = vsel %vm390_vm6, %v2497_v61, %v2499_v51  ;;  %v8498_v60 = vsel %vm390_vm6, %v2499_v51, %v2501_v26  ;;  %3294 = vrot.lane.b32.xlu1 %v8028_v41, %s6922_s28  ;;  %v8563_v26 = vld [vmem:[#allocation2 + $0x80] sm:$0xff] }
 0x5c5   : > { %2572 = vst [vmem:[#allocation3 + $0x1e0] sm:$0xff] %v8495_v37  ;;  %3292 = vrot.lane.b32.xlu0 %v8489_v29, %s6922_s28  ;;  %4070 = vmatprep.mubr.f32.mxu0 %v3773_v47 }
 0x5c6   : > { %v8514_v40 = vpop.permute.xlu1 %2662  ;;  %3857 = vmatprep.mubr.f32.mxu1 %v3773_v47  ;;  %v8609_v47 = vld [vmem:[#allocation2 + $0xa0] sm:$0xff] }
 0x5c7   : > { %v2659_v3 = vpop.permute.xlu0 %2658 }
 0x5c8   : > { %v8518_v42 = vsel %vm399_vm3, %v2657_v23, %v2659_v3  ;;  %v8521_v2 = vsel %vm399_vm3, %v2659_v3, %v2661_v46  ;;  %3290 = vrot.lane.b32.xlu1 %v8525_v45, %s6922_s28  ;;  %v8565_v23 = vld [vmem:[#allocation2 + $0x88] sm:$0xff] }
 0x5c9   : > { %2732 = vst [vmem:[#allocation3 + $0x2a0] sm:$0xff] %v8518_v42  ;;  %3284 = vrot.lane.b32.xlu0 %v8523_v18, %s6922_s28 }
 0x5ca   : > { %v8532_v0 = vpop.permute.xlu1 %2822 }
 0x5cb   : > { %v2819_v41 = vpop.permute.xlu0 %2818 }
 0x5cc   : > { %v8535_v49 = vsel %vm408_vm5, %v2817_v9, %v2819_v41  ;;  %v8538_v50 = vsel %vm408_vm5, %v2819_v41, %v2821_v20  ;;  %2678 = vrot.lane.b32.xlu1 %v8438_v17, %s6914_s21 }
 0x5cd   : > { %2892 = vst [vmem:[#allocation3 + $0x360] sm:$0xff] %v8535_v49  ;;  %2676 = vrot.lane.b32.xlu0 %v8436_v13, %s6914_s21 }
 0x5ce   : > { %v8545_v55 = vpop.permute.xlu1 %2982 }
 0x5cf   : > { %v2979_v32 = vpop.permute.xlu0 %2978 }
 0x5d0   : > { %v3008_v19 = vsel %vm417_vm8, %v2977_v25, %v2979_v32  ;;  %v8549_v31 = vsel %vm417_vm8, %v2979_v32, %v2981_v38  ;;  %3300 = vrot.lane.b32.xlu1 %v8553_v33, %s6922_s28  ;;  %v8574_v38 = vld [vmem:[#allocation2 + $0x60] sm:$0xff]  ;;  %v3561_v32 = vld [vmem:[#allocation3 + $0x88] sm:$0xff] }
 0x5d1   : > { %3052 = vst [vmem:[#allocation3 + $0x420] sm:$0xff] %v3008_v19  ;;  %3298 = vrot.lane.b32.xlu0 %v8551_v62, %s6922_s28 }
 0x5d2   : > { %v8559_v43 = vpop.permute.xlu1 %3142 }
 0x5d3   : > { %v3139_v39 = vpop.permute.xlu0 %3138 }
 0x5d4   : > { %v3168_v30 = vsel %vm426_vm7, %v3137_v44, %v3139_v39  ;;  %v3169_v61 = vsel %vm426_vm7, %v3139_v39, %v3141_v34  ;;  %3306 = vrot.lane.b32.xlu1 %v8565_v23, %s6922_s28  ;;  %v8576_v44 = vld [vmem:[#allocation2 + $0x78] sm:$0xff] }
 0x5d5   : > { %3212 = vst [vmem:[#allocation3 + $0x4e0] sm:$0xff] %v3168_v30  ;;  %3213 = vst [vmem:[#allocation3 + $0x4e8] sm:$0xff] %v3169_v61  ;;  %3304 = vrot.lane.b32.xlu0 %v8563_v26, %s6922_s28  ;;  %v3606_v30 = vld [vmem:[#allocation3 + $0x1f0] sm:$0xff] }
 0x5d6   : > { %v2347_v9 = vpop.permute.xlu1 %2346 }
 0x5d7   : > { %v2345_v46 = vpop.permute.xlu0 %2344  ;;  %2417 = vst.msk [vmem:[#allocation3 + $0x148] sm:$0xff] %vm777_vm0, %v2347_v9 }
 0x5d8   : > { %v2370_v20 = vsel %vm381_vm4, %v2343_v36, %v2345_v46  ;;  %v2371_v25 = vsel %vm381_vm4, %v2345_v46, %v2347_v9  ;;  %3302 = vrot.lane.b32.xlu1 %v8576_v44, %s6922_s28 }
 0x5d9   : > { %2415 = vst [vmem:[#allocation3 + $0x138] sm:$0xff] %v2370_v20  ;;  %3296 = vrot.lane.b32.xlu0 %v8574_v38, %s6922_s28  ;;  %v6477_v34 = vpack.c.bf16 %v2371_v25, %v8478_v27  ;;  %v6479_v10 = vpack.c.bf16 %v2370_v20, %v8475_v1  ;;  %v8628_v20 = vld [vmem:[#allocation2 + $0x90] sm:$0xff] }
 0x5da   : > { %v2507_v51 = vpop.permute.xlu1 %2506 }
 0x5db   : > { %v2505_v36 = vpop.permute.xlu0 %2504  ;;  %6478 = vmatprep.subr.bf16.mxu1 %v6477_v34  ;;  %2577 = vst.msk [vmem:[#allocation3 + $0x208] sm:$0xff] %vm777_vm0, %v2507_v51  ;;  %v3558_v34 = vld [vmem:[#allocation3 + $0x70] sm:$0xff] }
 0x5dc   : > { %v8586_v24 = vsel %vm390_vm6, %v8487_v21, %v2505_v36  ;;  %v8589_v16 = vsel %vm390_vm6, %v2505_v36, %v2507_v51  ;;  %6480 = vmatpush1.bf16.msra.mxu1 %v6479_v10  ;;  %2838 = vrot.lane.b32.xlu1 %v8438_v17, %s6917_s23  ;;  %v6607_v10 = vpack.c.bf16 %v3561_v32, %v3558_v34 }
 0x5dd   : > { %2575 = vst [vmem:[#allocation3 + $0x1f8] sm:$0xff] %v8586_v24  ;;  %2836 = vrot.lane.b32.xlu0 %v8436_v13, %s6917_s23  ;;  %v6493_v1 = vpack.c.bf16 %v8589_v16, %v8498_v60  ;;  %v6495_v27 = vpack.c.bf16 %v8586_v24, %v8495_v37  ;;  %v3617_v60 = vld [vmem:[#allocation3 + $0x248] sm:$0xff]  ;;  %v3616_v37 = vld [vmem:[#allocation3 + $0x240] sm:$0xff]  ;;  %v3567_v24 = vld [vmem:[#allocation3 + $0xb8] sm:$0xff] }
 0x5de   : > { %v2667_v35 = vpop.permute.xlu1 %2666 }
 0x5df   : > { %v2665_v21 = vpop.permute.xlu0 %2664  ;;  %2737 = vst.msk [vmem:[#allocation3 + $0x2c8] sm:$0xff] %vm777_vm0, %v2667_v35 }
 0x5e0   : > { %v8603_v48 = vsel %vm399_vm3, %v8514_v40, %v2665_v21  ;;  %v8606_v3 = vsel %vm399_vm3, %v2665_v21, %v2667_v35  ;;  %3312 = vrot.lane.b32.xlu1 %v8609_v47, %s6922_s28 }
 0x5e1   : > { %2735 = vst [vmem:[#allocation3 + $0x2b8] sm:$0xff] %v8603_v48  ;;  %3310 = vrot.lane.b32.xlu0 %v8414_v22, %s6922_s28  ;;  %v6509_v41 = vpack.c.bf16 %v8606_v3, %v8521_v2  ;;  %v6511_v40 = vpack.c.bf16 %v8603_v48, %v8518_v42  ;;  %v3644_v2 = vld [vmem:[#allocation3 + $0x320] sm:$0xff]  ;;  %v3780_v3 = vsub.s32 3, %v8492_v57  ;;  %v3643_v48 = vld [vmem:[#allocation3 + $0x318] sm:$0xff] }
 0x5e2   : > { %v2827_v39 = vpop.permute.xlu1 %2826  ;;  %v3609_v61 = vld [vmem:[#allocation3 + $0x208] sm:$0xff] }
 0x5e3   : > { %v2825_v19 = vpop.permute.xlu0 %2824  ;;  %2897 = vst.msk [vmem:[#allocation3 + $0x388] sm:$0xff] %vm777_vm0, %v2827_v39  ;;  %v6605_v25 = vpack.c.bf16 %v3609_v61, %v3606_v30 }
 0x5e4   : > { %v8622_v46 = vsel %vm408_vm5, %v8532_v0, %v2825_v19  ;;  %v8625_v9 = vsel %vm408_vm5, %v2825_v19, %v2827_v39  ;;  %3314 = vrot.lane.b32.xlu1 %v8424_v8, %s6922_s28 }
 0x5e5   : > { %2895 = vst [vmem:[#allocation3 + $0x378] sm:$0xff] %v8622_v46  ;;  %3308 = vrot.lane.b32.xlu0 %v8628_v20, %s6922_s28  ;;  %6606 = vmatprep.subr.bf16.mxu0 %v6605_v25  ;;  %v3389_v25 = vld [vmem:[#allocation2 + $0x28] sm:$0xff] }
 0x5e6   : > { %6608 = vmatpush3.bf16.msra.mxu0 %v6607_v10  ;;  %v2987_v21 = vpop.permute.xlu1 %2986 }
 0x5e7   : > { %v2985_v51 = vpop.permute.xlu0 %2984  ;;  %3057 = vst.msk [vmem:[#allocation3 + $0x448] sm:$0xff] %vm777_vm0, %v2987_v21 }
 0x5e8   : > { %v8641_v35 = vsel %vm417_vm8, %v8545_v55, %v2985_v51  ;;  %v8644_v19 = vsel %vm417_vm8, %v2985_v51, %v2987_v21  ;;  %3436 = vrot.lane.b32.xlu1 %v8447_v53, %s6921_s27  ;;  %v3392_v21 = vld [vmem:[#allocation2 + $0x40] sm:$0xff] }
 0x5e9   : > { %3055 = vst [vmem:[#allocation3 + $0x438] sm:$0xff] %v8641_v35  ;;  %3434 = vrot.lane.b32.xlu0 %v8445_v11, %s6921_s27 }
 0x5ea   : > { %v3147_v30 = vpop.permute.xlu1 %3146 }
 0x5eb   : > { %v3145_v39 = vpop.permute.xlu0 %3144  ;;  %3217 = vst.msk [vmem:[#allocation3 + $0x508] sm:$0xff] %vm777_vm0, %v3147_v30 }
 0x5ec   : > { %v8656_v55 = vsel %vm426_vm7, %v8559_v43, %v3145_v39  ;;  %v8659_v61 = vsel %vm426_vm7, %v3145_v39, %v3147_v30  ;;  %2998 = vrot.lane.b32.xlu1 %v8438_v17, %s6920_s26  ;;  %v3395_v30 = vld [vmem:[#allocation2 + $0x58] sm:$0xff] }
 0x5ed   : > { %3215 = vst [vmem:[#allocation3 + $0x4f8] sm:$0xff] %v8656_v55  ;;  %2996 = vrot.lane.b32.xlu0 %v8436_v13, %s6920_s26 }
 0x5ee   : > { %v2353_v53 = vpop.permute.xlu1 %2352 }
 0x5ef   : > { %v2349_v11 = vpop.permute.xlu0 %2348  ;;  %2420 = vst.msk [vmem:[#allocation3 + $0x160] sm:$0xff] %vm777_vm0, %v2353_v53 }
 0x5f0   : > { %3442 = vrot.lane.b32.xlu1 %v3389_v25, %s6921_s27 }
 0x5f1   : > { %3440 = vrot.lane.b32.xlu0 %v8454_v52, %s6921_s27 }
 0x5f2   : > { %v2513_v34 = vpop.permute.xlu1 %2512 }
 0x5f3   : > { %v2509_v43 = vpop.permute.xlu0 %2508  ;;  %2580 = vst.msk [vmem:[#allocation3 + $0x220] sm:$0xff] %vm777_vm0, %v2513_v34 }
 0x5f4   : > { %3438 = vrot.lane.b32.xlu1 %v8463_v5, %s6921_s27 }
 0x5f5   : > { %3432 = vrot.lane.b32.xlu0 %v8461_v4, %s6921_s27 }
 0x5f6   : > { %v2673_v51 = vpop.permute.xlu1 %2672 }
 0x5f7   : > { %v2669_v10 = vpop.permute.xlu0 %2668  ;;  %2740 = vst.msk [vmem:[#allocation3 + $0x2e0] sm:$0xff] %vm777_vm0, %v2673_v51 }
 0x5f8   : > { %3448 = vrot.lane.b32.xlu1 %v3392_v21, %s6921_s27 }
 0x5f9   : > { %3446 = vrot.lane.b32.xlu0 %v8480_v58, %s6921_s27 }
 0x5fa   : > { %v2833_v39 = vpop.permute.xlu1 %2832 }
 0x5fb   : > { %v2829_v52 = vpop.permute.xlu0 %2828  ;;  %2900 = vst.msk [vmem:[#allocation3 + $0x3a0] sm:$0xff] %vm777_vm0, %v2833_v39 }
 0x5fc   : > { %3158 = vrot.lane.b32.xlu1 %v8438_v17, %s6919_s25 }
 0x5fd   : > { %3156 = vrot.lane.b32.xlu0 %v8436_v13, %s6919_s25 }
 0x5fe   : > { %v2993_v5 = vpop.permute.xlu1 %2992 }
 0x5ff   : > { %v2989_v4 = vpop.permute.xlu0 %2988  ;;  %3060 = vst.msk [vmem:[#allocation3 + $0x460] sm:$0xff] %vm777_vm0, %v2993_v5 }
 0x600   : > { %3454 = vrot.lane.b32.xlu1 %v3395_v30, %s6921_s27 }
 0x601   : > { %3452 = vrot.lane.b32.xlu0 %v8489_v29, %s6921_s27 }
 0x602   : > { %v3153_v25 = vpop.permute.xlu1 %3152 }
 0x603   : > { %v3149_v58 = vpop.permute.xlu0 %3148  ;;  %3220 = vst.msk [vmem:[#allocation3 + $0x520] sm:$0xff] %vm777_vm0, %v3153_v25 }
 0x604   : > { %3450 = vrot.lane.b32.xlu1 %v8525_v45, %s6921_s27 }
 0x605   : > { %3444 = vrot.lane.b32.xlu0 %v8523_v18, %s6921_s27 }
 0x606   : > { %v2355_v32 = vpop.permute.xlu1 %2354 }
 0x607   : > { %v2351_v21 = vpop.permute.xlu0 %2350 }
 0x608   : > { %v2372_v36 = vsel %vm381_vm4, %v2349_v11, %v2351_v21  ;;  %v2373_v0 = vsel %vm381_vm4, %v2351_v21, %v2353_v53  ;;  %3460 = vrot.lane.b32.xlu1 %v8553_v33, %s6921_s27 }
 0x609   : > { %2418 = vst [vmem:[#allocation3 + $0x150] sm:$0xff] %v2372_v36  ;;  %3458 = vrot.lane.b32.xlu0 %v8551_v62, %s6921_s27 }
 0x60a   : > { %v8700_v30 = vpop.permute.xlu1 %2514 }
 0x60b   : > { %v2511_v29 = vpop.permute.xlu0 %2510 }
 0x60c   : > { %v8703_v18 = vsel %vm390_vm6, %v2509_v43, %v2511_v29  ;;  %v8706_v45 = vsel %vm390_vm6, %v2511_v29, %v2513_v34  ;;  %3318 = vrot.lane.b32.xlu1 %v8438_v17, %s6922_s28 }
 0x60d   : > { %2578 = vst [vmem:[#allocation3 + $0x210] sm:$0xff] %v8703_v18  ;;  %3316 = vrot.lane.b32.xlu0 %v8436_v13, %s6922_s28 }
 0x60e   : > { %v8713_v11 = vpop.permute.xlu1 %2674 }
 0x60f   : > { %v2671_v62 = vpop.permute.xlu0 %2670 }
 0x610   : > { %v8716_v33 = vsel %vm399_vm3, %v2669_v10, %v2671_v62  ;;  %v8719_v53 = vsel %vm399_vm3, %v2671_v62, %v2673_v51  ;;  %3466 = vrot.lane.b32.xlu1 %v8565_v23, %s6921_s27  ;;  %v3593_v62 = vld [vmem:[#allocation3 + $0x188] sm:$0xff] }
 0x611   : > { %2738 = vst [vmem:[#allocation3 + $0x2d0] sm:$0xff] %v8716_v33  ;;  %3464 = vrot.lane.b32.xlu0 %v8563_v26, %s6921_s27 }
 0x612   : > { %v8726_v34 = vpop.permute.xlu1 %2834 }
 0x613   : > { %v2831_v43 = vpop.permute.xlu0 %2830 }
 0x614   : > { %v8729_v21 = vsel %vm408_vm5, %v2829_v52, %v2831_v43  ;;  %v8732_v10 = vsel %vm408_vm5, %v2831_v43, %v2833_v39  ;;  %3462 = vrot.lane.b32.xlu1 %v8576_v44, %s6921_s27  ;;  %v247_v43 = vld [vmem:[%s9830_s3] ss:$0 sm:$0xff] }
 0x615   : > { %2898 = vst [vmem:[#allocation3 + $0x390] sm:$0xff] %v8729_v21  ;;  %3456 = vrot.lane.b32.xlu0 %v8574_v38, %s6921_s27 }
 0x616   : > { %v8739_v51 = vpop.permute.xlu1 %2994 }
 0x617   : > { %v2991_v26 = vpop.permute.xlu0 %2990 }
 0x618   : > { %v8742_v23 = vsel %vm417_vm8, %v2989_v4, %v2991_v26  ;;  %v8745_v52 = vsel %vm417_vm8, %v2991_v26, %v2993_v5  ;;  %3472 = vrot.lane.b32.xlu1 %v8609_v47, %s6921_s27  ;;  %v6926_v47 = vmov 34  }
 0x619   : > { %3058 = vst [vmem:[#allocation3 + $0x450] sm:$0xff] %v8742_v23  ;;  %3470 = vrot.lane.b32.xlu0 %v8414_v22, %s6921_s27 }
 0x61a   : > { %v8752_v39 = vpop.permute.xlu1 %3154  ;;  %6887 = vset.pattern.permute.xlu0 %v6926_v47 }
 0x61b   : > { %v3151_v38 = vpop.permute.xlu0 %3150 }
 0x61c   : > { %v8755_v44 = vsel %vm426_vm7, %v3149_v58, %v3151_v38  ;;  %v8758_v4 = vsel %vm426_vm7, %v3151_v38, %v3153_v25  ;;  %3478 = vrot.lane.b32.xlu1 %v8438_v17, %s6921_s27  ;;  %v3596_v25 = vld [vmem:[#allocation3 + $0x1a0] sm:$0xff] }
 0x61d   : > { %3218 = vst [vmem:[#allocation3 + $0x510] sm:$0xff] %v8755_v44  ;;  %3476 = vrot.lane.b32.xlu0 %v8436_v13, %s6921_s27  ;;  %v6485_v38 = vpack.c.bf16 %v3596_v25, %v3593_v62 }
 0x61e   : > { %v2359_v5 = vpop.permute.xlu1 %2358 }
 0x61f   : > { %v2357_v22 = vpop.permute.xlu0 %2356  ;;  %2423 = vst.msk [vmem:[#allocation3 + $0x178] sm:$0xff] %vm777_vm0, %v2359_v5 }
 0x620   : > { %v2374_v29 = vsel %vm381_vm4, %v2355_v32, %v2357_v22  ;;  %v2375_v58 = vsel %vm381_vm4, %v2357_v22, %v2359_v5  ;;  %3474 = vrot.lane.b32.xlu1 %v8424_v8, %s6921_s27  ;;  %v3595_v22 = vld [vmem:[#allocation3 + $0x198] sm:$0xff]  ;;  %vm9877_vm4 = vcmask 744448   ;;  %v3592_v8 = vld [vmem:[#allocation3 + $0x180] sm:$0xff] }
 0x621   : > { %2421 = vst [vmem:[#allocation3 + $0x168] sm:$0xff] %v2374_v29  ;;  %3468 = vrot.lane.b32.xlu0 %v8628_v20, %s6921_s27  ;;  %v6481_v13 = vpack.c.bf16 %v2375_v58, %v2373_v0  ;;  %v6483_v17 = vpack.c.bf16 %v2374_v29, %v2372_v36  ;;  %v6487_v20 = vpack.c.bf16 %v3595_v22, %v3592_v8  ;;  %vm9878_vm12 = vmmov %vm9877_vm4 }
 0x622   : > { %v3277_v26 = vpop.permute.xlu1 %3276  ;;  %vm9879_vm2 = vmmov %vm9877_vm4 }
 0x623   : > { %v3275_v32 = vpop.permute.xlu0 %3274  ;;  %6482 = vmatprep.subr.bf16.mxu1 %v6481_v13  ;;  %3362 = vst.msk [vmem:[#allocation3 + $0x550] sm:$0xff] %vm777_vm0, %v3277_v26  ;;  %vm9880_vm14 = vmmov %vm9879_vm2 }
 0x624   : > { %v8776_v5 = vsel %vm9877_vm4, %v3275_v32, %v3277_v26  ;;  %6484 = vmatpush1.bf16.msra.mxu1 %v6483_v17  ;;  %vm9881_vm9 = vmmov %vm9879_vm2 }
 0x625   : > { %6486 = vmatprep.subr.bf16.mxu1 %v6485_v38  ;;  %3762 = vperm.xlu0 %6887, %v247_v43   ;;  %v3623_v38 = vld [vmem:[#allocation3 + $0x278] sm:$0xff]  ;;  %vm9883_vm10 = vmmov %vm9879_vm2 }
 0x626   : > { %v3283_v36 = vpop.permute.xlu1 %3282  ;;  %vm9884_vm15 = vmmov %vm9879_vm2 }
 0x627   : > { %v3281_v0 = vpop.permute.xlu0 %3280  ;;  %3365 = vst.msk [vmem:[#allocation3 + $0x568] sm:$0xff] %vm777_vm0, %v3283_v36  ;;  %vm9886_vm11 = vmmov %vm9879_vm2 }
 0x628   : > { %v8780_v47 = vsel %vm9878_vm12, %v3281_v0, %v3283_v36  ;;  %6488 = vmatpush1.bf16.msra.mxu1 %v6487_v20  ;;  %v3621_v20 = vld [vmem:[#allocation3 + $0x268] sm:$0xff]  ;;  %vm9887_vm13 = vmmov %vm9879_vm2  ;;  %vm9893_vm12 = vcmask 736256  }
 0x629   : > { %6490 = vmatprep.subr.bf16.mxu1 %v6489_v7  ;;  %v6565_v29 = vpack.c.bf16 %v8780_v47, %v8776_v5  ;;  %vm9888_vm1 = vmmov %vm9879_vm2 }
 0x62a   : > { %v3279_v25 = vpop.permute.xlu1 %3278  ;;  %vm9892_vm4 = vmmov %vm9888_vm1  ;;  %v3714_v47 = vld [vmem:[#allocation3 + $0x550] sm:$0xff] }
 0x62b   : > { %v3273_v58 = vpop.permute.xlu0 %3272  ;;  %v8792_v17 = vsel %vm9880_vm14, %v3279_v25, %v3281_v0  ;;  %v6505_v0 = vpack.c.bf16 %v8395_v6, %v3623_v38  ;;  %v3564_v25 = vld [vmem:[#allocation3 + $0xa0] sm:$0xff] }
 0x62c   : > { %v8789_v13 = vsel %vm9879_vm2, %v3273_v58, %v3275_v32  ;;  %6492 = vmatpush1.bf16.msra.mxu1 %v6491_v63  ;;  %3363 = vst [vmem:[#allocation3 + $0x558] sm:$0xff] %v8792_v17  ;;  %v6501_v32 = vpack.c.bf16 %v3620_v56, %v3617_v60  ;;  %v3573_v56 = vld [vmem:[#allocation3 + $0xe8] sm:$0xff]  ;;  %v3627_v60 = vld [vmem:[#allocation3 + $0x298] sm:$0xff] }
 0x62d   : > { %3360 = vst [vmem:[#allocation3 + $0x540] sm:$0xff] %v8789_v13  ;;  %6494 = vmatprep.subr.bf16.mxu1 %v6493_v1  ;;  %v6567_v28 = vpack.c.bf16 %v8792_v17, %v8789_v13 }
 0x62e   : > { %v2519_v7 = vpop.permute.xlu1 %2518 }
 0x62f   : > { %v2517_v14 = vpop.permute.xlu0 %2516  ;;  %2583 = vst.msk [vmem:[#allocation3 + $0x238] sm:$0xff] %vm777_vm0, %v2519_v7 }
 0x630   : > { %v2534_v62 = vsel %vm390_vm6, %v8700_v30, %v2517_v14  ;;  %v2535_v43 = vsel %vm390_vm6, %v2517_v14, %v2519_v7  ;;  %6496 = vmatpush1.bf16.msra.mxu1 %v6495_v27  ;;  %v3619_v30 = vld [vmem:[#allocation3 + $0x258] sm:$0xff]  ;;  %vm9882_vm6 = vmmov %vm9879_vm2  ;;  %v6611_v14 = vpack.c.bf16 %v3567_v24, %v3564_v25  ;;  %v3618_v7 = vld [vmem:[#allocation3 + $0x250] sm:$0xff] }
 0x631   : > { %2581 = vst [vmem:[#allocation3 + $0x228] sm:$0xff] %v2534_v62  ;;  %v6497_v12 = vpack.c.bf16 %v2535_v43, %v8706_v45  ;;  %v6499_v63 = vpack.c.bf16 %v2534_v62, %v8703_v18  ;;  %v6503_v27 = vpack.c.bf16 %v3619_v30, %v3616_v37  ;;  %v3612_v18 = vld [vmem:[#allocation3 + $0x220] sm:$0xff]  ;;  %v3622_v62 = vld [vmem:[#allocation3 + $0x270] sm:$0xff]  ;;  %v6613_v43 = vpack.c.bf16 %v3621_v20, %v3618_v7  ;;  %v3641_v7 = vld [vmem:[#allocation3 + $0x308] sm:$0xff] }
 0x632   : > { %v3289_v1 = vpop.permute.xlu1 %3288  ;;  %v3570_v30 = vld [vmem:[#allocation3 + $0xd0] sm:$0xff]  ;;  %v3624_v24 = vld [vmem:[#allocation3 + $0x280] sm:$0xff] }
 0x633   : > { %v3287_v16 = vpop.permute.xlu0 %3286  ;;  %6498 = vmatprep.subr.bf16.mxu1 %v6497_v12  ;;  %3368 = vst.msk [vmem:[#allocation3 + $0x580] sm:$0xff] %vm777_vm0, %v3289_v1  ;;  %v6507_v12 = vpack.c.bf16 %v8392_v54, %v3622_v62  ;;  %v6615_v37 = vpack.c.bf16 %v3573_v56, %v3570_v30  ;;  %v6617_v54 = vpack.c.bf16 %v3627_v60, %v3624_v24  ;;  %v3576_v20 = vld [vmem:[#allocation3 + $0x100] sm:$0xff]  ;;  %v3591_v60 = vld [vmem:[#allocation3 + $0x178] sm:$0xff]  ;;  %v3693_v30 = vld [vmem:[#allocation3 + $0x4a8] sm:$0xff] }
 0x634   : > { %v8814_v26 = vsel %vm9881_vm9, %v3287_v16, %v3289_v1  ;;  %6500 = vmatpush1.bf16.msra.mxu1 %v6499_v63  ;;  %v6517_v56 = vpack.c.bf16 %v3644_v2, %v3641_v7  ;;  %v3647_v24 = vld [vmem:[#allocation3 + $0x338] sm:$0xff] }
 0x635   : > { %6502 = vmatprep.subr.bf16.mxu1 %v6501_v32  ;;  %v3699_v7 = vld [vmem:[#allocation3 + $0x4d8] sm:$0xff] }
 0x636   : > { %v3295_v22 = vpop.permute.xlu1 %3294  ;;  %v3615_v8 = vld [vmem:[#allocation3 + $0x238] sm:$0xff] }
 0x637   : > { %v3293_v45 = vpop.permute.xlu0 %3292  ;;  %3371 = vst.msk [vmem:[#allocation3 + $0x598] sm:$0xff] %vm777_vm0, %v3295_v22  ;;  %v6609_v58 = vpack.c.bf16 %v3615_v8, %v3612_v18 }
 0x638   : > { %v8819_v36 = vsel %vm9882_vm6, %v3293_v45, %v3295_v22  ;;  %6504 = vmatpush1.bf16.msra.mxu1 %v6503_v27  ;;  %v3579_v27 = vld [vmem:[#allocation3 + $0x118] sm:$0xff]  ;;  %v3768_v22 = vsub.s32 0, %v8492_v57 }
 0x639   : > { %6506 = vmatprep.subr.bf16.mxu1 %v6505_v0  ;;  %6610 = vmatprep.subr.bf16.mxu0 %v6609_v58  ;;  %v3630_v0 = vld [vmem:[#allocation3 + $0x2b0] sm:$0xff] }
 0x63a   : > { %6612 = vmatpush3.bf16.msra.mxu0 %v6611_v14  ;;  %v3291_v6 = vpop.permute.xlu1 %3290  ;;  %v3585_v14 = vld [vmem:[#allocation3 + $0x148] sm:$0xff]  ;;  %v3769_v42 = vrot.slane %v8511_v59, %v3768_v22 }
 0x63b   : > { %v3285_v63 = vpop.permute.xlu0 %3284  ;;  %v8827_v32 = vsel %vm9884_vm15, %v3291_v6, %v3293_v45  ;;  %6614 = vmatprep.subr.bf16.mxu0 %v6613_v43  ;;  %v3633_v45 = vld [vmem:[#allocation3 + $0x2c8] sm:$0xff]  ;;  %v3640_v6 = vld [vmem:[#allocation3 + $0x300] sm:$0xff] }
 0x63c   : > { %v8824_v1 = vsel %vm9883_vm10, %v3285_v63, %v3287_v16  ;;  %6508 = vmatpush1.bf16.msra.mxu1 %v6507_v12  ;;  %3369 = vst [vmem:[#allocation3 + $0x588] sm:$0xff] %v8827_v32  ;;  %v6621_v25 = vpack.c.bf16 %v3633_v45, %v3630_v0  ;;  %v3781_v12 = vrot.slane %v8511_v59, %v3780_v3  ;;  %v3649_v22 = vld [vmem:[#allocation3 + $0x348] sm:$0xff]  ;;  %v3690_v3 = vld [vmem:[#allocation3 + $0x490] sm:$0xff] }
 0x63d   : > { %3366 = vst [vmem:[#allocation3 + $0x570] sm:$0xff] %v8824_v1  ;;  %6510 = vmatprep.subr.bf16.mxu1 %v6509_v41  ;;  %v6619_v41 = vpack.c.bf16 %v3579_v27, %v3576_v20  ;;  %v3588_v20 = vld [vmem:[#allocation3 + $0x160] sm:$0xff]  ;;  %v6629_v0 = vpack.c.bf16 %v3693_v30, %v3690_v3  ;;  %v3667_v3 = vld [vmem:[#allocation3 + $0x3d8] sm:$0xff] }
 0x63e   : > { %6616 = vmatpush3.bf16.msra.mxu0 %v6615_v37  ;;  %v2679_v38 = vpop.permute.xlu1 %2678  ;;  %v6519_v37 = vpack.c.bf16 %v3643_v48, %v3640_v6  ;;  %v6627_v2 = vpack.c.bf16 %v3591_v60, %v3588_v20  ;;  %v3642_v48 = vld [vmem:[#allocation3 + $0x310] sm:$0xff] }
 0x63f   : > { %v2677_v16 = vpop.permute.xlu0 %2676  ;;  %2743 = vst.msk [vmem:[#allocation3 + $0x2f8] sm:$0xff] %vm777_vm0, %v2679_v38  ;;  %6618 = vmatprep.subr.bf16.mxu0 %v6617_v54 }
 0x640   : > { %v2694_v18 = vsel %vm399_vm3, %v8713_v11, %v2677_v16  ;;  %v2695_v8 = vsel %vm399_vm3, %v2677_v16, %v2679_v38  ;;  %6512 = vmatpush1.bf16.msra.mxu1 %v6511_v40  ;;  %vm9885_vm3 = vmmov %vm9879_vm2  ;;  %v3636_v16 = vld [vmem:[#allocation3 + $0x2e0] sm:$0xff] }
 0x641   : > { %2741 = vst [vmem:[#allocation3 + $0x2e8] sm:$0xff] %v2694_v18  ;;  %v6513_v58 = vpack.c.bf16 %v2695_v8, %v8719_v53  ;;  %v6515_v11 = vpack.c.bf16 %v2694_v18, %v8716_v33  ;;  %v3582_v53 = vld [vmem:[#allocation3 + $0x130] sm:$0xff]  ;;  %vm9895_vm2 = vmmov %vm9893_vm12 }
 0x642   : > { %6620 = vmatpush3.bf16.msra.mxu0 %v6619_v41  ;;  %v3301_v43 = vpop.permute.xlu1 %3300  ;;  %v3650_v33 = vld [vmem:[#allocation3 + $0x350] sm:$0xff]  ;;  %v6623_v63 = vpack.c.bf16 %v3585_v14, %v3582_v53  ;;  %vm9897_vm14 = vmmov %vm9895_vm2 }
 0x643   : > { %v3299_v62 = vpop.permute.xlu0 %3298  ;;  %6514 = vmatprep.subr.bf16.mxu1 %v6513_v58  ;;  %3374 = vst.msk [vmem:[#allocation3 + $0x5b0] sm:$0xff] %vm777_vm0, %v3301_v43  ;;  %6622 = vmatprep.subr.bf16.mxu0 %v6621_v25  ;;  %v6521_v45 = vpack.c.bf16 %v3650_v33, %v3647_v24  ;;  %v3646_v41 = vld [vmem:[#allocation3 + $0x330] sm:$0xff]  ;;  %v3645_v58 = vld [vmem:[#allocation3 + $0x328] sm:$0xff]  ;;  %v3696_v33 = vld [vmem:[#allocation3 + $0x4c0] sm:$0xff] }
 0x644   : > { %v8847_v40 = vsel %vm9885_vm3, %v3299_v62, %v3301_v43  ;;  %6516 = vmatpush1.bf16.msra.mxu1 %v6515_v11  ;;  %v6523_v11 = vpack.c.bf16 %v3649_v22, %v3646_v41  ;;  %v6631_v53 = vpack.c.bf16 %v3645_v58, %v3642_v48  ;;  %v6633_v6 = vpack.c.bf16 %v3699_v7, %v3696_v33  ;;  %v3665_v22 = vld [vmem:[#allocation3 + $0x3c8] sm:$0xff]  ;;  %v3671_v58 = vld [vmem:[#allocation3 + $0x3f8] sm:$0xff]  ;;  %vm9898_vm9 = vmmov %vm9895_vm2 }
 0x645   : > { %6518 = vmatprep.subr.bf16.mxu1 %v6517_v56  ;;  %v3673_v7 = vld [vmem:[#allocation3 + $0x408] sm:$0xff]  ;;  %vm9899_vm6 = vmmov %vm9895_vm2 }
 0x646   : > { %6624 = vmatpush3.bf16.msra.mxu0 %v6623_v63  ;;  %v3307_v27 = vpop.permute.xlu1 %3306  ;;  %v3639_v38 = vld [vmem:[#allocation3 + $0x2f8] sm:$0xff]  ;;  %v9889_v63 = vpack.c.bf16 %v8625_v9, %v8538_v50  ;;  %v9890_v50 = vpack.c.bf16 %v8622_v46, %v8535_v49  ;;  %v3668_v9 = vld [vmem:[#allocation3 + $0x3e0] sm:$0xff]  ;;  %v3654_v46 = vld [vmem:[#allocation3 + $0x370] sm:$0xff] }
 0x647   : > { %v3305_v54 = vpop.permute.xlu0 %3304  ;;  %3858 = vmatmul.mubr.f32.vlgmr.msra.gmra.mrb[28].mxu1 %v3769_v42  ;;  %3377 = vst.msk [vmem:[#allocation3 + $0x5c8] sm:$0xff] %vm777_vm0, %v3307_v27  ;;  %v6625_v8 = vpack.c.bf16 %v3639_v38, %v3636_v16  ;;  %v3702_v16 = vld [vmem:[#allocation3 + $0x4f0] sm:$0xff]  ;;  %vm9901_vm10 = vmmov %vm9895_vm2 }
 0x648   : > { %v8852_v18 = vsel %vm9886_vm11, %v3305_v54, %v3307_v27  ;;  %6520 = vmatpush1.bf16.msra.mxu1 %v6519_v37  ;;  %3928 = vmatprep.mubr.f32.mxu1 %v3781_v12  ;;  %v3705_v37 = vld [vmem:[#allocation3 + $0x508] sm:$0xff]  ;;  %v3648_v27 = vld [vmem:[#allocation3 + $0x340] sm:$0xff]  ;;  %vm9902_vm15 = vmmov %vm9895_vm2 }
 0x649   : > { %6522 = vmatprep.subr.bf16.mxu1 %v6521_v45  ;;  %6626 = vmatprep.subr.bf16.mxu0 %v6625_v8  ;;  %v6637_v45 = vpack.c.bf16 %v3705_v37, %v3702_v16  ;;  %v6573_v13 = vpack.c.bf16 %v8852_v18, %v8847_v40  ;;  %v3776_v18 = vsub.s32 2, %v8492_v57  ;;  %vm9903_vm3 = vmmov %vm9888_vm1 }
 0x64a   : > { %6628 = vmatpush3.bf16.msra.mxu0 %v6627_v2  ;;  %v3303_v14 = vpop.permute.xlu1 %3302  ;;  %v6533_v2 = vpack.c.bf16 %v3668_v9, %v3665_v22  ;;  %v3692_v9 = vld [vmem:[#allocation3 + $0x4a0] sm:$0xff]  ;;  %vm9904_vm11 = vmmov %vm9888_vm1 }
 0x64b   : > { %v3297_v25 = vpop.permute.xlu0 %3296  ;;  %v8859_v56 = vsel %vm9888_vm1, %v3303_v14, %v3305_v54  ;;  %6630 = vmatprep.subr.bf16.mxu0 %v6629_v0 }
 0x64c   : > { %v8856_v43 = vsel %vm9887_vm13, %v3297_v25, %v3299_v62  ;;  %6524 = vmatpush1.bf16.msra.mxu1 %v6523_v11  ;;  %3375 = vst [vmem:[#allocation3 + $0x5b8] sm:$0xff] %v8859_v56  ;;  %v3651_v62 = vld [vmem:[#allocation3 + $0x358] sm:$0xff]  ;;  %vm9905_vm13 = vmmov %vm9895_vm2 }
 0x64d   : > { %3372 = vst [vmem:[#allocation3 + $0x5a0] sm:$0xff] %v8856_v43  ;;  %6526 = vmatprep.subr.bf16.mxu1 %v9889_v63  ;;  %4071 = vmatmul.mubr.f32.vlgmr.msra.gmra.mrb[24].mxu0 %v3769_v42  ;;  %v6635_v42 = vpack.c.bf16 %v3651_v62, %v3648_v27 }
 0x64e   : > { %6632 = vmatpush3.bf16.msra.mxu0 %v6631_v53  ;;  %v2839_v30 = vpop.permute.xlu1 %2838  ;;  %4140 = vmatprep.mubr.f32.mxu0 %v3781_v12  ;;  %v3670_v53 = vld [vmem:[#allocation3 + $0x3f0] sm:$0xff]  ;;  %v3729_v40 = vld [vmem:[#allocation3 + $0x5c8] sm:$0xff] }
 0x64f   : > { %v2837_v60 = vpop.permute.xlu0 %2836  ;;  %2903 = vst.msk [vmem:[#allocation3 + $0x3b8] sm:$0xff] %vm777_vm0, %v2839_v30  ;;  %6634 = vmatprep.subr.bf16.mxu0 %v6633_v6  ;;  %v6539_v33 = vpack.c.bf16 %v3673_v7, %v3670_v53  ;;  %v3700_v7 = vld [vmem:[#allocation3 + $0x4e0] sm:$0xff] }
 0x650   : > { %v2854_v24 = vsel %vm408_vm5, %v8726_v34, %v2837_v60  ;;  %v2855_v54 = vsel %vm408_vm5, %v2837_v60, %v2839_v30  ;;  %6528 = vmatpush1.bf16.msra.mxu1 %v9890_v50  ;;  %v3657_v34 = vld [vmem:[#allocation3 + $0x388] sm:$0xff]  ;;  %vm9891_vm5 = vmmov %vm9888_vm1  ;;  %v9894_v60 = vpack.c.bf16 %v8644_v19, %v8549_v31  ;;  %v3676_v30 = vld [vmem:[#allocation3 + $0x420] sm:$0xff]  ;;  %v6559_v53 = vpack.c.bf16 %v8656_v55, %v3700_v7 }
 0x651   : > { %2901 = vst [vmem:[#allocation3 + $0x3a8] sm:$0xff] %v2854_v24  ;;  %v6529_v38 = vpack.c.bf16 %v2855_v54, %v8732_v10  ;;  %v6531_v12 = vpack.c.bf16 %v2854_v24, %v8729_v21  ;;  %v3674_v10 = vld [vmem:[#allocation3 + $0x410] sm:$0xff]  ;;  %v6639_v41 = vpack.c.bf16 %v3657_v34, %v3654_v46  ;;  %v3664_v21 = vld [vmem:[#allocation3 + $0x3c0] sm:$0xff]  ;;  %v6543_v37 = vpack.c.bf16 %v8641_v35, %v3676_v30  ;;  %v3689_v19 = vld [vmem:[#allocation3 + $0x488] sm:$0xff] }
 0x652   : > { %6636 = vmatpush3.bf16.msra.mxu0 %v6635_v42  ;;  %v3313_v20 = vpop.permute.xlu1 %3312  ;;  %v6535_v0 = vpack.c.bf16 %v3667_v3, %v3664_v21  ;;  %v6537_v14 = vpack.c.bf16 %v3674_v10, %v3671_v58  ;;  %v6549_v35 = vpack.c.bf16 %v3692_v9, %v3689_v19  ;;  %v3688_v34 = vld [vmem:[#allocation3 + $0x480] sm:$0xff]  ;;  %v3694_v10 = vld [vmem:[#allocation3 + $0x4b0] sm:$0xff]  ;;  %v3701_v21 = vld [vmem:[#allocation3 + $0x4e8] sm:$0xff]  ;;  %v3777_v7 = vrot.slane %v8511_v59, %v3776_v18 }
 0x653   : > { %v3311_v8 = vpop.permute.xlu0 %3310  ;;  %6530 = vmatprep.subr.bf16.mxu1 %v6529_v38  ;;  %3380 = vst.msk [vmem:[#allocation3 + $0x5e0] sm:$0xff] %vm777_vm0, %v3313_v20  ;;  %6638 = vmatprep.subr.bf16.mxu0 %v6637_v45  ;;  %v3717_v9 = vld [vmem:[#allocation3 + $0x568] sm:$0xff]  ;;  %vm9906_vm1 = vmmov %vm9895_vm2 }
 0x654   : > { %v8876_v49 = vsel %vm9891_vm5, %v3311_v8, %v3313_v20  ;;  %6532 = vmatpush1.bf16.msra.mxu1 %v6531_v12  ;;  %v3691_v12 = vld [vmem:[#allocation3 + $0x498] sm:$0xff]  ;;  %vm9907_vm5 = vmmov %vm9906_vm1  ;;  %v4220_v18 = vld [vmem:[%s9829_s2 + $0x8] sm:$0xff] }
 0x655   : > { %6534 = vmatprep.subr.bf16.mxu1 %v6533_v2  ;;  %v6551_v22 = vpack.c.bf16 %v3691_v12, %v3688_v34  ;;  %v3697_v2 = vld [vmem:[#allocation3 + $0x4c8] sm:$0xff]  ;;  %v3723_v12 = vld [vmem:[#allocation3 + $0x598] sm:$0xff]  ;;  %v3720_v34 = vld [vmem:[#allocation3 + $0x580] sm:$0xff] }
 0x656   : > { %6640 = vmatpush3.bf16.msra.mxu0 %v6639_v41  ;;  %v8879_v25 = vpop.permute.xlu1 %3314  ;;  %v6555_v41 = vpack.c.bf16 %v3697_v2, %v3694_v10  ;;  %v3672_v2 = vld [vmem:[#allocation3 + $0x400] sm:$0xff] }
 0x657   : > { %v3309_v11 = vpop.permute.xlu0 %3308 }
 0x658   : > { %v8882_v48 = vsel %vm9892_vm4, %v3309_v11, %v3311_v8  ;;  %6536 = vmatpush1.bf16.msra.mxu1 %v6535_v0  ;;  %v3695_v8 = vld [vmem:[#allocation3 + $0x4b8] sm:$0xff]  ;;  %v6557_v11 = vpack.c.bf16 %v8659_v61, %v3701_v21  ;;  %vm9908_vm4 = vmmov %vm9906_vm1 }
 0x659   : > { %3378 = vst [vmem:[#allocation3 + $0x5d0] sm:$0xff] %v8882_v48  ;;  %6538 = vmatprep.subr.bf16.mxu1 %v6537_v14 }
 0x65a   : > { %v3437_v6 = vpop.permute.xlu1 %3436 }
 0x65b   : > { %v3435_v63 = vpop.permute.xlu0 %3434  ;;  %3522 = vst.msk [vmem:[#allocation3 + $0x610] sm:$0xff] %vm777_vm0, %v3437_v6 }
 0x65c   : > { %v8886_v62 = vsel %vm9893_vm12, %v3435_v63, %v3437_v6  ;;  %6540 = vmatpush1.bf16.msra.mxu1 %v6539_v33  ;;  %vm6928_vm12 = vmmov 0  }
 0x65d   : > { %6542 = vmatprep.subr.bf16.mxu1 %v9894_v60 }
 0x65e   : > { %v2999_v54 = vpop.permute.xlu1 %2998 }
 0x65f   : > { %v2997_v24 = vpop.permute.xlu0 %2996  ;;  %3063 = vst.msk [vmem:[#allocation3 + $0x478] sm:$0xff] %vm777_vm0, %v2999_v54 }
 0x660   : > { %v3014_v27 = vsel %vm417_vm8, %v8739_v51, %v2997_v24  ;;  %v3015_v50 = vsel %vm417_vm8, %v2997_v24, %v2999_v54  ;;  %6544 = vmatpush1.bf16.msra.mxu1 %v6543_v37  ;;  %v3698_v51 = vld [vmem:[#allocation3 + $0x4d0] sm:$0xff]  ;;  %vm9896_vm8 = vmmov %vm9895_vm2 }
 0x661   : > { %3061 = vst [vmem:[#allocation3 + $0x468] sm:$0xff] %v3014_v27  ;;  %v6545_v42 = vpack.c.bf16 %v3015_v50, %v8745_v52  ;;  %v6547_v31 = vpack.c.bf16 %v3014_v27, %v8742_v23  ;;  %v6553_v23 = vpack.c.bf16 %v3698_v51, %v3695_v8  ;;  %v3708_v50 = vld [vmem:[#allocation3 + $0x520] sm:$0xff] }
 0x662   : > { %v3443_v38 = vpop.permute.xlu1 %3442 }
 0x663   : > { %v3441_v16 = vpop.permute.xlu0 %3440  ;;  %6546 = vmatprep.subr.bf16.mxu1 %v6545_v42  ;;  %3525 = vst.msk [vmem:[#allocation3 + $0x628] sm:$0xff] %vm777_vm0, %v3443_v38 }
 0x664   : > { %v8900_v45 = vsel %vm9895_vm2, %v3441_v16, %v3443_v38  ;;  %6548 = vmatpush1.bf16.msra.mxu1 %v6547_v31 }
 0x665   : > { %6550 = vmatprep.subr.bf16.mxu1 %v6549_v35 }
 0x666   : > { %v3439_v20 = vpop.permute.xlu1 %3438 }
 0x667   : > { %v3433_v52 = vpop.permute.xlu0 %3432  ;;  %v8907_v46 = vsel %vm9897_vm14, %v3439_v20, %v3441_v16  ;;  %v3660_v16 = vld [vmem:[#allocation3 + $0x3a0] sm:$0xff]  ;;  %vm9911_vm14 = vmmov %vm9906_vm1 }
 0x668   : > { %v8904_v3 = vsel %vm9896_vm8, %v3433_v52, %v3435_v63  ;;  %6552 = vmatpush1.bf16.msra.mxu1 %v6551_v22  ;;  %3523 = vst [vmem:[#allocation3 + $0x618] sm:$0xff] %v8907_v46  ;;  %v6649_v22 = vpack.c.bf16 %v3723_v12, %v3720_v34  ;;  %vm9910_vm8 = vmmov %vm9906_vm1 }
 0x669   : > { %3520 = vst [vmem:[#allocation3 + $0x600] sm:$0xff] %v8904_v3  ;;  %6554 = vmatprep.subr.bf16.mxu1 %v6553_v23 }
 0x66a   : > { %v3449_v58 = vpop.permute.xlu1 %3448 }
 0x66b   : > { %v3447_v0 = vpop.permute.xlu0 %3446  ;;  %3528 = vst.msk [vmem:[#allocation3 + $0x640] sm:$0xff] %vm777_vm0, %v3449_v58 }
 0x66c   : > { %v8913_v14 = vsel %vm9898_vm9, %v3447_v0, %v3449_v58  ;;  %6556 = vmatpush1.bf16.msra.mxu1 %v6555_v41  ;;  %v3726_v41 = vld [vmem:[#allocation3 + $0x5b0] sm:$0xff]  ;;  %vm3790_vm9 = vcmask 523264  }
 0x66d   : > { %6558 = vmatprep.subr.bf16.mxu1 %v6557_v11  ;;  %v6653_v21 = vpack.c.bf16 %v3729_v40, %v3726_v41  ;;  %v4221_v41 = vld [vmem:[%s9829_s2 + $0x10] sm:$0xff] }
 0x66e   : > { %v3159_v63 = vpop.permute.xlu1 %3158 }
 0x66f   : > { %v3157_v33 = vpop.permute.xlu0 %3156  ;;  %3223 = vst.msk [vmem:[#allocation3 + $0x538] sm:$0xff] %vm777_vm0, %v3159_v63 }
 0x670   : > { %v3174_v6 = vsel %vm426_vm7, %v8752_v39, %v3157_v33  ;;  %v3175_v60 = vsel %vm426_vm7, %v3157_v33, %v3159_v63  ;;  %6560 = vmatpush1.bf16.msra.mxu1 %v6559_v53  ;;  %v3663_v39 = vld [vmem:[#allocation3 + $0x3b8] sm:$0xff]  ;;  %vm9900_vm7 = vmmov %vm9895_vm2  ;;  %v3678_v33 = vld [vmem:[#allocation3 + $0x430] sm:$0xff]  ;;  %v6583_v63 = vpack.c.bf16 %v8907_v46, %v8904_v3 }
 0x671   : > { %3221 = vst [vmem:[#allocation3 + $0x528] sm:$0xff] %v3174_v6  ;;  %v6561_v61 = vpack.c.bf16 %v3175_v60, %v8758_v4  ;;  %v6563_v30 = vpack.c.bf16 %v3174_v6, %v8755_v44  ;;  %v6569_v44 = vpack.c.bf16 %v8819_v36, %v8814_v26  ;;  %v6643_v5 = vpack.c.bf16 %v3663_v39, %v3660_v16  ;;  %v3669_v26 = vld [vmem:[#allocation3 + $0x3e8] sm:$0xff]  ;;  %v3684_v39 = vld [vmem:[#allocation3 + $0x460] sm:$0xff]  ;;  %vm9909_vm2 = vmmov %vm9906_vm1 }
 0x672   : > { %v3455_v24 = vpop.permute.xlu1 %3454  ;;  %v6571_v36 = vpack.c.bf16 %v8827_v32, %v8824_v1  ;;  %v3675_v1 = vld [vmem:[#allocation3 + $0x418] sm:$0xff]  ;;  %v6575_v32 = vpack.c.bf16 %v8859_v56, %v8856_v43  ;;  %v3741_v46 = vld [vmem:[#allocation3 + $0x628] sm:$0xff] }
 0x673   : > { %v3453_v37 = vpop.permute.xlu0 %3452  ;;  %6562 = vmatprep.subr.bf16.mxu1 %v6561_v61  ;;  %3531 = vst.msk [vmem:[#allocation3 + $0x658] sm:$0xff] %vm777_vm0, %v3455_v24  ;;  %v6651_v10 = vpack.c.bf16 %v3675_v1, %v3672_v2  ;;  %v3732_v61 = vld [vmem:[#allocation3 + $0x5e0] sm:$0xff] }
 0x674   : > { %v8924_v55 = vsel %vm9899_vm6, %v3453_v37, %v3455_v24  ;;  %6564 = vmatpush1.bf16.msra.mxu1 %v6563_v30  ;;  %vm339_vm6 = vcmask 204800  }
 0x675   : > { %6566 = vmatprep.subr.bf16.mxu1 %v6565_v29  ;;  %v6645_v29 = vpack.c.bf16 %v3717_v9, %v3714_v47  ;;  %v3738_v9 = vld [vmem:[#allocation3 + $0x610] sm:$0xff]  ;;  %v3744_v47 = vld [vmem:[#allocation3 + $0x640] sm:$0xff]  ;;  %340 = vst.msk [vmem:[#allocation5] sm:$0x1] %vm339_vm6, %v9873_v15  ;;  %vm343_vm6 = vcmask 211968  }
 0x676   : > { %v3451_v27 = vpop.permute.xlu1 %3450  ;;  %v3711_v4 = vld [vmem:[#allocation3 + $0x538] sm:$0xff]  ;;  %345 = vst.msk [vmem:[#allocation6 + $0x10] sm:$0xff] %vm343_vm6, %v9873_v15  ;;  %344 = vst.msk [vmem:[#allocation6] sm:$0xff] %vm343_vm6, %v9873_v15 }
 0x677   : > { %v3445_v54 = vpop.permute.xlu0 %3444  ;;  %v8936_v31 = vsel %vm9901_vm10, %v3451_v27, %v3453_v37  ;;  %v6641_v19 = vpack.c.bf16 %v3711_v4, %v3708_v50  ;;  %v6927_v4 = vmov 0.0|0.0   ;;  %vm4402_vm10 = vcmask 794832   ;;  %346 = vst.msk [vmem:[#allocation6 + $0x20] sm:$0xff] %vm343_vm6, %v9873_v15  ;;  %347 = vst.msk [vmem:[#allocation6 + $0x30] sm:$0xff] %vm343_vm6, %v9873_v15 }
 0x678   : > { %v8933_v42 = vsel %vm9900_vm7, %v3445_v54, %v3447_v0  ;;  %6568 = vmatpush1.bf16.msra.mxu1 %v6567_v28  ;;  %3529 = vst [vmem:[#allocation3 + $0x648] sm:$0xff] %v8936_v31  ;;  %v3666_v28 = vld [vmem:[#allocation3 + $0x3d0] sm:$0xff]  ;;  %v3681_v0 = vld [vmem:[#allocation3 + $0x448] sm:$0xff]  ;;  %vm341_vm7 = vcmask 1041168   ;;  %348 = vst.msk [vmem:[#allocation6 + $0x40] sm:$0xff] %vm343_vm6, %v9873_v15 }
 0x679   : > { %3526 = vst [vmem:[#allocation3 + $0x630] sm:$0xff] %v8933_v42  ;;  %6570 = vmatprep.subr.bf16.mxu1 %v6569_v44  ;;  %6642 = vmatprep.subr.bf16.mxu0 %v6641_v19  ;;  %v6647_v51 = vpack.c.bf16 %v3669_v26, %v3666_v28  ;;  %v6587_v54 = vpack.c.bf16 %v8936_v31, %v8933_v42  ;;  %342 = vst.msk [vmem:[#allocation5] sm:$0x1] %vm341_vm7, %v9873_v15  ;;  %vm352_vm7 = vcmask 1048528  }
 0x67a   : > { %6644 = vmatpush3.bf16.msra.mxu0 %v6643_v5  ;;  %v3461_v35 = vpop.permute.xlu1 %3460  ;;  %v6662_v44 = vpack.c.bf16 %v3741_v46, %v3738_v9  ;;  %v3747_v19 = vld [vmem:[#allocation3 + $0x658] sm:$0xff]  ;;  %v4231_v9 = vld [vmem:[%s9829_s2 + $0x60] sm:$0xff]  ;;  %349 = vst.msk [vmem:[#allocation6 + $0x50] sm:$0xff] %vm343_vm6, %v9873_v15  ;;  %350 = vst.msk [vmem:[#allocation6 + $0x60] sm:$0xff] %vm343_vm6, %v9873_v15 }
 0x67b   : > { %v3459_v38 = vpop.permute.xlu0 %3458  ;;  %3534 = vst.msk [vmem:[#allocation3 + $0x670] sm:$0xff] %vm777_vm0, %v3461_v35  ;;  %6646 = vmatprep.subr.bf16.mxu0 %v6645_v29  ;;  %v6665_v29 = vpack.c.bf16 %v3747_v19, %v3744_v47  ;;  %v4230_v46 = vld [vmem:[%s9829_s2 + $0x58] sm:$0xff] }
 0x67c   : > { %v8948_v17 = vsel %vm9902_vm15, %v3459_v38, %v3461_v35  ;;  %6572 = vmatpush1.bf16.msra.mxu1 %v6571_v36  ;;  %v4234_v47 = vld [vmem:[%s9829_s2 + $0x78] sm:$0xff]  ;;  %vm4405_vm15 = vcmask 778240   ;;  %351 = vst.msk [vmem:[#allocation6 + $0x70] sm:$0xff] %vm343_vm6, %v9873_v15  ;;  %vm5341_vm6 = vcmask 834560  }
 0x67d   : > { %6574 = vmatprep.subr.bf16.mxu1 %v6573_v13  ;;  %356 = vst.msk [vmem:[#allocation6 + $0x10] sm:$0xff] %vm352_vm7, %v9873_v15  ;;  %353 = vst.msk [vmem:[#allocation6] sm:$0xff] %vm352_vm7, %v9873_v15 }
 0x67e   : > { %6648 = vmatpush3.bf16.msra.mxu0 %v6647_v51  ;;  %v3319_v52 = vpop.permute.xlu1 %3318  ;;  %358 = vst.msk [vmem:[#allocation6 + $0x20] sm:$0xff] %vm352_vm7, %v9873_v15  ;;  %360 = vst.msk [vmem:[#allocation6 + $0x30] sm:$0xff] %vm352_vm7, %v9873_v15 }
 0x67f   : > { %v3317_v8 = vpop.permute.xlu0 %3316  ;;  %3383 = vst.msk [vmem:[#allocation3 + $0x5f8] sm:$0xff] %vm777_vm0, %v3319_v52  ;;  %6650 = vmatprep.subr.bf16.mxu0 %v6649_v22 }
 0x680   : > { %v3334_v20 = vsel %vm9903_vm3, %v8879_v25, %v3317_v8  ;;  %v3335_v23 = vsel %vm9904_vm11, %v3317_v8, %v3319_v52  ;;  %6576 = vmatpush1.bf16.msra.mxu1 %v6575_v32  ;;  %v6581_v25 = vpack.c.bf16 %v8900_v45, %v8886_v62  ;;  %v6585_v45 = vpack.c.bf16 %v8924_v55, %v8913_v14  ;;  %v4235_v8 = vld [vmem:[%s9829_s2 + $0x80] sm:$0xff] }
 0x681   : > { %3381 = vst [vmem:[#allocation3 + $0x5e8] sm:$0xff] %v3334_v20  ;;  %v6577_v43 = vpack.c.bf16 %v3335_v23, %v8876_v49  ;;  %v6579_v56 = vpack.c.bf16 %v3334_v20, %v8882_v48  ;;  %v6655_v49 = vpack.c.bf16 %v3681_v0, %v3678_v33  ;;  %v3687_v48 = vld [vmem:[#allocation3 + $0x478] sm:$0xff]  ;;  %v4219_v52 = vld [vmem:[%s9829_s2] sm:$0xff]  ;;  %v4237_v20 = vld [vmem:[%s9829_s2 + $0x90] sm:$0xff]  ;;  %vm354_vm3 = vcmask 195584  }
 0x682   : > { %6652 = vmatpush3.bf16.msra.mxu0 %v6651_v10  ;;  %v3467_v11 = vpop.permute.xlu1 %3466  ;;  %v6659_v3 = vpack.c.bf16 %v3687_v48, %v3684_v39  ;;  %v3750_v28 = vld [vmem:[#allocation3 + $0x670] sm:$0xff]  ;;  %v4238_v23 = vld [vmem:[%s9829_s2 + $0x98] sm:$0xff]  ;;  %v6675_v2 = vpack.c.bf16 %v4220_v18, %v4219_v52  ;;  %v4240_v0 = vld [vmem:[%s9829_s2 + $0xa8] sm:$0xff]  ;;  %355 = vst.msk [vmem:[#allocation6 + $0x8] sm:$0xff] %vm354_vm3, %v9873_v15  ;;  %vm9912_vm11 = vcmask 130048  }
 0x683   : > { %v3465_v58 = vpop.permute.xlu0 %3464  ;;  %6578 = vmatprep.subr.bf16.mxu1 %v6577_v43  ;;  %3537 = vst.msk [vmem:[#allocation3 + $0x688] sm:$0xff] %vm777_vm0, %v3467_v11  ;;  %6654 = vmatprep.subr.bf16.mxu0 %v6653_v21  ;;  %v6677_v10 = vpack.c.bf16 %v4238_v23, %v4237_v20  ;;  %v4222_v43 = vld [vmem:[%s9829_s2 + $0x18] sm:$0xff]  ;;  %v4239_v21 = vld [vmem:[%s9829_s2 + $0xa0] sm:$0xff]  ;;  %v4225_v48 = vld [vmem:[%s9829_s2 + $0x30] sm:$0xff] }
 0x684   : > { %v3491_v53 = vsel %vm9905_vm13, %v3465_v58, %v3467_v11  ;;  %6580 = vmatpush1.bf16.msra.mxu1 %v6579_v56  ;;  %v6679_v56 = vpack.c.bf16 %v4222_v43, %v4221_v41  ;;  %v4223_v11 = vld [vmem:[%s9829_s2 + $0x20] sm:$0xff]  ;;  %v4242_v33 = vld [vmem:[%s9829_s2 + $0xb8] sm:$0xff]  ;;  %357 = vst.msk [vmem:[#allocation6 + $0x18] sm:$0xff] %vm354_vm3, %v9873_v15  ;;  %359 = vst.msk [vmem:[#allocation6 + $0x28] sm:$0xff] %vm354_vm3, %v9873_v15 }
 0x685   : > { %6582 = vmatprep.subr.bf16.mxu1 %v6581_v25  ;;  %v6589_v55 = vpack.c.bf16 %v3491_v53, %v8948_v17  ;;  %v4224_v25 = vld [vmem:[%s9829_s2 + $0x28] sm:$0xff]  ;;  %v4241_v53 = vld [vmem:[%s9829_s2 + $0xb0] sm:$0xff]  ;;  %v4246_v39 = vld [vmem:[%s9829_s2 + $0xd8] sm:$0xff]  ;;  %361 = vst.msk [vmem:[#allocation6 + $0x38] sm:$0xff] %vm354_vm3, %v9873_v15 }
 0x686   : > { %6656 = vmatpush3.bf16.msra.mxu0 %v6655_v49  ;;  %v3463_v60 = vpop.permute.xlu1 %3462  ;;  %v3735_v62 = vld [vmem:[#allocation3 + $0x5f8] sm:$0xff]  ;;  %v6685_v49 = vpack.c.bf16 %v4242_v33, %v4241_v53  ;;  %363 = vst.msk [vmem:[#allocation6 + $0x48] sm:$0xff] %vm354_vm3, %v9873_v15  ;;  %365 = vst.msk [vmem:[#allocation6 + $0x58] sm:$0xff] %vm354_vm3, %v9873_v15 }
 0x687   : > { %v3457_v6 = vpop.permute.xlu0 %3456  ;;  %3929 = vmatmul.mubr.f32.vlgmr.msra.gmra.mrb[28].mxu1 %v3777_v7  ;;  %v3490_v37 = vsel %vm9907_vm5, %v3463_v60, %v3465_v58  ;;  %v6657_v24 = vpack.c.bf16 %v3735_v62, %v3732_v61  ;;  %v6681_v58 = vpack.c.bf16 %v4240_v0, %v4239_v21  ;;  %v4243_v60 = vld [vmem:[%s9829_s2 + $0xc0] sm:$0xff]  ;;  %v4244_v61 = vld [vmem:[%s9829_s2 + $0xc8] sm:$0xff]  ;;  %367 = vst.msk [vmem:[#allocation6 + $0x68] sm:$0xff] %vm354_vm3, %v9873_v15  ;;  %369 = vst.msk [vmem:[#allocation6 + $0x78] sm:$0xff] %vm354_vm3, %v9873_v15 }
 0x688   : > { %v3488_v30 = vsel %vm9906_vm1, %v3457_v6, %v3459_v38  ;;  %6584 = vmatpush1.bf16.msra.mxu1 %v6583_v63  ;;  %3999 = vmatprep.mubr.f32.mxu1 %v9873_v15  ;;  %3535 = vst [vmem:[#allocation3 + $0x678] sm:$0xff] %v3490_v37  ;;  %v3784_v38 = vsub.s32 4, %v8492_v57  ;;  %v4226_v63 = vld [vmem:[%s9829_s2 + $0x38] sm:$0xff]  ;;  %v6689_v62 = vpack.c.bf16 %v4244_v61, %v4243_v60  ;;  %v9134_v60 = vld [vmem:[%s9830_s3 + $0x20] sm:$0xff]  ;;  %v9140_v61 = vld [vmem:[%s9830_s3 + $0x30] sm:$0xff] }
 0x689   : > { %3532 = vst [vmem:[#allocation3 + $0x660] sm:$0xff] %v3488_v30  ;;  %6586 = vmatprep.subr.bf16.mxu1 %v6585_v45  ;;  %6658 = vmatprep.subr.bf16.mxu0 %v6657_v24  ;;  %v6591_v16 = vpack.c.bf16 %v3490_v37, %v3488_v30  ;;  %v6687_v6 = vpack.c.bf16 %v4226_v63, %v4225_v48  ;;  %v4227_v45 = vld [vmem:[%s9829_s2 + $0x40] sm:$0xff]  ;;  %v4228_v30 = vld [vmem:[%s9829_s2 + $0x48] sm:$0xff]  ;;  %v4245_v37 = vld [vmem:[%s9829_s2 + $0xd0] sm:$0xff] }
 0x68a   : > { %6660 = vmatpush3.bf16.msra.mxu0 %v6659_v3  ;;  %v3473_v14 = vpop.permute.xlu1 %3472  ;;  %v3753_v36 = vld [vmem:[#allocation3 + $0x688] sm:$0xff]  ;;  %v3785_v22 = vrot.slane %v8511_v59, %v3784_v38  ;;  %v6691_v24 = vpack.c.bf16 %v4228_v30, %v4227_v45  ;;  %v4229_v3 = vld [vmem:[%s9829_s2 + $0x50] sm:$0xff]  ;;  %v9122_v63 = vld [vmem:[%s9830_s3] sm:$0xff]  ;;  %v6937_v30 = vmov 35   ;;  %362 = vst.msk [vmem:[#allocation6 + $0x40] sm:$0xff] %vm352_vm7, %v9873_v15 }
 0x68b   : > { %v3471_v27 = vpop.permute.xlu0 %3470  ;;  %3540 = vst.msk [vmem:[#allocation3 + $0x6a0] sm:$0xff] %vm777_vm0, %v3473_v14  ;;  %6661 = vmatprep.subr.bf16.mxu0 %v6927_v4  ;;  %v6668_v51 = vpack.c.bf16 %v3753_v36, %v3750_v28  ;;  %v4236_v59 = vld [vmem:[%s9829_s2 + $0x88] sm:$0xff]  ;;  %v6902_v45 = vld [vmem:[%s9830_s3 + $0x50] sm:$0xff]  ;;  %6888 = vset.pattern.permute.xlu1 %v6937_v30  ;;  %vm9913_vm13 = vmmov %vm9912_vm11 }
 0x68c   : > { %v3493_v50 = vsel %vm9908_vm4, %v3471_v27, %v3473_v14  ;;  %6588 = vmatpush1.bf16.msra.mxu1 %v6587_v54  ;;  %v6673_v40 = vpack.c.bf16 %v4236_v59, %v4235_v8  ;;  %v6693_v54 = vpack.c.bf16 %v4246_v39, %v4245_v37  ;;  %v4247_v14 = vld [vmem:[%s9829_s2 + $0xe0] sm:$0xff]  ;;  %6889 = vset.pattern.permute.xlu0 %v6937_v30  ;;  %vm9914_vm1 = vmmov %vm9912_vm11 }
 0x68d   : > { %6590 = vmatprep.subr.bf16.mxu1 %v6589_v55  ;;  %4141 = vmatmul.mubr.f32.vlgmr.msra.gmra.mrb[26].mxu0 %v3777_v7  ;;  %v6683_v7 = vpack.c.bf16 %v4224_v25, %v4223_v11  ;;  %v4248_v55 = vld [vmem:[%s9829_s2 + $0xe8] sm:$0xff]  ;;  %v6903_v37 = vld [vmem:[%s9830_s3 + $0x60] sm:$0xff]  ;;  %vm9915_vm5 = vmmov %vm9914_vm1  ;;  %364 = vst.msk [vmem:[#allocation6 + $0x50] sm:$0xff] %vm352_vm7, %v9873_v15 }
 0x68e   : > { %6663 = vmatpush3.bf16.msra.mxu0 %v6662_v44  ;;  %v3479_v31 = vpop.permute.xlu1 %3478  ;;  %6270 = vmatprep.mubr.msk.f32.mxu0 %vm6928_vm12, %v9873_v15  ;;  %v4232_v44 = vld [vmem:[%s9829_s2 + $0x68] sm:$0xff]  ;;  %v9167_v39 = vld [vmem:[#allocation6 + $0x8] sm:$0xff]  ;;  %vm9916_vm4 = vmmov %vm9914_vm1  ;;  %366 = vst.msk [vmem:[#allocation6 + $0x60] sm:$0xff] %vm352_vm7, %v9873_v15 }
 0x68f   : > { %v3477_v42 = vpop.permute.xlu0 %3476  ;;  %3543 = vst.msk [vmem:[#allocation3 + $0x6b8] sm:$0xff] %vm777_vm0, %v3479_v31  ;;  %6664 = vmatprep.subr.bf16.mxu0 %v6927_v4  ;;  %v6699_v19 = vpack.c.bf16 %v4232_v44, %v4231_v9 }
 0x690   : > { %v3495_v5 = vsel %vm9909_vm2, %v3477_v42, %v3479_v31  ;;  %6592 = vmatpush1.bf16.msra.mxu1 %v6591_v16  ;;  %v4249_v16 = vld [vmem:[%s9829_s2 + $0xf0] sm:$0xff]  ;;  %vm9917_vm2 = vmmov %vm9914_vm1  ;;  %368 = vst.msk [vmem:[#allocation6 + $0x70] sm:$0xff] %vm352_vm7, %v9873_v15 }
 0x691   : > { %v6593_v26 = vpack.c.bf16 %v3495_v5, %v3493_v50  ;;  %v6697_v50 = vpack.c.bf16 %v4248_v55, %v4247_v14  ;;  %v4233_v5 = vld [vmem:[%s9829_s2 + $0x70] sm:$0xff]  ;;  %v9207_v55 = vld [vmem:[#allocation6 + $0x68] sm:$0xff] }
 0x692   : > { %6666 = vmatpush3.bf16.msra.mxu0 %v6665_v29  ;;  %v3475_v12 = vpop.permute.xlu1 %3474  ;;  %v3756_v1 = vld [vmem:[#allocation3 + $0x6a0] sm:$0xff]  ;;  %v6703_v29 = vpack.c.bf16 %v4234_v47, %v4233_v5  ;;  %v9195_v14 = vld [vmem:[#allocation6 + $0x58] sm:$0xff] }
 0x693   : > { %v3469_v35 = vpop.permute.xlu0 %3468  ;;  %6594 = vmatprep.subr.bf16.mxu1 %v6593_v26  ;;  %v3494_v17 = vsel %vm9911_vm14, %v3475_v12, %v3477_v42  ;;  %6667 = vmatprep.subr.bf16.mxu0 %v6927_v4  ;;  %v4250_v42 = vld [vmem:[%s9829_s2 + $0xf8] sm:$0xff]  ;;  %vm9919_vm14 = vmmov %vm9914_vm1 }
 0x694   : > { %v3492_v13 = vsel %vm9910_vm8, %v3469_v35, %v3471_v27  ;;  %3541 = vst [vmem:[#allocation3 + $0x6a8] sm:$0xff] %v3494_v17  ;;  %v6695_v27 = vpack.c.bf16 %v4230_v46, %v4229_v3  ;;  %v6701_v31 = vpack.c.bf16 %v4250_v42, %v4249_v16  ;;  %v9171_v3 = vld [vmem:[#allocation6 + $0x18] sm:$0xff]  ;;  %v9179_v46 = vld [vmem:[#allocation6 + $0x28] sm:$0xff]  ;;  %vm9918_vm8 = vmmov %vm9914_vm1 }
 0x695   : > { %3538 = vst [vmem:[#allocation3 + $0x690] sm:$0xff] %v3492_v13  ;;  %v6595_v34 = vpack.c.bf16 %v3494_v17, %v3492_v13 }
 0x696   : > { %6669 = vmatpush3.bf16.msra.mxu0 %v6668_v51  ;;  %v3759_v57 = vld [vmem:[#allocation3 + $0x6b8] sm:$0xff] }
 0x697   : > { %6596 = vmatpush1.bf16.msra.mxu1 %v6595_v34  ;;  %6670 = vmatprep.subr.bf16.mxu0 %v6927_v4  ;;  %v6671_v32 = vpack.c.bf16 %v3759_v57, %v3756_v1  ;;  %v4251_v57 = vld [vmem:[%s9829_s2 + $0x100] sm:$0xff] }
 0x69a   : > { %5890 = vmatmul.mubr.msk.f32.vlgmr.msra.gmra.mrb[28].mxu1 %vm3790_vm9, %v3785_v22  ;;  %6672 = vmatpush3.bf16.msra.mxu0 %v6671_v32  ;;  %v4252_v32 = vld [vmem:[%s9829_s2 + $0x108] sm:$0xff] }
 0x69b   : > { %6674 = vmatprep.subr.bf16.mxu0 %v6673_v40  ;;  %v6706_v40 = vpack.c.bf16 %v4252_v32, %v4251_v57 }
 0x69d   : > { %6271 = vmatmul.mubr.msk.f32.vlgmr.msra.gmra.mrb[28].mxu0 %vm3790_vm9, %v3785_v22 }
 0x69e   : > { %6676 = vmatpush3.bf16.msra.mxu0 %v6675_v2  ;;  %v4253_v2 = vld [vmem:[%s9829_s2 + $0x110] sm:$0xff] }
 0x69f   : > { %6678 = vmatprep.subr.bf16.mxu0 %v6677_v10  ;;  %v4254_v10 = vld [vmem:[%s9829_s2 + $0x118] sm:$0xff] }
 0x6a0   : > { %v6709_v41 = vpack.c.bf16 %v4254_v10, %v4253_v2  ;;  %v9920_v10 = vld [vmem:[#allocation7_spill] sm:$0xff] }
 0x6a2   : > { %6680 = vmatpush3.bf16.msra.mxu0 %v6679_v56 }
 0x6a3   : > { %6682 = vmatprep.subr.bf16.mxu0 %v6681_v58  ;;  %v248_v58 = vld [vmem:[%s9830_s3 + $0x8] ss:$0 sm:$0xff] }
 0x6a4   : > { %v3763_v35 = vpop.permute.xlu0 %3762 }
 0x6a6   : > { %6684 = vmatpush3.bf16.msra.mxu0 %v6683_v7 }
 0x6a7   : > { %6686 = vmatprep.subr.bf16.mxu0 %v6685_v49 }
 0x6aa   : > { %6688 = vmatpush3.bf16.msra.mxu0 %v6687_v6  ;;  %v9128_v6 = vld [vmem:[%s9830_s3 + $0x10] sm:$0xff] }
 0x6ab   : > { %6690 = vmatprep.subr.bf16.mxu0 %v6689_v62  ;;  %v6901_v62 = vld [vmem:[%s9830_s3 + $0x40] sm:$0xff] }
 0x6ae   : > { %6692 = vmatpush3.bf16.msra.mxu0 %v6691_v24  ;;  %v6904_v24 = vld [vmem:[%s9830_s3 + $0x70] sm:$0xff] }
 0x6af   : > { %6694 = vmatprep.subr.bf16.mxu0 %v6693_v54  ;;  %v9183_v54 = vld [vmem:[#allocation6 + $0x38] sm:$0xff] }
 0x6b2   : > { %6696 = vmatpush3.bf16.msra.mxu0 %v6695_v27  ;;  %v9191_v27 = vld [vmem:[#allocation6 + $0x48] sm:$0xff] }
 0x6b3   : > { %6698 = vmatprep.subr.bf16.mxu0 %v6697_v50  ;;  %v9211_v50 = vld [vmem:[#allocation6 + $0x78] sm:$0xff] }
 0x6b6   : > { %6700 = vmatpush3.bf16.msra.mxu0 %v6699_v19 }
 0x6b7   : > { %6702 = vmatprep.subr.bf16.mxu0 %v6701_v31 }
 0x6ba   : > { %6704 = vmatpush3.bf16.msra.mxu0 %v6703_v29 }
 0x6bb   : > { %6705 = vmatprep.subr.bf16.mxu0 %v6927_v4 }
 0x720   : > { %v6022_v26 = vpop.f32.mrb[24].mxu0 }
 0x721   : > { %v6023_v36 = vpop.f32.mrb[25].mxu0 }
 0x722   : > { %v6024_v38 = vadd.f32 %v6023_v36, %v6022_v26 }
 0x724   : > { %v4073_v28 = vadd.f32 %v6024_v38, %v3763_v35 }
 0x760   : > { %v6057_v12 = vpop.f32.mrb[26].mxu0 }
 0x761   : > { %v6058_v13 = vpop.f32.mrb[27].mxu0 }
 0x762   : > { %v6059_v17 = vadd.f32 %v6058_v13, %v6057_v12 }
 0x764   : > { %v4143_v51 = vadd.f32 %v6059_v17, %v4073_v28 }
 0x76d   : > { %v4001_v34 = vpop.f32.mrb[28].mxu1 }
 0x76e   : > { %v6817_v22 = vadd.f32 %v4001_v34, %v3763_v35  ;;  %v4003_v1 = vpop.f32.mrb[29].mxu1 }
 0x76f   : > { %v6818_v8 = vadd.f32 %v4003_v1, %v3763_v35 }
 0x770   : > { %v4212_v59 = vpop.f32.mrb[28].mxu0  ;;  %v4216_v20 = vmax.f32 %v6817_v22, 0.0 }
 0x771   : > { %v4217_v52 = vmax.f32 %v6818_v8, 0.0  ;;  %v4213_v18 = vadd.f32 %v4212_v59, %v4143_v51  ;;  %v6272_v23 = vpop.f32.mrb[29].mxu0 }
 0x773   : > { %4322 = vmatprep.mubr.f32.mxu0 %v4217_v52  ;;  %v4218_v43 = vmax.f32 %v4213_v18, 0.0 }
 0x774   : > { %4323 = vmatmul.mubr.f32.vlgmr.msra.gmra.mrb[30].mxu0 %v4216_v20 }
 0x775   : > { %6707 = vmatpush3.bf16.msra.mxu0 %v6706_v40  ;;  %6281 = vmatprep.mubr.msk.f32.mxu0 %vm6928_vm12, %v9873_v15 }
 0x776   : > { %6708 = vmatprep.subr.bf16.mxu0 %v6927_v4 }
 0x779   : > { %6710 = vmatpush3.bf16.msra.mxu0 %v6709_v41 }
 0x77c   : > { %6282 = vmatmul.mubr.msk.f32.vlgmr.msra.gmra.mrb[32].mxu0 %vm777_vm0, %v4218_v43  ;;  %v9300_v41 = vmul.u32.u64.low 2863311531, %v9920_v10  ;;  %v9301_v43 = vmul.u32.u64.high 2863311531, %v9920_v10, %v9300_v41 }
 0x847   : > { %v6101_v56 = vpop.f32.mrb[30].mxu0 }
 0x848   : > { %v6102_v21 = vpop.f32.mrb[31].mxu0 }
 0x849   : > { %v6103_v0 = vadd.f32 %v6102_v21, %v6101_v56  ;;  %v310_v21 = vshrl.u32 %v9301_v43, 3 }
 0x84b   : > { %v4325_v11 = vadd.f32 %v6103_v0, %v248_v58  ;;  %v311_v58 = vmul.u32 12, %v310_v21 }
 0x84f   : > { %v4394_v25 = vpop.f32.mrb[32].mxu0 }
 0x850   : > { %v4395_v7 = vadd.f32 %v4394_v25, %v4325_v11  ;;  %v6283_v53 = vpop.f32.mrb[33].mxu0  ;;  %v312_v25 = vsub.s32 %v9920_v10, %v311_v58 }
 0x852   : > { %4399 = vrot.lane.b32.xlu1 %v4395_v7, %s6929_s17  ;;  %v318_v53 = vadd.s32 12, %v312_v25 }
 0x8c4   : > { %v4400_v33 = vpop.permute.xlu1 %4399 }
 0x8c5   : > { %4403 = vst.msk [vmem:[#allocation5] sm:$0x1] %vm4402_vm10, %v4400_v33  ;;  %vm315_vm10 = vcmp.ne.s32.totalorder %v312_v25, 0 }
 0x8cc   : > { %v4404_v49 = vld [vmem:[#allocation5] sm:$0x1] }
 0x8cd   : > { %v5894_v48 = vld [vmem:[#allocation5] ss:$0 sm:$0xff]  ;;  %4406 = vst.msk [vmem:[#allocation4] sm:$0x1] %vm4405_vm15, %v4404_v49 }
 0x8ce   : > { %4423 = vrot.lane.b32.xlu0 %v5894_v48, %s6918_s24  ;;  %4413 = vrot.lane.b32.xlu1 %v5894_v48, %s6915_s22 }
 0x8d2   : > { %4443 = vrot.lane.b32.xlu0 %v5894_v48, %s6930_s18  ;;  %4433 = vrot.lane.b32.xlu1 %v5894_v48, %s6931_s19 }
 0x8d6   : > { %4463 = vrot.lane.b32.xlu0 %v5894_v48, %s6932_s20  ;;  %4453 = vrot.lane.b32.xlu1 %v5894_v48, %s6933_s29 }
 0x8da   : > { %4483 = vrot.lane.b32.xlu0 %v5894_v48, %s6934_s30  ;;  %4473 = vrot.lane.b32.xlu1 %v5894_v48, %s6935_s5 }
 0x8de   : > { %4523 = vrot.lane.b32.xlu1 %v9122_v63, %s6936_s7  ;;  %4525 = vrot.lane.b32.xlu0 %v9128_v6, %s6936_s7 }
 0x8e2   : > { %4527 = vrot.lane.b32.xlu1 %v9134_v60, %s6936_s7  ;;  %4529 = vrot.lane.b32.xlu0 %v9140_v61, %s6936_s7 }
 0x8e6   : > { %4531 = vrot.lane.b32.xlu1 %v6901_v62, %s6936_s7  ;;  %4533 = vrot.lane.b32.xlu0 %v6902_v45, %s6936_s7 }
 0x8ea   : > { %4535 = vrot.lane.b32.xlu1 %v6903_v37, %s6936_s7  ;;  %4537 = vrot.lane.b32.xlu0 %v6904_v24, %s6936_s7 }
 0x8ee   : > { %4492 = vperm.xlu1 %6888, %v9122_v63   ;;  %4496 = vperm.xlu0 %6889, %v9128_v6  }
 0x8f2   : > { %4500 = vperm.xlu1 %6888, %v9134_v60   ;;  %4508 = vperm.xlu0 %6889, %v6901_v62  }
 0x8f6   : > { %4504 = vperm.xlu1 %6888, %v9140_v61   ;;  %4516 = vperm.xlu0 %6889, %v6903_v37  }
 0x8fa   : > { %4512 = vperm.xlu1 %6888, %v6902_v45  }
 0x8fe   : > { %4520 = vperm.xlu1 %6888, %v6904_v24  }
 0x902   : > { %5133 = vrot.lane.b32.xlu1 %v9167_v39, %s6932_s20 }
 0x906   : > { %5137 = vrot.lane.b32.xlu1 %v9171_v3, %s6932_s20 }
 0x90a   : > { %4955 = vrot.lane.b32.xlu1 %v9167_v39, %s6930_s18 }
 0x90e   : > { %4959 = vrot.lane.b32.xlu1 %v9171_v3, %s6930_s18 }
 0x912   : > { %5141 = vrot.lane.b32.xlu1 %v9179_v46, %s6932_s20 }
 0x916   : > { %5145 = vrot.lane.b32.xlu1 %v9183_v54, %s6932_s20 }
 0x91a   : > { %4963 = vrot.lane.b32.xlu1 %v9179_v46, %s6930_s18 }
 0x91e   : > { %4967 = vrot.lane.b32.xlu1 %v9183_v54, %s6930_s18 }
 0x922   : > { %5149 = vrot.lane.b32.xlu1 %v9191_v27, %s6932_s20 }
 0x926   : > { %5153 = vrot.lane.b32.xlu1 %v9195_v14, %s6932_s20 }
 0x92a   : > { %4971 = vrot.lane.b32.xlu1 %v9191_v27, %s6930_s18 }
 0x92e   : > { %4975 = vrot.lane.b32.xlu1 %v9195_v14, %s6930_s18 }
 0x932   : > { %4866 = vrot.lane.b32.xlu1 %v9167_v39, %s6931_s19 }
 0x936   : > { %4870 = vrot.lane.b32.xlu1 %v9171_v3, %s6931_s19 }
 0x93a   : > { %5157 = vrot.lane.b32.xlu1 %v9207_v55, %s6932_s20 }
 0x93e   : > { %5161 = vrot.lane.b32.xlu1 %v9211_v50, %s6932_s20 }
 0x940   : > { %v4424_v9 = vpop.permute.xlu0 %4423  ;;  %v4414_v44 = vpop.permute.xlu1 %4413 }
 0x941   : > { %4426 = vst.msk [vmem:[#allocation4 + $0x2] sm:$0x1] %vm4405_vm15, %v4424_v9  ;;  %4416 = vst.msk [vmem:[#allocation4 + $0x1] sm:$0x1] %vm4405_vm15, %v4414_v44 }
 0x942   : > { %4979 = vrot.lane.b32.xlu1 %v9207_v55, %s6930_s18 }
 0x944   : > { %v4444_v19 = vpop.permute.xlu0 %4443  ;;  %v4434_v16 = vpop.permute.xlu1 %4433 }
 0x945   : > { %4446 = vst.msk [vmem:[#allocation4 + $0x4] sm:$0x1] %vm4405_vm15, %v4444_v19  ;;  %4436 = vst.msk [vmem:[#allocation4 + $0x3] sm:$0x1] %vm4405_vm15, %v4434_v16 }
 0x946   : > { %4983 = vrot.lane.b32.xlu1 %v9211_v50, %s6930_s18 }
 0x948   : > { %v4464_v42 = vpop.permute.xlu0 %4463  ;;  %v4454_v31 = vpop.permute.xlu1 %4453 }
 0x949   : > { %4466 = vst.msk [vmem:[#allocation4 + $0x6] sm:$0x1] %vm4405_vm15, %v4464_v42  ;;  %4456 = vst.msk [vmem:[#allocation4 + $0x5] sm:$0x1] %vm4405_vm15, %v4454_v31 }
 0x94a   : > { %4874 = vrot.lane.b32.xlu1 %v9179_v46, %s6931_s19 }
 0x94c   : > { %v4484_v5 = vpop.permute.xlu0 %4483  ;;  %v4474_v47 = vpop.permute.xlu1 %4473 }
 0x94d   : > { %4486 = vst.msk [vmem:[#allocation4 + $0x18] sm:$0x1] %vm4405_vm15, %v4484_v5  ;;  %4476 = vst.msk [vmem:[#allocation4 + $0x7] sm:$0x1] %vm4405_vm15, %v4474_v47  ;;  %vm316_vm15 = vcmp.lt.s32.totalorder %v312_v25, 0 }
 0x94e   : > { %4878 = vrot.lane.b32.xlu1 %v9183_v54, %s6931_s19  ;;  %vm317_vm3 = vmand %vm316_vm15, %vm315_vm10 }
 0x94f   : > { %v319_v49 = vsel %vm317_vm3, %v318_v53, %v312_v25 }
 0x950   : > { %v4524_v29 = vpop.permute.xlu1 %4523  ;;  %v4526_v26 = vpop.permute.xlu0 %4525 }
 0x951   : > { %6288 = vmatprep.mubr.msk.f32.mxu1 %vm9912_vm11, %v4524_v29  ;;  %vm9315_vm11 = vcmp.lt.s32.totalorder %v319_v49, 8 }
 0x952   : > { %5222 = vrot.lane.b32.xlu1 %v9167_v39, %s6935_s5 }
 0x954   : > { %v4489_v36 = vld [vmem:[#allocation4] sm:$0xff]  ;;  %v4490_v38 = vld [vmem:[#allocation4 + $0x18] sm:$0xff]  ;;  %v4528_v12 = vpop.permute.xlu1 %4527  ;;  %v4530_v13 = vpop.permute.xlu0 %4529 }
 0x955   : > { %v6711_v35 = vpack.c.bf16 %v4490_v38, %v4489_v36 }
 0x956   : > { %5226 = vrot.lane.b32.xlu1 %v9171_v3, %s6935_s5 }
 0x957   : > { %6712 = vmatprep.subr.bf16.mxu1 %v6711_v35 }
 0x958   : > { %6714 = vmatpush3.bf16.msra.mxu1 %v6711_v35  ;;  %v4532_v17 = vpop.permute.xlu1 %4531  ;;  %v4534_v28 = vpop.permute.xlu0 %4533 }
 0x95a   : > { %5044 = vrot.lane.b32.xlu1 %v9167_v39, %s6933_s29 }
 0x95b   : > { %6289 = vmatmul.mubr.msk.f32.vlgmr.msra.gmra.mrb[30].mxu1 %vm9913_vm13, %v4526_v26  ;;  %vm4710_vm13 = vcmask 998608  }
 0x95c   : > { %6291 = vmatprep.mubr.msk.f32.mxu1 %vm9914_vm1, %v4528_v12  ;;  %v4536_v51 = vpop.permute.xlu1 %4535  ;;  %v4538_v34 = vpop.permute.xlu0 %4537  ;;  %vm4727_vm1 = vcmask 982016  }
 0x95e   : > { %5048 = vrot.lane.b32.xlu1 %v9171_v3, %s6933_s29 }
 0x95f   : > { %6292 = vmatmul.mubr.msk.f32.gmra.mrb[32].mxu1 %vm9915_vm5, %v4530_v13  ;;  %vm5163_vm5 = vcmask 850944  }
 0x960   : > { %6294 = vmatprep.mubr.msk.f32.mxu1 %vm9916_vm4, %v4532_v17  ;;  %vm4985_vm4 = vcmask 941056  }
 0x962   : > { %4882 = vrot.lane.b32.xlu1 %v9191_v27, %s6931_s19 }
 0x963   : > { %6295 = vmatmul.mubr.msk.f32.gmra.mrb[34].mxu1 %vm9917_vm2, %v4534_v28  ;;  %vm4896_vm2 = vcmask 949248  }
 0x964   : > { %6297 = vmatprep.mubr.msk.f32.mxu1 %vm9918_vm8, %v4536_v51  ;;  %vm5252_vm8 = vcmask 842752  }
 0x966   : > { %4886 = vrot.lane.b32.xlu1 %v9195_v14, %s6931_s19 }
 0x967   : > { %6298 = vmatmul.mubr.msk.f32.gmra.mrb[36].mxu1 %vm9919_vm14, %v4538_v34  ;;  %vm5074_vm14 = vcmask 932864  }
 0x96a   : > { %5230 = vrot.lane.b32.xlu1 %v9179_v46, %s6935_s5 }
 0x96d   : > { %v4493_v22 = vpop.permute.xlu1 %4492  ;;  %v4497_v33 = vpop.permute.xlu0 %4496 }
 0x96e   : > { %5234 = vrot.lane.b32.xlu1 %v9183_v54, %s6935_s5 }
 0x971   : > { %v4501_v1 = vpop.permute.xlu1 %4500  ;;  %v4509_v26 = vpop.permute.xlu0 %4508 }
 0x972   : > { %5052 = vrot.lane.b32.xlu1 %v9179_v46, %s6933_s29 }
 0x975   : > { %v4505_v57 = vpop.permute.xlu1 %4504  ;;  %v4517_v10 = vpop.permute.xlu0 %4516 }
 0x976   : > { %5056 = vrot.lane.b32.xlu1 %v9183_v54, %s6933_s29 }
 0x979   : > { %v4513_v32 = vpop.permute.xlu1 %4512 }
 0x97a   : > { %4890 = vrot.lane.b32.xlu1 %v9207_v55, %s6931_s19 }
 0x97d   : > { %v4521_v8 = vpop.permute.xlu1 %4520 }
 0x981   : > { %v9285_v59 = vpop.permute.xlu1 %5133 }
 0x985   : > { %v9287_v52 = vpop.permute.xlu1 %5137 }
 0x989   : > { %v9289_v40 = vpop.permute.xlu1 %4955 }
 0x98d   : > { %v9291_v18 = vpop.permute.xlu1 %4959 }
 0x991   : > { %v9293_v20 = vpop.permute.xlu1 %5141 }
 0x995   : > { %v9295_v23 = vpop.permute.xlu1 %5145 }
 0x999   : > { %v9297_v2 = vpop.permute.xlu1 %4963 }
 0x99d   : > { %v9303_v56 = vpop.permute.xlu1 %4967 }
 0x9a1   : > { %v9306_v0 = vpop.permute.xlu1 %5149 }
 0x9a5   : > { %v9308_v11 = vpop.permute.xlu1 %5153 }
 0x9a9   : > { %v9311_v7 = vpop.permute.xlu1 %4971 }
 0x9ad   : > { %v9313_v62 = vpop.permute.xlu1 %4975 }
 0x9b1   : > { %v9324_v29 = vpop.permute.xlu1 %4866 }
 0xa2e   : > { %v6290_v48 = vpop.f32.mrb[30].mxu1 }
 0xa2f   : > { %v4627_v45 = vadd.f32 %v6290_v48, %v4497_v33  ;;  %v4621_v30 = vpop.f32.mrb[31].mxu1 }
 0xa30   : > { %v4622_v24 = vadd.f32 %v4621_v30, %v4493_v22 }
 0xa31   : > { %v4661_v9 = vmax.f32 %v4627_v45, 0.0 }
 0xa32   : > { %v4660_v44 = vmax.f32 %v4622_v24, 0.0  ;;  %v6293_v19 = vpop.f32.mrb[32].mxu1 }
 0xa33   : > { %v4671_v16 = vsel %vm9315_vm11, %v4661_v9, 0.0  ;;  %v4637_v42 = vadd.f32 %v6293_v19, %v4505_v57  ;;  %v4631_v31 = vpop.f32.mrb[33].mxu1  ;;  %v9333_v57 = vpop.permute.xlu1 %4870 }
 0xa34   : > { %v4670_v5 = vsel %vm9315_vm11, %v4660_v44, 0.0  ;;  %v4632_v47 = vadd.f32 %v4631_v31, %v4501_v1  ;;  %4688 = vrot.lane.b32.xlu1 %v4671_v16, %s6929_s17 }
 0xa35   : > { %v4663_v36 = vmax.f32 %v4637_v42, 0.0  ;;  %4686 = vrot.lane.b32.xlu0 %v4670_v5, %s6929_s17 }
 0xa36   : > { %v4662_v38 = vmax.f32 %v4632_v47, 0.0  ;;  %v6296_v35 = vpop.f32.mrb[34].mxu1 }
 0xa37   : > { %v4673_v12 = vsel %vm9315_vm11, %v4663_v36, 0.0  ;;  %v4647_v13 = vadd.f32 %v6296_v35, %v4513_v32  ;;  %v4641_v17 = vpop.f32.mrb[35].mxu1 }
 0xa38   : > { %v4672_v28 = vsel %vm9315_vm11, %v4662_v38, 0.0  ;;  %v4642_v51 = vadd.f32 %v4641_v17, %v4509_v26  ;;  %4692 = vrot.lane.b32.xlu1 %v4673_v12, %s6929_s17 }
 0xa39   : > { %v4665_v34 = vmax.f32 %v4647_v13, 0.0  ;;  %4690 = vrot.lane.b32.xlu0 %v4672_v28, %s6929_s17 }
 0xa3a   : > { %v4664_v22 = vmax.f32 %v4642_v51, 0.0  ;;  %v6299_v1 = vpop.f32.mrb[36].mxu1 }
 0xa3b   : > { %v4675_v41 = vsel %vm9315_vm11, %v4665_v34, 0.0  ;;  %v4657_v43 = vadd.f32 %v6299_v1, %v4521_v8  ;;  %v4651_v32 = vpop.f32.mrb[37].mxu1  ;;  %v9346_v8 = vpop.permute.xlu1 %5157 }
 0xa3c   : > { %v4674_v21 = vsel %vm9315_vm11, %v4664_v22, 0.0  ;;  %v4652_v58 = vadd.f32 %v4651_v32, %v4517_v10  ;;  %4696 = vrot.lane.b32.xlu1 %v4675_v41, %s6929_s17 }
 0xa3d   : > { %v4667_v25 = vmax.f32 %v4657_v43, 0.0  ;;  %4694 = vrot.lane.b32.xlu0 %v4674_v21, %s6929_s17 }
 0xa3e   : > { %v4666_v53 = vmax.f32 %v4652_v58, 0.0 }
 0xa3f   : > { %v4677_v33 = vsel %vm9315_vm11, %v4667_v25, 0.0  ;;  %v9351_v48 = vpop.permute.xlu1 %5161 }
 0xa40   : > { %v4676_v49 = vsel %vm9315_vm11, %v4666_v53, 0.0  ;;  %4700 = vrot.lane.b32.xlu1 %v4677_v33, %s6929_s17 }
 0xa41   : > { %4698 = vrot.lane.b32.xlu0 %v4676_v49, %s6929_s17 }
 0xa43   : > { %v9355_v45 = vpop.permute.xlu1 %4979 }
 0xa44   : > { %4894 = vrot.lane.b32.xlu1 %v9211_v50, %s6931_s19 }
 0xa47   : > { %v9361_v30 = vpop.permute.xlu1 %4983 }
 0xa48   : > { %5238 = vrot.lane.b32.xlu1 %v9191_v27, %s6935_s5 }
 0xa4b   : > { %v9365_v37 = vpop.permute.xlu1 %4874 }
 0xa4c   : > { %5242 = vrot.lane.b32.xlu1 %v9195_v14, %s6935_s5 }
 0xa4f   : > { %v9371_v24 = vpop.permute.xlu1 %4878 }
 0xa50   : > { %5060 = vrot.lane.b32.xlu1 %v9191_v27, %s6933_s29 }
 0xa53   : > { %v9375_v9 = vpop.permute.xlu1 %5222 }
 0xa54   : > { %5064 = vrot.lane.b32.xlu1 %v9195_v14, %s6933_s29 }
 0xa57   : > { %v9381_v44 = vpop.permute.xlu1 %5226 }
 0xa58   : > { %5246 = vrot.lane.b32.xlu1 %v9207_v55, %s6935_s5 }
 0xa5b   : > { %v9383_v19 = vpop.permute.xlu1 %5044 }
 0xa5c   : > { %5250 = vrot.lane.b32.xlu1 %v9211_v50, %s6935_s5 }
 0xa5f   : > { %v9385_v16 = vpop.permute.xlu1 %5048 }
 0xa60   : > { %5311 = vrot.lane.b32.xlu1 %v9167_v39, %s6934_s30 }
 0xa63   : > { %v9387_v42 = vpop.permute.xlu1 %4882 }
 0xa64   : > { %5315 = vrot.lane.b32.xlu1 %v9171_v3, %s6934_s30 }
 0xa67   : > { %v9389_v31 = vpop.permute.xlu1 %4886 }
 0xa68   : > { %5068 = vrot.lane.b32.xlu1 %v9207_v55, %s6933_s29 }
 0xa6b   : > { %v9391_v5 = vpop.permute.xlu1 %5230 }
 0xa6f   : > { %v9393_v39 = vpop.permute.xlu1 %5234 }
 0xa73   : > { %v9395_v47 = vpop.permute.xlu1 %5052 }
 0xa77   : > { %v9397_v3 = vpop.permute.xlu1 %5056 }
 0xa7b   : > { %v9399_v26 = vpop.permute.xlu1 %4890 }
 0xaa6   : > { %v4689_v36 = vpop.permute.xlu1 %4688 }
 0xaa7   : > { %4712 = vst.msk [vmem:[#allocation6 + $0x10] sm:$0xff] %vm4710_vm13, %v4689_v36  ;;  %v4687_v38 = vpop.permute.xlu0 %4686 }
 0xaa8   : > { %4711 = vst.msk [vmem:[#allocation6] sm:$0xff] %vm4710_vm13, %v4687_v38 }
 0xaaa   : > { %v4693_v35 = vpop.permute.xlu1 %4692 }
 0xaab   : > { %4714 = vst.msk [vmem:[#allocation6 + $0x30] sm:$0xff] %vm4710_vm13, %v4693_v35  ;;  %v4691_v12 = vpop.permute.xlu0 %4690 }
 0xaac   : > { %4713 = vst.msk [vmem:[#allocation6 + $0x20] sm:$0xff] %vm4710_vm13, %v4691_v12 }
 0xaae   : > { %v4720_v13 = vld [vmem:[#allocation6 + $0x10] sm:$0xff]  ;;  %v4697_v17 = vpop.permute.xlu1 %4696 }
 0xaaf   : > { %4729 = vst.msk [vmem:[#allocation3 + $0x18] sm:$0xff] %vm4727_vm1, %v4720_v13  ;;  %v4719_v28 = vld [vmem:[#allocation6] sm:$0xff]  ;;  %4802 = vrot.lane.b32.xlu1 %v4720_v13, %s6918_s24  ;;  %5135 = vrot.lane.b32.xlu0 %v4720_v13, %s6932_s20  ;;  %v4695_v51 = vpop.permute.xlu0 %4694 }
 0xab0   : > { %4716 = vst.msk [vmem:[#allocation6 + $0x50] sm:$0xff] %vm4710_vm13, %v4697_v17  ;;  %4715 = vst.msk [vmem:[#allocation6 + $0x40] sm:$0xff] %vm4710_vm13, %v4695_v51 }
 0xab1   : > { %4728 = vst.msk [vmem:[#allocation3] sm:$0xff] %vm4727_vm1, %v4719_v28 }
 0xab2   : > { %v9411_v34 = vld [vmem:[#allocation6 + $0x30] sm:$0xff]  ;;  %v4701_v22 = vpop.permute.xlu1 %4700 }
 0xab3   : > { %4731 = vst.msk [vmem:[#allocation3 + $0x48] sm:$0xff] %vm4727_vm1, %v9411_v34  ;;  %v9415_v1 = vld [vmem:[#allocation6 + $0x20] sm:$0xff]  ;;  %4754 = vrot.lane.b32.xlu1 %v4720_v13, %s6915_s22  ;;  %4957 = vrot.lane.b32.xlu0 %v4720_v13, %s6930_s18  ;;  %v4699_v10 = vpop.permute.xlu0 %4698 }
 0xab4   : > { %4718 = vst.msk [vmem:[#allocation6 + $0x70] sm:$0xff] %vm4710_vm13, %v4701_v22  ;;  %4717 = vst.msk [vmem:[#allocation6 + $0x60] sm:$0xff] %vm4710_vm13, %v4699_v10 }
 0xab5   : > { %4730 = vst.msk [vmem:[#allocation3 + $0x30] sm:$0xff] %vm4727_vm1, %v9415_v1 }
 0xab7   : > { %v9423_v41 = vld [vmem:[#allocation6 + $0x50] sm:$0xff]  ;;  %v9427_v43 = vld [vmem:[#allocation6 + $0x40] sm:$0xff]  ;;  %4806 = vrot.lane.b32.xlu1 %v9411_v34, %s6918_s24  ;;  %4868 = vrot.lane.b32.xlu0 %v4720_v13, %s6931_s19 }
 0xab8   : > { %4733 = vst.msk [vmem:[#allocation3 + $0x78] sm:$0xff] %vm4727_vm1, %v9423_v41  ;;  %4732 = vst.msk [vmem:[#allocation3 + $0x60] sm:$0xff] %vm4727_vm1, %v9427_v43 }
 0xabb   : > { %v9434_v32 = vld [vmem:[#allocation6 + $0x70] sm:$0xff]  ;;  %v9438_v21 = vld [vmem:[#allocation6 + $0x60] sm:$0xff]  ;;  %4758 = vrot.lane.b32.xlu1 %v9411_v34, %s6915_s22  ;;  %5224 = vrot.lane.b32.xlu0 %v4720_v13, %s6935_s5 }
 0xabc   : > { %4735 = vst.msk [vmem:[#allocation3 + $0xa8] sm:$0xff] %vm4727_vm1, %v9434_v32  ;;  %4734 = vst.msk [vmem:[#allocation3 + $0x90] sm:$0xff] %vm4727_vm1, %v9438_v21 }
 0xabf   : > { %4810 = vrot.lane.b32.xlu1 %v9423_v41, %s6918_s24  ;;  %5046 = vrot.lane.b32.xlu0 %v4720_v13, %s6933_s29 }
 0xac3   : > { %4762 = vrot.lane.b32.xlu1 %v9423_v41, %s6915_s22  ;;  %5313 = vrot.lane.b32.xlu0 %v4720_v13, %s6934_s30 }
 0xac7   : > { %4814 = vrot.lane.b32.xlu1 %v9434_v32, %s6918_s24  ;;  %4800 = vrot.lane.b32.xlu0 %v4719_v28, %s6918_s24 }
 0xacb   : > { %5072 = vrot.lane.b32.xlu1 %v9211_v50, %s6933_s29  ;;  %5131 = vrot.lane.b32.xlu0 %v4719_v28, %s6932_s20 }
 0xacf   : > { %5319 = vrot.lane.b32.xlu1 %v9179_v46, %s6934_s30  ;;  %4953 = vrot.lane.b32.xlu0 %v4719_v28, %s6930_s18  ;;  %v9475_v46 = vpop.permute.xlu1 %4894 }
 0xad3   : > { %5323 = vrot.lane.b32.xlu1 %v9183_v54, %s6934_s30  ;;  %4864 = vrot.lane.b32.xlu0 %v4719_v28, %s6931_s19  ;;  %v9483_v54 = vpop.permute.xlu1 %5238 }
 0xad7   : > { %4766 = vrot.lane.b32.xlu1 %v9434_v32, %s6915_s22  ;;  %4752 = vrot.lane.b32.xlu0 %v4719_v28, %s6915_s22 }
 0xadb   : > { %5220 = vrot.lane.b32.xlu0 %v4719_v28, %s6935_s5  ;;  %5327 = vrot.lane.b32.xlu1 %v9191_v27, %s6934_s30  ;;  %v9487_v27 = vpop.permute.xlu1 %5242 }
 0xadf   : > { %5042 = vrot.lane.b32.xlu0 %v4719_v28, %s6933_s29  ;;  %5331 = vrot.lane.b32.xlu1 %v9195_v14, %s6934_s30  ;;  %v9493_v14 = vpop.permute.xlu1 %5060 }
 0xae3   : > { %5309 = vrot.lane.b32.xlu0 %v4719_v28, %s6934_s30  ;;  %5335 = vrot.lane.b32.xlu1 %v9207_v55, %s6934_s30  ;;  %v9497_v55 = vpop.permute.xlu1 %5064 }
 0xae7   : > { %5143 = vrot.lane.b32.xlu0 %v9411_v34, %s6932_s20  ;;  %5339 = vrot.lane.b32.xlu1 %v9211_v50, %s6934_s30  ;;  %v9503_v50 = vpop.permute.xlu1 %5246 }
 0xaeb   : > { %4965 = vrot.lane.b32.xlu0 %v9411_v34, %s6930_s18  ;;  %v9507_v58 = vpop.permute.xlu1 %5250 }
 0xaef   : > { %4876 = vrot.lane.b32.xlu0 %v9411_v34, %s6931_s19  ;;  %v9513_v25 = vpop.permute.xlu1 %5311 }
 0xaf3   : > { %5232 = vrot.lane.b32.xlu0 %v9411_v34, %s6935_s5  ;;  %v5316_v53 = vpop.permute.xlu1 %5315 }
 0xaf7   : > { %5054 = vrot.lane.b32.xlu0 %v9411_v34, %s6933_s29  ;;  %v9521_v33 = vpop.permute.xlu1 %5068 }
 0xafb   : > { %4804 = vrot.lane.b32.xlu0 %v9415_v1, %s6918_s24 }
 0xaff   : > { %5139 = vrot.lane.b32.xlu0 %v9415_v1, %s6932_s20 }
 0xb03   : > { %4961 = vrot.lane.b32.xlu0 %v9415_v1, %s6930_s18 }
 0xb07   : > { %4872 = vrot.lane.b32.xlu0 %v9415_v1, %s6931_s19 }
 0xb0b   : > { %4756 = vrot.lane.b32.xlu0 %v9415_v1, %s6915_s22 }
 0xb0f   : > { %5228 = vrot.lane.b32.xlu0 %v9415_v1, %s6935_s5 }
 0xb13   : > { %5050 = vrot.lane.b32.xlu0 %v9415_v1, %s6933_s29 }
 0xb17   : > { %5151 = vrot.lane.b32.xlu0 %v9423_v41, %s6932_s20 }
 0xb1b   : > { %4973 = vrot.lane.b32.xlu0 %v9423_v41, %s6930_s18 }
 0xb1f   : > { %4884 = vrot.lane.b32.xlu0 %v9423_v41, %s6931_s19 }
 0xb21   : > { %v4803_v49 = vpop.permute.xlu1 %4802  ;;  %v5136_v36 = vpop.permute.xlu0 %5135 }
 0xb22   : > { %4825 = vst.msk [vmem:[#allocation3 + $0x198] sm:$0xff] %vm4727_vm1, %v4803_v49  ;;  %v5165_v38 = vsel %vm5163_vm5, %v5136_v36, %v9287_v52 }
 0xb23   : > { %5181 = vst.msk [vmem:[#allocation3 + $0x498] sm:$0xff] %vm4727_vm1, %v5165_v38  ;;  %5240 = vrot.lane.b32.xlu0 %v9423_v41, %s6935_s5 }
 0xb25   : > { %v4755_v35 = vpop.permute.xlu1 %4754  ;;  %v4958_v12 = vpop.permute.xlu0 %4957 }
 0xb26   : > { %4777 = vst.msk [vmem:[#allocation3 + $0xd8] sm:$0xff] %vm4727_vm1, %v4755_v35  ;;  %v4987_v13 = vsel %vm4985_vm4, %v4958_v12, %v9291_v18 }
 0xb27   : > { %5003 = vst.msk [vmem:[#allocation3 + $0x318] sm:$0xff] %vm4727_vm1, %v4987_v13  ;;  %5062 = vrot.lane.b32.xlu0 %v9423_v41, %s6933_s29 }
 0xb29   : > { %v4807_v52 = vpop.permute.xlu1 %4806  ;;  %v4869_v17 = vpop.permute.xlu0 %4868 }
 0xb2a   : > { %4827 = vst.msk [vmem:[#allocation3 + $0x1c8] sm:$0xff] %vm4727_vm1, %v4807_v52  ;;  %v4898_v28 = vsel %vm4896_vm2, %v4869_v17, %v9333_v57  ;;  %v5366_v52 = vld [vmem:[#allocation3] sm:$0xff]  ;;  %v5367_v17 = vld [vmem:[#allocation3 + $0x18] sm:$0xff] }
 0xb2b   : > { %4914 = vst.msk [vmem:[#allocation3 + $0x258] sm:$0xff] %vm4727_vm1, %v4898_v28  ;;  %4808 = vrot.lane.b32.xlu0 %v9427_v43, %s6918_s24 }
 0xb2d   : > { %v4759_v18 = vpop.permute.xlu1 %4758  ;;  %v5225_v51 = vpop.permute.xlu0 %5224 }
 0xb2e   : > { %4779 = vst.msk [vmem:[#allocation3 + $0x108] sm:$0xff] %vm4727_vm1, %v4759_v18  ;;  %v5254_v22 = vsel %vm5252_vm8, %v5225_v51, %v9381_v44 }
 0xb2f   : > { %5270 = vst.msk [vmem:[#allocation3 + $0x558] sm:$0xff] %vm4727_vm1, %v5254_v22  ;;  %5147 = vrot.lane.b32.xlu0 %v9427_v43, %s6932_s20  ;;  %v5383_v22 = vld [vmem:[#allocation3 + $0x198] sm:$0xff] }
 0xb31   : > { %v4811_v57 = vpop.permute.xlu1 %4810  ;;  %v5047_v10 = vpop.permute.xlu0 %5046 }
 0xb32   : > { %4829 = vst.msk [vmem:[#allocation3 + $0x1f8] sm:$0xff] %vm4727_vm1, %v4811_v57  ;;  %v5076_v49 = vsel %vm5074_vm14, %v5047_v10, %v9385_v16 }
 0xb33   : > { %5092 = vst.msk [vmem:[#allocation3 + $0x3d8] sm:$0xff] %vm4727_vm1, %v5076_v49  ;;  %4969 = vrot.lane.b32.xlu0 %v9427_v43, %s6930_s18 }
 0xb35   : > { %v4763_v44 = vpop.permute.xlu1 %4762  ;;  %v5314_v36 = vpop.permute.xlu0 %5313 }
 0xb36   : > { %4781 = vst.msk [vmem:[#allocation3 + $0x138] sm:$0xff] %vm4727_vm1, %v4763_v44  ;;  %v5343_v38 = vsel %vm5341_vm6, %v5314_v36, %v5316_v53 }
 0xb37   : > { %5359 = vst.msk [vmem:[#allocation3 + $0x618] sm:$0xff] %vm4727_vm1, %v5343_v38  ;;  %4880 = vrot.lane.b32.xlu0 %v9427_v43, %s6931_s19 }
 0xb39   : > { %v4815_v35 = vpop.permute.xlu1 %4814  ;;  %v4801_v12 = vpop.permute.xlu0 %4800 }
 0xb3a   : > { %4831 = vst.msk [vmem:[#allocation3 + $0x228] sm:$0xff] %vm4727_vm1, %v4815_v35  ;;  %4824 = vst.msk [vmem:[#allocation3 + $0x180] sm:$0xff] %vm4727_vm1, %v4801_v12  ;;  %v5415_v35 = vld [vmem:[#allocation3 + $0x498] sm:$0xff] }
 0xb3b   : > { %4760 = vrot.lane.b32.xlu0 %v9427_v43, %s6915_s22 }
 0xb3d   : > { %v9564_v16 = vpop.permute.xlu1 %5072  ;;  %v5132_v13 = vpop.permute.xlu0 %5131 }
 0xb3e   : > { %v5164_v53 = vsel %vm5163_vm5, %v5132_v13, %v9285_v59  ;;  %v6717_v59 = vpack.c.bf16 %v5367_v17, %v5366_v52  ;;  %v5399_v52 = vld [vmem:[#allocation3 + $0x318] sm:$0xff] }
 0xb3f   : > { %5180 = vst.msk [vmem:[#allocation3 + $0x480] sm:$0xff] %vm4727_vm1, %v5164_v53  ;;  %5236 = vrot.lane.b32.xlu0 %v9427_v43, %s6935_s5 }
 0xb41   : > { %v9571_v28 = vpop.permute.xlu1 %5319  ;;  %v4954_v18 = vpop.permute.xlu0 %4953  ;;  %v5382_v51 = vld [vmem:[#allocation3 + $0x180] sm:$0xff] }
 0xb42   : > { %v4986_v57 = vsel %vm4985_vm4, %v4954_v18, %v9289_v40  ;;  %v6715_v10 = vpack.c.bf16 %v5383_v22, %v5382_v51 }
 0xb43   : > { %5002 = vst.msk [vmem:[#allocation3 + $0x300] sm:$0xff] %vm4727_vm1, %v4986_v57  ;;  %5058 = vrot.lane.b32.xlu0 %v9427_v43, %s6933_s29 }
 0xb44   : > { %6716 = vmatprep.subr.bf16.mxu1 %v6715_v10 }
 0xb45   : > { %v9578_v49 = vpop.permute.xlu1 %5323  ;;  %6718 = vmatpush3.bf16.msra.mxu1 %v6717_v59  ;;  %v4865_v44 = vpop.permute.xlu0 %4864 }
 0xb46   : > { %v4897_v36 = vsel %vm4896_vm2, %v4865_v44, %v9324_v29  ;;  %v5414_v38 = vld [vmem:[#allocation3 + $0x480] sm:$0xff] }
 0xb47   : > { %4913 = vst.msk [vmem:[#allocation3 + $0x240] sm:$0xff] %vm4727_vm1, %v4897_v36  ;;  %5317 = vrot.lane.b32.xlu0 %v9415_v1, %s6934_s30  ;;  %v6747_v40 = vpack.c.bf16 %v5415_v35, %v5414_v38  ;;  %v5369_v38 = vld [vmem:[#allocation3 + $0x48] sm:$0xff] }
 0xb49   : > { %v4767_v12 = vpop.permute.xlu1 %4766  ;;  %6748 = vmatprep.subr.bf16.mxu0 %v6747_v40  ;;  %v4753_v13 = vpop.permute.xlu0 %4752 }
 0xb4a   : > { %4783 = vst.msk [vmem:[#allocation3 + $0x168] sm:$0xff] %vm4727_vm1, %v4767_v12  ;;  %4776 = vst.msk [vmem:[#allocation3 + $0xc0] sm:$0xff] %vm4727_vm1, %v4753_v13  ;;  %v5398_v53 = vld [vmem:[#allocation3 + $0x300] sm:$0xff]  ;;  %v5385_v12 = vld [vmem:[#allocation3 + $0x1c8] sm:$0xff] }
 0xb4b   : > { %5321 = vrot.lane.b32.xlu0 %v9411_v34, %s6934_s30  ;;  %v6749_v29 = vpack.c.bf16 %v5399_v52, %v5398_v53  ;;  %v216_v52 = vld [vmem:[%s9828_s1 + $0x148] sm:$0xff] }
 0xb4c   : > { %5530 = vmatprep.mubr.f32.mxu1 %v216_v52 }
 0xb4d   : > { %6750 = vmatpush3.bf16.msra.mxu0 %v6749_v29  ;;  %v5221_v17 = vpop.permute.xlu0 %5220 }
 0xb4e   : > { %v5253_v18 = vsel %vm5252_vm8, %v5221_v17, %v9375_v9 }
 0xb4f   : > { %5269 = vst.msk [vmem:[#allocation3 + $0x540] sm:$0xff] %vm4727_vm1, %v5253_v18  ;;  %5325 = vrot.lane.b32.xlu0 %v9427_v43, %s6934_s30 }
 0xb51   : > { %v5043_v1 = vpop.permute.xlu0 %5042 }
 0xb52   : > { %v5075_v51 = vsel %vm5074_vm14, %v5043_v1, %v9383_v19 }
 0xb53   : > { %5091 = vst.msk [vmem:[#allocation3 + $0x3c0] sm:$0xff] %vm4727_vm1, %v5075_v51  ;;  %5159 = vrot.lane.b32.xlu0 %v9434_v32, %s6932_s20 }
 0xb55   : > { %v5310_v34 = vpop.permute.xlu0 %5309 }
 0xb56   : > { %v5342_v22 = vsel %vm5341_vm6, %v5310_v34, %v9513_v25 }
 0xb57   : > { %5358 = vst.msk [vmem:[#allocation3 + $0x600] sm:$0xff] %vm4727_vm1, %v5342_v22  ;;  %4981 = vrot.lane.b32.xlu0 %v9434_v32, %s6930_s18 }
 0xb59   : > { %v5144_v9 = vpop.permute.xlu0 %5143 }
 0xb5a   : > { %v5167_v43 = vsel %vm5163_vm5, %v5144_v9, %v9295_v23 }
 0xb5b   : > { %5183 = vst.msk [vmem:[#allocation3 + $0x4c8] sm:$0xff] %vm4727_vm1, %v5167_v43  ;;  %4892 = vrot.lane.b32.xlu0 %v9434_v32, %s6931_s19 }
 0xb5d   : > { %v4966_v19 = vpop.permute.xlu0 %4965 }
 0xb5e   : > { %v4989_v57 = vsel %vm4985_vm4, %v4966_v19, %v9303_v56 }
 0xb5f   : > { %5005 = vst.msk [vmem:[#allocation3 + $0x348] sm:$0xff] %vm4727_vm1, %v4989_v57  ;;  %5248 = vrot.lane.b32.xlu0 %v9434_v32, %s6935_s5 }
 0xb61   : > { %v4877_v25 = vpop.permute.xlu0 %4876 }
 0xb62   : > { %v4900_v10 = vsel %vm4896_vm2, %v4877_v25, %v9371_v24 }
 0xb63   : > { %4916 = vst.msk [vmem:[#allocation3 + $0x288] sm:$0xff] %vm4727_vm1, %v4900_v10  ;;  %5070 = vrot.lane.b32.xlu0 %v9434_v32, %s6933_s29 }
 0xb65   : > { %v5233_v23 = vpop.permute.xlu0 %5232 }
 0xb66   : > { %v5256_v59 = vsel %vm5252_vm8, %v5233_v23, %v9393_v39  ;;  %v5401_v22 = vld [vmem:[#allocation3 + $0x348] sm:$0xff] }
 0xb67   : > { %5272 = vst.msk [vmem:[#allocation3 + $0x588] sm:$0xff] %vm4727_vm1, %v5256_v59  ;;  %4812 = vrot.lane.b32.xlu0 %v9438_v21, %s6918_s24 }
 0xb69   : > { %v5055_v56 = vpop.permute.xlu0 %5054 }
 0xb6a   : > { %v5078_v44 = vsel %vm5074_vm14, %v5055_v56, %v9397_v3  ;;  %v5368_v3 = vld [vmem:[#allocation3 + $0x30] sm:$0xff] }
 0xb6b   : > { %5094 = vst.msk [vmem:[#allocation3 + $0x408] sm:$0xff] %vm4727_vm1, %v5078_v44  ;;  %5155 = vrot.lane.b32.xlu0 %v9438_v21, %s6932_s20 }
 0xb6d   : > { %v4805_v24 = vpop.permute.xlu0 %4804 }
 0xb6e   : > { %4826 = vst.msk [vmem:[#allocation3 + $0x1b0] sm:$0xff] %vm4727_vm1, %v4805_v24  ;;  %v5387_v24 = vld [vmem:[#allocation3 + $0x1f8] sm:$0xff] }
 0xb6f   : > { %4977 = vrot.lane.b32.xlu0 %v9438_v21, %s6930_s18 }
 0xb71   : > { %v5140_v39 = vpop.permute.xlu0 %5139 }
 0xb72   : > { %v5166_v36 = vsel %vm5163_vm5, %v5140_v39, %v9293_v20  ;;  %v6721_v20 = vpack.c.bf16 %v5369_v38, %v5368_v3 }
 0xb73   : > { %5182 = vst.msk [vmem:[#allocation3 + $0x4b0] sm:$0xff] %vm4727_vm1, %v5166_v36  ;;  %4888 = vrot.lane.b32.xlu0 %v9438_v21, %s6931_s19 }
 0xb75   : > { %v4962_v35 = vpop.permute.xlu0 %4961  ;;  %v5384_v40 = vld [vmem:[#allocation3 + $0x1b0] sm:$0xff] }
 0xb76   : > { %v4988_v13 = vsel %vm4985_vm4, %v4962_v35, %v9297_v2  ;;  %v6719_v53 = vpack.c.bf16 %v5385_v12, %v5384_v40  ;;  %v5417_v2 = vld [vmem:[#allocation3 + $0x4c8] sm:$0xff] }
 0xb77   : > { %5004 = vst.msk [vmem:[#allocation3 + $0x330] sm:$0xff] %vm4727_vm1, %v4988_v13  ;;  %4764 = vrot.lane.b32.xlu0 %v9438_v21, %s6915_s22 }
 0xb78   : > { %6720 = vmatprep.subr.bf16.mxu1 %v6719_v53 }
 0xb79   : > { %6722 = vmatpush3.bf16.msra.mxu1 %v6721_v20  ;;  %v4873_v29 = vpop.permute.xlu0 %4872 }
 0xb7a   : > { %v4899_v17 = vsel %vm4896_vm2, %v4873_v29, %v9365_v37  ;;  %v5416_v18 = vld [vmem:[#allocation3 + $0x4b0] sm:$0xff]  ;;  %v218_v37 = vld [vmem:[%s9828_s1 + $0x158] sm:$0xff] }
 0xb7b   : > { %4915 = vst.msk [vmem:[#allocation3 + $0x270] sm:$0xff] %vm4727_vm1, %v4899_v17  ;;  %5244 = vrot.lane.b32.xlu0 %v9438_v21, %s6935_s5  ;;  %v6751_v1 = vpack.c.bf16 %v5417_v2, %v5416_v18  ;;  %5615 = vmatprep.mubr.f32.mxu0 %v218_v37 }
 0xb7d   : > { %6752 = vmatprep.subr.bf16.mxu0 %v6751_v1  ;;  %v4757_v51 = vpop.permute.xlu0 %4756 }
 0xb7e   : > { %4778 = vst.msk [vmem:[#allocation3 + $0xf0] sm:$0xff] %vm4727_vm1, %v4757_v51  ;;  %v5400_v34 = vld [vmem:[#allocation3 + $0x330] sm:$0xff] }
 0xb7f   : > { %5066 = vrot.lane.b32.xlu0 %v9438_v21, %s6933_s29  ;;  %v6753_v9 = vpack.c.bf16 %v5401_v22, %v5400_v34  ;;  %s6939_s29 = smov 64  }
 0xb81   : > { %6754 = vmatpush3.bf16.msra.mxu0 %v6753_v9  ;;  %v5229_v43 = vpop.permute.xlu0 %5228 }
 0xb82   : > { %v5255_v19 = vsel %vm5252_vm8, %v5229_v43, %v9391_v5 }
 0xb83   : > { %5271 = vst.msk [vmem:[#allocation3 + $0x570] sm:$0xff] %vm4727_vm1, %v5255_v19  ;;  %5329 = vrot.lane.b32.xlu0 %v9423_v41, %s6934_s30 }
 0xb85   : > { %v5051_v57 = vpop.permute.xlu0 %5050 }
 0xb86   : > { %v5077_v25 = vsel %vm5074_vm14, %v5051_v57, %v9395_v47 }
 0xb87   : > { %5093 = vst.msk [vmem:[#allocation3 + $0x3f0] sm:$0xff] %vm4727_vm1, %v5077_v25  ;;  %5333 = vrot.lane.b32.xlu0 %v9438_v21, %s6934_s30  ;;  %v6938_v21 = vmov 36  }
 0xb88   : > { %6890 = vset.pattern.permute.xlu0 %v6938_v21  ;;  %6891 = vset.pattern.permute.xlu1 %v6938_v21 }
 0xb89   : > { %v5152_v10 = vpop.permute.xlu0 %5151  ;;  %5443 = vperm.xlu1 %6891, %v9128_v6  }
 0xb8a   : > { %v5169_v23 = vsel %vm5163_vm5, %v5152_v10, %v9308_v11 }
 0xb8b   : > { %5185 = vst.msk [vmem:[#allocation3 + $0x4f8] sm:$0xff] %vm4727_vm1, %v5169_v23  ;;  %5337 = vrot.lane.b32.xlu0 %v9434_v32, %s6934_s30  ;;  %v5372_v23 = vld [vmem:[#allocation3 + $0x90] sm:$0xff] }
 0xb8d   : > { %v4974_v5 = vpop.permute.xlu0 %4973  ;;  %5447 = vperm.xlu1 %6891, %v9134_v60  }
 0xb8e   : > { %v4991_v41 = vsel %vm4985_vm4, %v4974_v5, %v9313_v62  ;;  %v5373_v5 = vld [vmem:[#allocation3 + $0xa8] sm:$0xff] }
 0xb8f   : > { %5007 = vst.msk [vmem:[#allocation3 + $0x378] sm:$0xff] %vm4727_vm1, %v4991_v41  ;;  %5439 = vperm.xlu0 %6890, %v9122_v63   ;;  %v9690_v63 = vld [vmem:[%s9830_s3] ss:$0 sm:$0xff] }
 0xb91   : > { %v4885_v47 = vpop.permute.xlu0 %4884  ;;  %5729 = vrot.lane.b32.xlu1 %v9690_v63, %s6939_s29 }
 0xb92   : > { %v4902_v59 = vsel %vm4896_vm2, %v4885_v47, %v9389_v31  ;;  %v5419_v40 = vld [vmem:[#allocation3 + $0x4f8] sm:$0xff]  ;;  %v5389_v47 = vld [vmem:[#allocation3 + $0x228] sm:$0xff] }
 0xb93   : > { %4918 = vst.msk [vmem:[#allocation3 + $0x2b8] sm:$0xff] %vm4727_vm1, %v4902_v59  ;;  %5451 = vperm.xlu0 %6890, %v9140_v61   ;;  %v5390_v59 = vld [vmem:[#allocation3 + $0x240] sm:$0xff] }
 0xb95   : > { %v5241_v11 = vpop.permute.xlu0 %5240 }
 0xb96   : > { %v5258_v32 = vsel %vm5252_vm8, %v5241_v11, %v9487_v27  ;;  %v5370_v27 = vld [vmem:[#allocation3 + $0x60] sm:$0xff]  ;;  %v5403_v53 = vld [vmem:[#allocation3 + $0x378] sm:$0xff]  ;;  %v6729_v11 = vpack.c.bf16 %v5373_v5, %v5372_v23 }
 0xb97   : > { %5274 = vst.msk [vmem:[#allocation3 + $0x5b8] sm:$0xff] %vm4727_vm1, %v5258_v32  ;;  %v5391_v32 = vld [vmem:[#allocation3 + $0x258] sm:$0xff] }
 0xb98   : > { %v5431_v5 = vld [vmem:[#allocation3 + $0x618] sm:$0xff] }
 0xb99   : > { %v5063_v62 = vpop.permute.xlu0 %5062 }
 0xb9a   : > { %v5080_v31 = vsel %vm5074_vm14, %v5063_v62, %v9497_v55  ;;  %v5371_v55 = vld [vmem:[#allocation3 + $0x78] sm:$0xff]  ;;  %v6731_v62 = vpack.c.bf16 %v5391_v32, %v5390_v59 }
 0xb9b   : > { %5096 = vst.msk [vmem:[#allocation3 + $0x438] sm:$0xff] %vm4727_vm1, %v5080_v31  ;;  %v6725_v3 = vpack.c.bf16 %v5371_v55, %v5370_v27  ;;  %v5374_v31 = vld [vmem:[#allocation3 + $0xc0] sm:$0xff] }
 0xb9d   : > { %v4809_v6 = vpop.permute.xlu0 %4808 }
 0xb9e   : > { %4828 = vst.msk [vmem:[#allocation3 + $0x1e0] sm:$0xff] %vm4727_vm1, %v4809_v6  ;;  %v5392_v6 = vld [vmem:[#allocation3 + $0x270] sm:$0xff]  ;;  %v5427_v23 = vld [vmem:[#allocation3 + $0x5b8] sm:$0xff] }
 0xba1   : > { %v5148_v60 = vpop.permute.xlu0 %5147 }
 0xba2   : > { %v5168_v61 = vsel %vm5163_vm5, %v5148_v60, %v9306_v0  ;;  %v5411_v32 = vld [vmem:[#allocation3 + $0x438] sm:$0xff] }
 0xba3   : > { %5184 = vst.msk [vmem:[#allocation3 + $0x4e0] sm:$0xff] %vm4727_vm1, %v5168_v61  ;;  %v5375_v61 = vld [vmem:[#allocation3 + $0xd8] sm:$0xff] }
 0xba5   : > { %v4970_v56 = vpop.permute.xlu0 %4969  ;;  %v5386_v44 = vld [vmem:[#allocation3 + $0x1e0] sm:$0xff] }
 0xba6   : > { %v4990_v39 = vsel %vm4985_vm4, %v4970_v56, %v9311_v7  ;;  %v6723_v36 = vpack.c.bf16 %v5387_v24, %v5386_v44  ;;  %v5393_v44 = vld [vmem:[#allocation3 + $0x288] sm:$0xff] }
 0xba7   : > { %5006 = vst.msk [vmem:[#allocation3 + $0x360] sm:$0xff] %vm4727_vm1, %v4990_v39  ;;  %v6735_v24 = vpack.c.bf16 %v5393_v44, %v5392_v6  ;;  %v5376_v39 = vld [vmem:[#allocation3 + $0xf0] sm:$0xff] }
 0xba8   : > { %6724 = vmatprep.subr.bf16.mxu1 %v6723_v36 }
 0xba9   : > { %6726 = vmatpush3.bf16.msra.mxu1 %v6725_v3  ;;  %v4881_v38 = vpop.permute.xlu0 %4880 }
 0xbaa   : > { %v4901_v0 = vsel %vm4896_vm2, %v4881_v38, %v9387_v42  ;;  %v5418_v35 = vld [vmem:[#allocation3 + $0x4e0] sm:$0xff] }
 0xbab   : > { %4917 = vst.msk [vmem:[#allocation3 + $0x2a0] sm:$0xff] %vm4727_vm1, %v4901_v0  ;;  %v6755_v12 = vpack.c.bf16 %v5419_v40, %v5418_v35  ;;  %v5422_v38 = vld [vmem:[#allocation3 + $0x540] sm:$0xff] }
 0xbad   : > { %6756 = vmatprep.subr.bf16.mxu0 %v6755_v12  ;;  %v4761_v13 = vpop.permute.xlu0 %4760 }
 0xbae   : > { %4780 = vst.msk [vmem:[#allocation3 + $0x120] sm:$0xff] %vm4727_vm1, %v4761_v13  ;;  %v5402_v7 = vld [vmem:[#allocation3 + $0x360] sm:$0xff]  ;;  %v5395_v13 = vld [vmem:[#allocation3 + $0x2b8] sm:$0xff] }
 0xbaf   : > { %v6757_v20 = vpack.c.bf16 %v5403_v53, %v5402_v7  ;;  %v5423_v7 = vld [vmem:[#allocation3 + $0x558] sm:$0xff] }
 0xbb1   : > { %6758 = vmatpush3.bf16.msra.mxu0 %v6757_v20  ;;  %v5237_v52 = vpop.permute.xlu0 %5236  ;;  %v6763_v20 = vpack.c.bf16 %v5423_v7, %v5422_v38 }
 0xbb2   : > { %v5257_v29 = vsel %vm5252_vm8, %v5237_v52, %v9483_v54  ;;  %v5328_v54 = vpop.permute.xlu1 %5327  ;;  %v5394_v3 = vld [vmem:[#allocation3 + $0x2a0] sm:$0xff] }
 0xbb3   : > { %5273 = vst.msk [vmem:[#allocation3 + $0x5a0] sm:$0xff] %vm4727_vm1, %v5257_v29  ;;  %v6739_v53 = vpack.c.bf16 %v5395_v13, %v5394_v3  ;;  %v5406_v29 = vld [vmem:[#allocation3 + $0x3c0] sm:$0xff]  ;;  %v226_v3 = vld [vmem:[%s9828_s1 + $0x198] sm:$0xff] }
 0xbb4   : > { %v223_v13 = vld [vmem:[%s9828_s1 + $0x180] sm:$0xff] }
 0xbb5   : > { %v5059_v42 = vpop.permute.xlu0 %5058  ;;  %v5378_v52 = vld [vmem:[#allocation3 + $0x120] sm:$0xff] }
 0xbb6   : > { %v5079_v17 = vsel %vm5074_vm14, %v5059_v42, %v9493_v14 }
 0xbb7   : > { %5095 = vst.msk [vmem:[#allocation3 + $0x420] sm:$0xff] %vm4727_vm1, %v5079_v17  ;;  %v5407_v17 = vld [vmem:[#allocation3 + $0x3d8] sm:$0xff] }
 0xbb9   : > { %v5318_v18 = vpop.permute.xlu0 %5317 }
 0xbba   : > { %v5344_v2 = vsel %vm5341_vm6, %v5318_v18, %v9571_v28  ;;  %v5424_v18 = vld [vmem:[#allocation3 + $0x570] sm:$0xff] }
 0xbbb   : > { %5360 = vst.msk [vmem:[#allocation3 + $0x630] sm:$0xff] %vm4727_vm1, %v5344_v2 }
 0xbbd   : > { %v5322_v1 = vpop.permute.xlu0 %5321 }
 0xbbe   : > { %v5345_v51 = vsel %vm5341_vm6, %v5322_v1, %v9578_v49  ;;  %v5379_v1 = vld [vmem:[#allocation3 + $0x138] sm:$0xff] }
 0xbbf   : > { %5361 = vst.msk [vmem:[#allocation3 + $0x648] sm:$0xff] %vm4727_vm1, %v5345_v51 }
 0xbc1   : > { %v5326_v34 = vpop.permute.xlu0 %5325 }
 0xbc2   : > { %v5346_v22 = vsel %vm5341_vm6, %v5326_v34, %v5328_v54  ;;  %v6741_v34 = vpack.c.bf16 %v5379_v1, %v5378_v52  ;;  %v230_v52 = vld [vmem:[%s9828_s1 + $0x1b8] sm:$0xff]  ;;  %v233_v1 = vld [vmem:[%s9828_s1 + $0x1d0] sm:$0xff] }
 0xbc3   : > { %5362 = vst.msk [vmem:[#allocation3 + $0x660] sm:$0xff] %vm4727_vm1, %v5346_v22  ;;  %v6765_v22 = vpack.c.bf16 %v5407_v17, %v5406_v29  ;;  %v228_v29 = vld [vmem:[%s9828_s1 + $0x1a8] sm:$0xff]  ;;  %v227_v17 = vld [vmem:[%s9828_s1 + $0x1a0] sm:$0xff] }
 0xbc5   : > { %v5160_v14 = vpop.permute.xlu0 %5159 }
 0xbc6   : > { %v5171_v9 = vsel %vm5163_vm5, %v5160_v14, %v9351_v48 }
 0xbc7   : > { %5187 = vst.msk [vmem:[#allocation3 + $0x528] sm:$0xff] %vm4727_vm1, %v5171_v9  ;;  %v5425_v9 = vld [vmem:[#allocation3 + $0x588] sm:$0xff] }
 0xbc9   : > { %v4982_v28 = vpop.permute.xlu0 %4981 }
 0xbca   : > { %v4993_v37 = vsel %vm4985_vm4, %v4982_v28, %v9361_v30  ;;  %v5332_v28 = vpop.permute.xlu1 %5331 }
 0xbcb   : > { %5009 = vst.msk [vmem:[#allocation3 + $0x3a8] sm:$0xff] %vm4727_vm1, %v4993_v37  ;;  %v6767_v37 = vpack.c.bf16 %v5425_v9, %v5424_v18  ;;  %v6940_v9 = vmov 37  }
 0xbcc   : > { %6892 = vset.pattern.permute.xlu0 %v6940_v9 }
 0xbcd   : > { %v4893_v49 = vpop.permute.xlu0 %4892  ;;  %5726 = vperm.xlu0 %6892, %v9690_v63  }
 0xbce   : > { %v4904_v43 = vsel %vm4896_vm2, %v4893_v49, %v9475_v46  ;;  %v5421_v55 = vld [vmem:[#allocation3 + $0x528] sm:$0xff] }
 0xbcf   : > { %4920 = vst.msk [vmem:[#allocation3 + $0x2e8] sm:$0xff] %vm4727_vm1, %v4904_v43  ;;  %v5381_v49 = vld [vmem:[#allocation3 + $0x168] sm:$0xff]  ;;  %v5408_v43 = vld [vmem:[#allocation3 + $0x3f0] sm:$0xff] }
 0xbd1   : > { %v5249_v19 = vpop.permute.xlu0 %5248 }
 0xbd2   : > { %v5260_v57 = vsel %vm5252_vm8, %v5249_v19, %v9507_v58  ;;  %v5405_v35 = vld [vmem:[#allocation3 + $0x3a8] sm:$0xff] }
 0xbd3   : > { %5276 = vst.msk [vmem:[#allocation3 + $0x5e8] sm:$0xff] %vm4727_vm1, %v5260_v57 }
 0xbd5   : > { %v5071_v48 = vpop.permute.xlu0 %5070 }
 0xbd6   : > { %v5082_v25 = vsel %vm5074_vm14, %v5071_v48, %v9564_v16  ;;  %v5397_v54 = vld [vmem:[#allocation3 + $0x2e8] sm:$0xff]  ;;  %v5430_v48 = vld [vmem:[#allocation3 + $0x600] sm:$0xff] }
 0xbd7   : > { %5098 = vst.msk [vmem:[#allocation3 + $0x468] sm:$0xff] %vm4727_vm1, %v5082_v25 }
 0xbd9   : > { %v4813_v30 = vpop.permute.xlu0 %4812 }
 0xbda   : > { %4830 = vst.msk [vmem:[#allocation3 + $0x210] sm:$0xff] %vm4727_vm1, %v4813_v30 }
 0xbdd   : > { %v5156_v10 = vpop.permute.xlu0 %5155 }
 0xbde   : > { %v5170_v46 = vsel %vm5163_vm5, %v5156_v10, %v9346_v8  ;;  %v5409_v10 = vld [vmem:[#allocation3 + $0x408] sm:$0xff] }
 0xbdf   : > { %5186 = vst.msk [vmem:[#allocation3 + $0x510] sm:$0xff] %vm4727_vm1, %v5170_v46  ;;  %v6769_v46 = vpack.c.bf16 %v5409_v10, %v5408_v43 }
 0xbe1   : > { %v4978_v58 = vpop.permute.xlu0 %4977  ;;  %v5388_v41 = vld [vmem:[#allocation3 + $0x210] sm:$0xff] }
 0xbe2   : > { %v4992_v16 = vsel %vm4985_vm4, %v4978_v58, %v9355_v45  ;;  %v6727_v21 = vpack.c.bf16 %v5389_v47, %v5388_v41  ;;  %v6733_v45 = vpack.c.bf16 %v5375_v61, %v5374_v31  ;;  %v6779_v41 = vpack.c.bf16 %v5431_v5, %v5430_v48  ;;  %v5410_v47 = vld [vmem:[#allocation3 + $0x420] sm:$0xff]  ;;  %v5429_v31 = vld [vmem:[#allocation3 + $0x5e8] sm:$0xff] }
 0xbe3   : > { %5008 = vst.msk [vmem:[#allocation3 + $0x390] sm:$0xff] %vm4727_vm1, %v4992_v16  ;;  %v5336_v16 = vpop.permute.xlu1 %5335 }
 0xbe4   : > { %6728 = vmatprep.subr.bf16.mxu1 %v6727_v21  ;;  %v5433_v21 = vld [vmem:[#allocation3 + $0x648] sm:$0xff] }
 0xbe5   : > { %6730 = vmatpush3.bf16.msra.mxu1 %v6729_v11  ;;  %v4889_v8 = vpop.permute.xlu0 %4888 }
 0xbe6   : > { %v4903_v60 = vsel %vm4896_vm2, %v4889_v8, %v9399_v26  ;;  %6732 = vmatprep.subr.bf16.mxu1 %v6731_v62  ;;  %v5420_v27 = vld [vmem:[#allocation3 + $0x510] sm:$0xff]  ;;  %v5377_v26 = vld [vmem:[#allocation3 + $0x108] sm:$0xff]  ;;  %v6773_v8 = vpack.c.bf16 %v5411_v32, %v5410_v47 }
 0xbe7   : > { %4919 = vst.msk [vmem:[#allocation3 + $0x2d0] sm:$0xff] %vm4727_vm1, %v4903_v60  ;;  %v6759_v56 = vpack.c.bf16 %v5421_v55, %v5420_v27  ;;  %v6737_v40 = vpack.c.bf16 %v5377_v26, %v5376_v39  ;;  %v5432_v60 = vld [vmem:[#allocation3 + $0x630] sm:$0xff]  ;;  %v5340_v39 = vpop.permute.xlu1 %5339 }
 0xbe8   : > { %v6783_v61 = vpack.c.bf16 %v5433_v21, %v5432_v60  ;;  %v221_v27 = vld [vmem:[%s9828_s1 + $0x170] sm:$0xff] }
 0xbe9   : > { %6734 = vmatpush3.bf16.msra.mxu1 %v6733_v45  ;;  %6760 = vmatprep.subr.bf16.mxu0 %v6759_v56  ;;  %v4765_v36 = vpop.permute.xlu0 %4764  ;;  %v220_v45 = vld [vmem:[%s9828_s1 + $0x168] sm:$0xff]  ;;  %v217_v26 = vld [vmem:[%s9828_s1 + $0x150] sm:$0xff] }
 0xbea   : > { %4782 = vst.msk [vmem:[#allocation3 + $0x150] sm:$0xff] %vm4727_vm1, %v4765_v36  ;;  %6736 = vmatprep.subr.bf16.mxu1 %v6735_v24  ;;  %v5404_v0 = vld [vmem:[#allocation3 + $0x390] sm:$0xff]  ;;  %v5413_v24 = vld [vmem:[#allocation3 + $0x468] sm:$0xff] }
 0xbeb   : > { %v6761_v12 = vpack.c.bf16 %v5405_v35, %v5404_v0  ;;  %v225_v0 = vld [vmem:[%s9828_s1 + $0x190] sm:$0xff] }
 0xbed   : > { %6738 = vmatpush3.bf16.msra.mxu1 %v6737_v40  ;;  %6762 = vmatpush3.bf16.msra.mxu0 %v6761_v12  ;;  %v5245_v42 = vpop.permute.xlu0 %5244  ;;  %v5434_v40 = vld [vmem:[#allocation3 + $0x660] sm:$0xff] }
 0xbee   : > { %v5259_v2 = vsel %vm5252_vm8, %v5245_v42, %v9503_v50  ;;  %6740 = vmatprep.subr.bf16.mxu1 %v6739_v53  ;;  %6764 = vmatprep.subr.bf16.mxu0 %v6763_v20  ;;  %v5396_v51 = vld [vmem:[#allocation3 + $0x2d0] sm:$0xff]  ;;  %v5426_v50 = vld [vmem:[#allocation3 + $0x5a0] sm:$0xff]  ;;  %v222_v20 = vld [vmem:[%s9828_s1 + $0x178] sm:$0xff] }
 0xbef   : > { %5275 = vst.msk [vmem:[#allocation3 + $0x5d0] sm:$0xff] %vm4727_vm1, %v5259_v2  ;;  %v6743_v14 = vpack.c.bf16 %v5397_v54, %v5396_v51  ;;  %v6771_v58 = vpack.c.bf16 %v5427_v23, %v5426_v50  ;;  %v231_v53 = vld [vmem:[%s9828_s1 + $0x1c0] sm:$0xff]  ;;  %v232_v54 = vld [vmem:[%s9828_s1 + $0x1c8] sm:$0xff] }
 0xbf0   : > { %v219_v42 = vld [vmem:[%s9828_s1 + $0x160] sm:$0xff] }
 0xbf1   : > { %6742 = vmatpush3.bf16.msra.mxu1 %v6741_v34  ;;  %6766 = vmatpush3.bf16.msra.mxu0 %v6765_v22  ;;  %v5067_v19 = vpop.permute.xlu0 %5066  ;;  %v5380_v57 = vld [vmem:[#allocation3 + $0x150] sm:$0xff]  ;;  %v224_v34 = vld [vmem:[%s9828_s1 + $0x188] sm:$0xff] }
 0xbf2   : > { %v5081_v25 = vsel %vm5074_vm14, %v5067_v19, %v9521_v33  ;;  %6744 = vmatprep.subr.bf16.mxu1 %v6743_v14  ;;  %6768 = vmatprep.subr.bf16.mxu0 %v6767_v37  ;;  %v6745_v30 = vpack.c.bf16 %v5381_v49, %v5380_v57  ;;  %v215_v33 = vld [vmem:[%s9828_s1 + $0x140] sm:$0xff]  ;;  %v229_v22 = vld [vmem:[%s9828_s1 + $0x1b0] sm:$0xff]  ;;  %v234_v14 = vld [vmem:[%s9828_s1 + $0x1d8] sm:$0xff] }
 0xbf3   : > { %5097 = vst.msk [vmem:[#allocation3 + $0x450] sm:$0xff] %vm4727_vm1, %v5081_v25 }
 0xbf5   : > { %6746 = vmatpush3.bf16.msra.mxu1 %v6745_v30  ;;  %6770 = vmatpush3.bf16.msra.mxu0 %v6769_v46  ;;  %v5330_v59 = vpop.permute.xlu0 %5329 }
 0xbf6   : > { %v5347_v11 = vsel %vm5341_vm6, %v5330_v59, %v5332_v28  ;;  %6772 = vmatprep.subr.bf16.mxu0 %v6771_v58  ;;  %6780 = vmatprep.subr.bf16.mxu1 %v6779_v41  ;;  %v5428_v62 = vld [vmem:[#allocation3 + $0x5d0] sm:$0xff] }
 0xbf7   : > { %5363 = vst.msk [vmem:[#allocation3 + $0x678] sm:$0xff] %vm4727_vm1, %v5347_v11  ;;  %v6775_v6 = vpack.c.bf16 %v5429_v31, %v5428_v62 }
 0xbf8   : > { %5531 = vmatmul.mubr.f32.vlgmr.msra.gmra.mrb[38].mxu1 %v215_v33 }
 0xbf9   : > { %6774 = vmatpush3.bf16.msra.mxu0 %v6773_v8  ;;  %6782 = vmatpush3.bf16.msra.mxu1 %v6779_v41  ;;  %v5334_v55 = vpop.permute.xlu0 %5333 }
 0xbfa   : > { %v5348_v56 = vsel %vm5341_vm6, %v5334_v55, %v5336_v16  ;;  %6776 = vmatprep.subr.bf16.mxu0 %v6775_v6  ;;  %6784 = vmatprep.subr.bf16.mxu1 %v6783_v61  ;;  %v5412_v44 = vld [vmem:[#allocation3 + $0x450] sm:$0xff] }
 0xbfb   : > { %5364 = vst.msk [vmem:[#allocation3 + $0x690] sm:$0xff] %vm4727_vm1, %v5348_v56  ;;  %v6777_v36 = vpack.c.bf16 %v5413_v24, %v5412_v44  ;;  %5535 = vmatprep.mubr.f32.mxu1 %v221_v27 }
 0xbfc   : > { %5536 = vmatmul.mubr.f32.gmra.mrb[40].mxu1 %v220_v45 }
 0xbfd   : > { %6778 = vmatpush3.bf16.msra.mxu0 %v6777_v36  ;;  %6786 = vmatpush3.bf16.msra.mxu1 %v6783_v61  ;;  %v5338_v38 = vpop.permute.xlu0 %5337 }
 0xbfe   : > { %v5349_v35 = vsel %vm5341_vm6, %v5338_v38, %v5340_v39  ;;  %v5435_v12 = vld [vmem:[#allocation3 + $0x678] sm:$0xff]  ;;  %5540 = vmatprep.mubr.f32.mxu1 %v226_v3  ;;  %6795 = vmatprep.subr.bf16.mxu0 %v6927_v4 }
 0xbff   : > { %5365 = vst.msk [vmem:[#allocation3 + $0x6a8] sm:$0xff] %vm4727_vm1, %v5349_v35  ;;  %v6787_v7 = vpack.c.bf16 %v5435_v12, %v5434_v40 }
 0xc00   : > { %5616 = vmatmul.mubr.f32.vlgmr.msra.gmra.mrb[34].mxu0 %v217_v26  ;;  %5541 = vmatmul.mubr.f32.gmra.mrb[42].mxu1 %v225_v0 }
 0xc01   : > { %6788 = vmatprep.subr.bf16.mxu1 %v6787_v7  ;;  %5620 = vmatprep.mubr.f32.mxu0 %v223_v13 }
 0xc02   : > { %6790 = vmatpush3.bf16.msra.mxu1 %v6787_v7  ;;  %5545 = vmatprep.mubr.f32.mxu1 %v231_v53  ;;  %v5436_v18 = vld [vmem:[#allocation3 + $0x690] sm:$0xff] }
 0xc04   : > { %5621 = vmatmul.mubr.f32.gmra.mrb[36].mxu0 %v222_v20  ;;  %5546 = vmatmul.mubr.f32.gmra.mrb[44].mxu1 %v230_v52 }
 0xc05   : > { %5625 = vmatprep.mubr.f32.mxu0 %v228_v29  ;;  %6316 = vmatprep.mubr.msk.f32.mxu1 %vm3790_vm9, %v219_v42 }
 0xc06   : > { %v5437_v2 = vld [vmem:[#allocation3 + $0x6a8] sm:$0xff] }
 0xc07   : > { %v6791_v51 = vpack.c.bf16 %v5437_v2, %v5436_v18 }
 0xc08   : > { %5626 = vmatmul.mubr.f32.gmra.mrb[38].mxu0 %v227_v17 }
 0xc09   : > { %6792 = vmatprep.subr.bf16.mxu1 %v6791_v51  ;;  %5630 = vmatprep.mubr.f32.mxu0 %v233_v1 }
 0xc0a   : > { %6794 = vmatpush3.bf16.msra.mxu1 %v6791_v51 }
 0xc0c   : > { %5631 = vmatmul.mubr.f32.gmra.mrb[40].mxu0 %v232_v54 }
 0xc0d   : > { %6317 = vmatmul.mubr.msk.f32.vlgmr.msra.gmra.mrb[46].mxu1 %vm3790_vm9, %v224_v34  ;;  %6330 = vmatprep.mubr.msk.f32.mxu0 %vm6928_vm12, %v9873_v15  ;;  %v5444_v15 = vpop.permute.xlu1 %5443  ;;  %vm5810_vm12 = vcmask 974848  }
 0xc0e   : > { %6319 = vmatprep.mubr.msk.f32.mxu1 %vm3790_vm9, %v229_v22  ;;  %v5440_v50 = vpop.permute.xlu0 %5439 }
 0xc11   : > { %6320 = vmatmul.mubr.msk.f32.gmra.mrb[48].mxu1 %vm3790_vm9, %v234_v14  ;;  %v5448_v11 = vpop.permute.xlu1 %5447 }
 0xc12   : > { %v5452_v60 = vpop.permute.xlu0 %5451 }
 0xc15   : > { %v5730_v52 = vpop.permute.xlu1 %5729 }
 0xc4c   : > { %v5727_v29 = vpop.permute.xlu0 %5726 }
 0xccb   : > { %v6151_v28 = vpop.f32.mrb[38].mxu1 }
 0xccc   : > { %v6152_v37 = vpop.f32.mrb[39].mxu1 }
 0xccd   : > { %v6153_v49 = vadd.f32 %v6152_v37, %v6151_v28 }
 0xccf   : > { %v6154_v43 = vpop.f32.mrb[40].mxu1  ;;  %v5533_v46 = vadd.f32 %v6153_v49, %v5440_v50 }
 0xcd0   : > { %v6155_v19 = vpop.f32.mrb[41].mxu1 }
 0xcd1   : > { %v6156_v57 = vadd.f32 %v6155_v19, %v6154_v43 }
 0xcd3   : > { %v6195_v48 = vpop.f32.mrb[34].mxu0  ;;  %v6157_v25 = vpop.f32.mrb[42].mxu1  ;;  %v5538_v16 = vadd.f32 %v6156_v57, %v5444_v15 }
 0xcd4   : > { %v6196_v30 = vpop.f32.mrb[35].mxu0  ;;  %v6158_v10 = vpop.f32.mrb[43].mxu1 }
 0xcd5   : > { %v6197_v23 = vadd.f32 %v6196_v30, %v6195_v48  ;;  %v6159_v5 = vadd.f32 %v6158_v10, %v6157_v25 }
 0xcd7   : > { %v6198_v58 = vpop.f32.mrb[36].mxu0  ;;  %v6160_v41 = vpop.f32.mrb[44].mxu1  ;;  %v5618_v47 = vadd.f32 %v6197_v23, %v5533_v46  ;;  %v5543_v8 = vadd.f32 %v6159_v5, %v5448_v11 }
 0xcd8   : > { %v6199_v59 = vpop.f32.mrb[37].mxu0  ;;  %v6161_v63 = vpop.f32.mrb[45].mxu1 }
 0xcd9   : > { %v6200_v33 = vadd.f32 %v6199_v59, %v6198_v58  ;;  %v6162_v21 = vadd.f32 %v6161_v63, %v6160_v41 }
 0xcdb   : > { %v6201_v32 = vpop.f32.mrb[38].mxu0  ;;  %v5623_v62 = vadd.f32 %v6200_v33, %v5538_v16  ;;  %v5548_v56 = vadd.f32 %v6162_v21, %v5452_v60 }
 0xcdc   : > { %v6202_v31 = vpop.f32.mrb[39].mxu0 }
 0xcdd   : > { %v6203_v6 = vadd.f32 %v6202_v31, %v6201_v32 }
 0xcdf   : > { %v6204_v61 = vpop.f32.mrb[40].mxu0  ;;  %v5628_v27 = vadd.f32 %v6203_v6, %v5543_v8 }
 0xce0   : > { %v6205_v55 = vpop.f32.mrb[41].mxu0  ;;  %v6318_v45 = vpop.f32.mrb[46].mxu1 }
 0xce1   : > { %v6206_v44 = vadd.f32 %v6205_v55, %v6204_v61  ;;  %v5708_v24 = vadd.f32 %v6318_v45, %v5623_v62  ;;  %v5702_v39 = vpop.f32.mrb[47].mxu1 }
 0xce2   : > { %v5703_v36 = vadd.f32 %v5702_v39, %v5618_v47 }
 0xce3   : > { %v5722_v3 = vmax.f32 %v5708_v24, 0.0  ;;  %v5633_v38 = vadd.f32 %v6206_v44, %v5548_v56 }
 0xce4   : > { %v5721_v26 = vmax.f32 %v5703_v36, 0.0  ;;  %v6321_v0 = vpop.f32.mrb[48].mxu1 }
 0xce5   : > { %v5718_v35 = vadd.f32 %v6321_v0, %v5633_v38  ;;  %v5712_v40 = vpop.f32.mrb[49].mxu1 }
 0xce6   : > { %v6796_v12 = vpack.c.bf16 %v5722_v3, %v5721_v26  ;;  %v5713_v13 = vadd.f32 %v5712_v40, %v5628_v27 }
 0xce7   : > { %v5724_v7 = vmax.f32 %v5718_v35, 0.0 }
 0xce8   : > { %v5723_v53 = vmax.f32 %v5713_v13, 0.0  ;;  %6797 = vmatpush3.bf16.msra.mxu0 %v6796_v12 }
 0xce9   : > { %6798 = vmatprep.subr.bf16.mxu0 %v6927_v4 }
 0xcea   : > { %v6799_v20 = vpack.c.bf16 %v5724_v7, %v5723_v53 }
 0xcec   : > { %6800 = vmatpush3.bf16.msra.mxu0 %v6799_v20 }
 0xcef   : > { %6331 = vmatmul.mubr.msk.f32.vlgmr.msra.gmra.mrb[42].mxu0 %vm777_vm0, %v5730_v52 }
 0xdc2   : > { %v5799_v42 = vpop.f32.mrb[42].mxu0 }
 0xdc3   : > { %v6332_v17 = vpop.f32.mrb[43].mxu0  ;;  %v5800_v18 = vadd.f32 %v5799_v42, %v5727_v29 }
 0xdc5   : > { %v5803_v2 = vmax.f32 %v5800_v18, 0.0 }
 0xdc7   : > { %v5804_v1 = vsub.f32 0.0, %v5803_v2 }
 0xdc9   : > { %v5805_v51 = vmul.f32 1.442695, %v5804_v1 }
 0xdcb   : > { %6893 = vpow2.f32 %v5805_v51 }
 0xdd5   : > { %v6894_v54 = vpop.eup %6893 }
 0xdd6   : > { %v5807_v34 = vadd.f32 1.0, %v6894_v54 }
 0xdd8   : > { %6895 = vrcp.f32 %v5807_v34 }
 0xde2   : > { %v6896_v4 = vpop.eup %6895 }
 0xde3   : > { %5811 = vst.msk [vmem:[%s190_s14] sm:$0x1] %vm5810_vm12, %v6896_v4 }
 0xde4 PF: > { %s14_s15 = sadd.s32 1, %s6912_s15  }
 0xde5   : > { %p11_p4 = scmp.ge.s32.totalorder %s14_s15, 4  }
 0xde7   :  { %13 = sbr.rel (!%p11_p4) target bundleno = 1 (0x1), region = 75 }

</bundles_post_ra>
